<compile_context>
chip_gen: v5e
topology: v5e:2x2
jax: 0.10.0
libtpu: 0.0.40
codegen_flags: <defaults>
</compile_context>

<pallas_src>
import math

import jax
import jax.numpy as jnp
from jax.experimental import pallas as pl
from jax.experimental.pallas import tpu as pltpu

# ----------------------------- model config ---------------------------------
D_MODEL = 32
NUM_HEADS = 4
HEAD_DIM = D_MODEL // NUM_HEADS
DIM_FF = 64
NUM_LAYERS = 2
T_QUERIES = 8        # tgt sequence length (num object queries)
S_MEMORY = 16        # memory sequence length
BATCH = 2
LN_EPS = 1e-5
VEC_W = max(3 * D_MODEL, DIM_FF + D_MODEL)   # width of the packed bias/LN slab

PACKED_KEYS = ["w_sa_qkv", "w_dd", "w_ff1", "w_ff2", "w_mem", "vec", "fn"]


# ----------------------------- kernel helpers --------------------------------
def _layer_norm(x, w, b):
    mu = jnp.mean(x, axis=-1, keepdims=True)
    var = jnp.mean((x - mu) ** 2, axis=-1, keepdims=True)
    return (x - mu) * jax.lax.rsqrt(var + LN_EPS) * w + b


def _mha(q_heads, k_heads, v_heads):
    """Multi-head attention with a single batched softmax.

    q_heads/k_heads/v_heads: lists of NUM_HEADS f32 arrays,
      q: (B, Lq, dh)   k, v: (B, Lk, dh)
    Returns (B*Lq, D) with heads concatenated along lanes.
    Dots are rank-3 (single batch dim) bf16 MXU pushes with f32 accumulation;
    all H heads' logits are concatenated along the untiled leading axis so the
    max / exp / sum / divide of the softmax run exactly ONCE.
    """
    B = q_heads[0].shape[0]
    scale = 1.0 / math.sqrt(HEAD_DIM)
    s = jnp.concatenate(
        [jnp.einsum("bqd,bkd->bqk",
                    (qh * scale).astype(jnp.bfloat16), kh.astype(jnp.bfloat16),
                    preferred_element_type=jnp.float32)
         for qh, kh in zip(q_heads, k_heads)], axis=0)        # (H*B, Lq, Lk)
    s = s - jnp.max(s, axis=-1, keepdims=True)
    p = jnp.exp(s)
    p = p / jnp.sum(p, axis=-1, keepdims=True)                # exact divide (parity)
    o = jnp.concatenate(
        [jnp.einsum("bqk,bkd->bqd",
                    p[h * B:(h + 1) * B].astype(jnp.bfloat16),
                    v_heads[h].astype(jnp.bfloat16),
                    preferred_element_type=jnp.float32)
         for h in range(NUM_HEADS)], axis=-1)                 # (B, Lq, D)
    b, lq, d = o.shape
    return o.reshape(b * lq, d)


# ----------------------------- fused decoder kernel ---------------------------
def make_decoder_kernel(B, T, S, L):
    D, H, dh, FF = D_MODEL, NUM_HEADS, HEAD_DIM, DIM_FF
    BT, BS, LD = B * T, B * S, L * D

    def kernel(tgt_ref, mem_ref, qpos_ref, pos_ref,
               w_sa_qkv_ref, w_dd_ref, w_ff1_ref, w_ff2_ref,
               w_mem_ref, vec_ref, fn_ref, out_ref):
        # ---- flatten batch into rows; activations stay f32 ----
        x = tgt_ref[...].reshape(BT, D)
        qpos = qpos_ref[...].reshape(BT, D)
        mem = mem_ref[...].reshape(BS, D)
        mem_pos = mem + pos_ref[...].reshape(BS, D)

        qpos_bf = qpos.astype(jnp.bfloat16)
        mem_bf = mem.astype(jnp.bfloat16)
        mem_pos_bf = mem_pos.astype(jnp.bfloat16)

        # ---- hoisted layer-invariant projections (off the per-layer chain) ----
        # w_mem rows [0:D] = [ca_K | ca_V | sa_V] weights (all layers), row D = biases.
        hw = w_mem_ref[0:D, :]                                # (D, 3*L*D) bf16
        hb = w_mem_ref[D:D + 1, :]                            # (1, 3*L*D) bf16
        k_all = (jnp.dot(mem_pos_bf, hw[:, 0:LD],
                         preferred_element_type=jnp.float32)
                 + hb[:, 0:LD]).reshape(B, S, LD)
        v_all = (jnp.dot(mem_bf, hw[:, LD:2 * LD],
                         preferred_element_type=jnp.float32)
                 + hb[:, LD:2 * LD]).reshape(B, S, LD)
        vcorr = jnp.dot(qpos_bf, hw[:, 2 * LD:3 * LD],
                        preferred_element_type=jnp.float32).reshape(B, T, LD)

        fn_w, fn_b = fn_ref[0:1, :], fn_ref[1:2, :]

        outs = []
        for l in range(L):                                    # static layer loop
            vec = vec_ref[l]                                  # (5, VEC_W) f32
            b_qkv = vec[0:1, 0:3 * D]
            b_ca_q = vec[1:2, 0:D]
            b_sa_o = vec[1:2, D:2 * D]
            b_ca_o = vec[1:2, 2 * D:3 * D]
            b_ff1 = vec[2:3, 0:FF]
            b_ff2 = vec[2:3, FF:FF + D]
            ln1_w, ln2_w, ln3_w = vec[3:4, 0:D], vec[3:4, D:2 * D], vec[3:4, 2 * D:3 * D]
            ln1_b, ln2_b, ln3_b = vec[4:5, 0:D], vec[4:5, D:2 * D], vec[4:5, 2 * D:3 * D]
            wdd = w_dd_ref[l]                                 # (3, D, D) bf16

            # ---- self-attention: one fused (BT,D)x(D,3D) projection ----
            qkv = (jnp.dot((x + qpos).astype(jnp.bfloat16), w_sa_qkv_ref[l],
                           preferred_element_type=jnp.float32)
                   + b_qkv).reshape(B, T, 3 * D)
            # v must be x@Wv (not (x+qpos)@Wv): subtract hoisted qpos@Wv correction.
            q_h = [qkv[:, :, h * dh:(h + 1) * dh] for h in range(H)]
            k_h = [qkv[:, :, D + h * dh:D + (h + 1) * dh] for h in range(H)]
            v_h = [qkv[:, :, 2 * D + h * dh:2 * D + (h + 1) * dh]
                   - vcorr[:, :, l * D + h * dh:l * D + (h + 1) * dh]
                   for h in range(H)]
            sa = jnp.dot(_mha(q_h, k_h, v_h).astype(jnp.bfloat16), wdd[1],
                         preferred_element_type=jnp.float32) + b_sa_o
            x = _layer_norm(x + sa, ln1_w, ln1_b)

            # ---- cross-attention: K/V already projected before the loop ----
            cq = (jnp.dot((x + qpos).astype(jnp.bfloat16), wdd[0],
                          preferred_element_type=jnp.float32)
                  + b_ca_q).reshape(B, T, D)
            q_h = [cq[:, :, h * dh:(h + 1) * dh] for h in range(H)]
            k_h = [k_all[:, :, l * D + h * dh:l * D + (h + 1) * dh] for h in range(H)]
            v_h = [v_all[:, :, l * D + h * dh:l * D + (h + 1) * dh] for h in range(H)]
            ca = jnp.dot(_mha(q_h, k_h, v_h).astype(jnp.bfloat16), wdd[2],
                         preferred_element_type=jnp.float32) + b_ca_o
            x = _layer_norm(x + ca, ln2_w, ln2_b)

            # ---- feed-forward (ReLU) ----
            hid = jnp.maximum(
                jnp.dot(x.astype(jnp.bfloat16), w_ff1_ref[l],
                        preferred_element_type=jnp.float32) + b_ff1, 0.0)
            ff = jnp.dot(hid.astype(jnp.bfloat16), w_ff2_ref[l],
                         preferred_element_type=jnp.float32) + b_ff2
            x = _layer_norm(x + ff, ln3_w, ln3_b)

            # return_intermediate: final LayerNorm of this layer's output
            outs.append(_layer_norm(x, fn_w, fn_b))

        # single write of the whole result at kernel end
        out_ref[...] = jnp.stack(outs, axis=0).reshape(L, B, T, D)

    return kernel


# ----------------------------- wrappers --------------------------------------
def run_decoder(tgt_b, mem_b, qpos_b, pos_b, packed):
    """tgt_b/qpos_b: (B, T, D); mem_b/pos_b: (B, S, D) -> (L, B, T, D)."""
    B, T, D = tgt_b.shape
    S = mem_b.shape[1]
    L = packed["vec"].shape[0]
    args = (tgt_b, mem_b, qpos_b, pos_b) + tuple(packed[k] for k in PACKED_KEYS)

    # advisory cost estimate for XLA's scheduler
    BT, BS, LD = B * T, B * S, L * D
    flops = 2 * BS * D * (2 * LD) + 2 * BT * D * LD                 # hoisted projections
    flops += L * (2 * BT * D * 3 * D                                # fused QKV
                  + 4 * B * T * T * D                               # self-attention
                  + 3 * (2 * BT * D * D)                            # sa_out, ca_q, ca_out
                  + 4 * B * T * S * D                               # cross-attention
                  + 4 * BT * D * DIM_FF)                            # FFN
    transcendentals = L * (B * NUM_HEADS * T * (T + S) + 4 * BT)    # exp + rsqrt
    bytes_accessed = (sum(int(a.size) * a.dtype.itemsize for a in args)
                      + L * B * T * D * 4)

    return pl.pallas_call(
        make_decoder_kernel(B, T, S, L),
        out_shape=jax.ShapeDtypeStruct((L, B, T, D), jnp.float32),
        in_specs=[pl.BlockSpec(memory_space=pltpu.MemorySpace.VMEM) for _ in args],
        out_specs=pl.BlockSpec(memory_space=pltpu.MemorySpace.VMEM),
        cost_estimate=pl.CostEstimate(flops=int(flops),
                                      transcendentals=int(transcendentals),
                                      bytes_accessed=int(bytes_accessed)),
    )(*args)


@jax.jit
def transformer_decoder_forward(tgt, memory, query_pos, pos, packed):
    """Pallas implementation of TransformerDecoder.forward (eval, no masks).

    PyTorch seq-first interface:
      tgt / query_pos: (T, B, D)     memory / pos: (S, B, D)
    Returns (num_layers, T, B, D)  (return_intermediate=True, norm=LayerNorm).
    """
    tgt_b = jnp.transpose(tgt, (1, 0, 2))
    mem_b = jnp.transpose(memory, (1, 0, 2))
    qpos_b = jnp.transpose(query_pos, (1, 0, 2))
    pos_b = jnp.transpose(pos, (1, 0, 2))
    out = run_decoder(tgt_b, mem_b, qpos_b, pos_b, packed)   # (L, B, T, D)
    return jnp.transpose(out, (0, 2, 1, 3))                  # (L, T, B, D)


# ----------------------------- host-side weight packing -----------------------
def pack_params(layer_params, final_norm):
    """Repack PyTorch-layout params into a handful of kernel slabs:
    pre-transposed to x@W layout, self-attn QKV fused, cross-attn K/V and
    self-attn V weights concatenated for the hoisted projections, and all
    biases / LayerNorm vectors packed into one (L, 5, VEC_W) f32 slab.
    Matmul weight slabs are stored bf16 (MXU operands); vectors stay f32."""
    L = len(layer_params)
    D, FF, LD = D_MODEL, DIM_FF, len(layer_params) * D_MODEL

    def row(*parts):
        v = jnp.concatenate(parts)
        return jnp.pad(v, (0, VEC_W - v.shape[0]))

    w_sa_qkv = jnp.stack([
        jnp.concatenate([p["sa_in_w"][0].T, p["sa_in_w"][1].T, p["sa_in_w"][2].T],
                        axis=1) for p in layer_params]).astype(jnp.bfloat16)  # (L,D,3D)

    w_dd = jnp.stack([
        jnp.stack([p["ca_in_w"][0].T, p["sa_out_w"].T, p["ca_out_w"].T])
        for p in layer_params]).astype(jnp.bfloat16)                          # (L,3,D,D)

    w_ff1 = jnp.stack([p["ff_w1"].T for p in layer_params]).astype(jnp.bfloat16)
    w_ff2 = jnp.stack([p["ff_w2"].T for p in layer_params]).astype(jnp.bfloat16)

    # hoisted projections: columns = [ca_K (all layers) | ca_V | sa_V]; last row = biases
    ca_k_w = jnp.concatenate([p["ca_in_w"][1].T for p in layer_params], axis=1)
    ca_v_w = jnp.concatenate([p["ca_in_w"][2].T for p in layer_params], axis=1)
    sa_v_w = jnp.concatenate([p["sa_in_w"][2].T for p in layer_params], axis=1)
    hoist_w = jnp.concatenate([ca_k_w, ca_v_w, sa_v_w], axis=1)               # (D, 3LD)
    ca_k_b = jnp.concatenate([p["ca_in_b"][1] for p in layer_params])
    ca_v_b = jnp.concatenate([p["ca_in_b"][2] for p in layer_params])
    hoist_b = jnp.concatenate([ca_k_b, ca_v_b,
                               jnp.zeros((LD,), jnp.float32)])[None, :]       # (1, 3LD)
    w_mem = jnp.concatenate([hoist_w, hoist_b], axis=0).astype(jnp.bfloat16)  # (D+1, 3LD)

    vec = jnp.stack([
        jnp.stack([
            row(p["sa_in_b"][0], p["sa_in_b"][1], p["sa_in_b"][2]),
            row(p["ca_in_b"][0], p["sa_out_b"], p["ca_out_b"]),
            row(p["ff_b1"], p["ff_b2"]),
            row(p["n1_w"], p["n2_w"], p["n3_w"]),
            row(p["n1_b"], p["n2_b"], p["n3_b"]),
        ]) for p in layer_params])                                            # (L,5,VEC_W)

    fn = jnp.stack([final_norm["w"], final_norm["b"]])                        # (2, D)
    return {"w_sa_qkv": w_sa_qkv, "w_dd": w_dd, "w_ff1": w_ff1, "w_ff2": w_ff2,
            "w_mem": w_mem, "vec": vec, "fn": fn}


# ----------------------------- pure-JAX reference -----------------------------
def _ln_ref(x, w, b):
    mu = jnp.mean(x, axis=-1, keepdims=True)
    var = jnp.mean((x - mu) ** 2, axis=-1, keepdims=True)
    return (x - mu) * jax.lax.rsqrt(var + LN_EPS) * w + b


def _mha_ref(q_in, k_in, v_in, in_w, in_b, out_w, out_b):
    B, Lq, D = q_in.shape
    Lk = k_in.shape[1]
    dh = D // NUM_HEADS
    q = jnp.einsum("bld,ed->ble", q_in, in_w[0]) + in_b[0]
    k = jnp.einsum("bld,ed->ble", k_in, in_w[1]) + in_b[1]
    v = jnp.einsum("bld,ed->ble", v_in, in_w[2]) + in_b[2]
    q = q.reshape(B, Lq, NUM_HEADS, dh) * (dh ** -0.5)
    k = k.reshape(B, Lk, NUM_HEADS, dh)
    v = v.reshape(B, Lk, NUM_HEADS, dh)
    s = jnp.einsum("bqhd,bkhd->bhqk", q, k)
    p = jax.nn.softmax(s, axis=-1)
    o = jnp.einsum("bhqk,bkhd->bqhd", p, v).reshape(B, Lq, D)
    return jnp.einsum("bqd,ed->bqe", o, out_w) + out_b


def _layer_ref(tgt, mem, qpos, pos, p):
    qk = tgt + qpos
    sa = _mha_ref(qk, qk, tgt, p["sa_in_w"], p["sa_in_b"],
                  p["sa_out_w"], p["sa_out_b"])
    tgt1 = _ln_ref(tgt + sa, p["n1_w"], p["n1_b"])
    ca = _mha_ref(tgt1 + qpos, mem + pos, mem,
                  p["ca_in_w"], p["ca_in_b"], p["ca_out_w"], p["ca_out_b"])
    tgt2 = _ln_ref(tgt1 + ca, p["n2_w"], p["n2_b"])
    h = jnp.maximum(jnp.einsum("bqd,fd->bqf", tgt2, p["ff_w1"]) + p["ff_b1"], 0.0)
    ff = jnp.einsum("bqf,df->bqd", h, p["ff_w2"]) + p["ff_b2"]
    return _ln_ref(tgt2 + ff, p["n3_w"], p["n3_b"])


def decoder_ref(tgt, memory, query_pos, pos, layer_params, final_norm):
    tgt_b = jnp.transpose(tgt, (1, 0, 2))
    mem_b = jnp.transpose(memory, (1, 0, 2))
    qpos_b = jnp.transpose(query_pos, (1, 0, 2))
    pos_b = jnp.transpose(pos, (1, 0, 2))
    out = tgt_b
    inter = []
    for p in layer_params:
        out = _layer_ref(out, mem_b, qpos_b, pos_b, p)
        inter.append(_ln_ref(out, final_norm["w"], final_norm["b"]))
    return jnp.transpose(jnp.stack(inter), (0, 2, 1, 3))


# ----------------------------- parameter init --------------------------------
def init_layer_params(key, d_model=D_MODEL, dim_ff=DIM_FF):
    """Parameters in the PyTorch layout (in_proj (3,D,D) used as x@W.T, etc.)."""
    ks = jax.random.split(key, 18)

    def w(k, shape, s=0.05):
        return jax.random.normal(k, shape, jnp.float32) * s

    return {
        "sa_in_w": w(ks[0], (3, d_model, d_model)),
        "sa_in_b": w(ks[1], (3, d_model)),
        "sa_out_w": w(ks[2], (d_model, d_model)),
        "sa_out_b": w(ks[3], (d_model,)),
        "ca_in_w": w(ks[4], (3, d_model, d_model)),
        "ca_in_b": w(ks[5], (3, d_model)),
        "ca_out_w": w(ks[6], (d_model, d_model)),
        "ca_out_b": w(ks[7], (d_model,)),
        "ff_w1": w(ks[8], (dim_ff, d_model)),
        "ff_b1": w(ks[9], (dim_ff,)),
        "ff_w2": w(ks[10], (d_model, dim_ff)),
        "ff_b2": w(ks[11], (d_model,)),
        "n1_w": 1.0 + w(ks[12], (d_model,)),
        "n1_b": w(ks[13], (d_model,)),
        "n2_w": 1.0 + w(ks[14], (d_model,)),
        "n2_b": w(ks[15], (d_model,)),
        "n3_w": 1.0 + w(ks[16], (d_model,)),
        "n3_b": w(ks[17], (d_model,)),
    }


# ----------------------------- main -------------------------------------------
if __name__ == "__main__":
    key = jax.random.PRNGKey(0)
    k_tgt, k_mem, k_qpos, k_pos, k_params, k_fn = jax.random.split(key, 6)

    # PyTorch seq-first convention: (L_seq, B, D)
    tgt = jax.random.normal(k_tgt, (T_QUERIES, BATCH, D_MODEL), jnp.float32)
    memory = jax.random.normal(k_mem, (S_MEMORY, BATCH, D_MODEL), jnp.float32)
    query_pos = jax.random.normal(k_qpos, (T_QUERIES, BATCH, D_MODEL), jnp.float32)
    pos = jax.random.normal(k_pos, (S_MEMORY, BATCH, D_MODEL), jnp.float32)

    layer_keys = jax.random.split(k_params, NUM_LAYERS)
    layer_params = [init_layer_params(lk) for lk in layer_keys]
    kf1, kf2 = jax.random.split(k_fn)
    final_norm = {
        "w": 1.0 + 0.05 * jax.random.normal(kf1, (D_MODEL,), jnp.float32),
        "b": 0.05 * jax.random.normal(kf2, (D_MODEL,), jnp.float32),
    }
    packed = pack_params(layer_params, final_norm)

    out = transformer_decoder_forward(tgt, memory, query_pos, pos, packed)
    out = jax.block_until_ready(out)
    assert out.shape == (NUM_LAYERS, T_QUERIES, BATCH, D_MODEL), out.shape

    ref = decoder_ref(tgt, memory, query_pos, pos, layer_params, final_norm)
    ref = jax.block_until_ready(ref)
    # bf16 MXU operands (weights stored bf16 + activation casts at the dots)
    # loosen parity vs. the f32 reference to the bf16 rounding envelope.
    max_err = float(jnp.max(jnp.abs(out - ref)))
    assert jnp.allclose(out, ref, rtol=2e-2, atol=2e-2), max_err

    print("KERNEL_OK")
</pallas_src>

<mosaic_0001>
module attributes {stable_mosaic.version = 11 : i64} {
  func.func @kernel(%arg0: memref<2x8x32xf32, #tpu.memory_space<vmem>>, %arg1: memref<2x16x32xf32, #tpu.memory_space<vmem>>, %arg2: memref<2x8x32xf32, #tpu.memory_space<vmem>>, %arg3: memref<2x16x32xf32, #tpu.memory_space<vmem>>, %arg4: memref<2x32x96xbf16, #tpu.memory_space<vmem>>, %arg5: memref<2x3x32x32xbf16, #tpu.memory_space<vmem>>, %arg6: memref<2x32x64xbf16, #tpu.memory_space<vmem>>, %arg7: memref<2x64x32xbf16, #tpu.memory_space<vmem>>, %arg8: memref<33x192xbf16, #tpu.memory_space<vmem>>, %arg9: memref<2x5x96xf32, #tpu.memory_space<vmem>>, %arg10: memref<2x32xf32, #tpu.memory_space<vmem>>, %arg11: memref<2x2x8x32xf32, #tpu.memory_space<vmem>>) attributes {dimension_semantics = [], scalar_prefetch = 0 : i64, scratch_operands = 0 : i64, tpu.core_type = #tpu.core_type<tc>} {
    %c0 = arith.constant 0 : index
    %c0_0 = arith.constant 0 : index
    %c0_1 = arith.constant 0 : index
    %0 = vector.load %arg0[%c0, %c0_0, %c0_1] : memref<2x8x32xf32, #tpu.memory_space<vmem>>, vector<2x8x32xf32>
    %1 = vector.shape_cast %0 : vector<2x8x32xf32> to vector<16x32xf32>
    %c0_2 = arith.constant 0 : index
    %c0_3 = arith.constant 0 : index
    %c0_4 = arith.constant 0 : index
    %2 = vector.load %arg2[%c0_2, %c0_3, %c0_4] : memref<2x8x32xf32, #tpu.memory_space<vmem>>, vector<2x8x32xf32>
    %3 = vector.shape_cast %2 : vector<2x8x32xf32> to vector<16x32xf32>
    %c0_5 = arith.constant 0 : index
    %c0_6 = arith.constant 0 : index
    %c0_7 = arith.constant 0 : index
    %4 = vector.load %arg1[%c0_5, %c0_6, %c0_7] : memref<2x16x32xf32, #tpu.memory_space<vmem>>, vector<2x16x32xf32>
    %5 = vector.shape_cast %4 : vector<2x16x32xf32> to vector<32x32xf32>
    %c0_8 = arith.constant 0 : index
    %c0_9 = arith.constant 0 : index
    %c0_10 = arith.constant 0 : index
    %6 = vector.load %arg3[%c0_8, %c0_9, %c0_10] : memref<2x16x32xf32, #tpu.memory_space<vmem>>, vector<2x16x32xf32>
    %7 = vector.shape_cast %6 : vector<2x16x32xf32> to vector<32x32xf32>
    %8 = arith.addf %5, %7 : vector<32x32xf32>
    %9 = arith.truncf %3 : vector<16x32xf32> to vector<16x32xbf16>
    %10 = arith.truncf %5 : vector<32x32xf32> to vector<32x32xbf16>
    %11 = arith.truncf %8 : vector<32x32xf32> to vector<32x32xbf16>
    %c0_11 = arith.constant 0 : index
    %c0_12 = arith.constant 0 : index
    %12 = vector.load %arg8[%c0_11, %c0_12] : memref<33x192xbf16, #tpu.memory_space<vmem>>, vector<32x192xbf16>
    %c32 = arith.constant 32 : index
    %c0_13 = arith.constant 0 : index
    %13 = vector.load %arg8[%c32, %c0_13] : memref<33x192xbf16, #tpu.memory_space<vmem>>, vector<1x192xbf16>
    %14 = vector.extract_strided_slice %12 {offsets = [0, 0], sizes = [32, 64], strides = [1, 1]} : vector<32x192xbf16> to vector<32x64xbf16>
    %cst = arith.constant dense<0.000000e+00> : vector<32x64xf32>
    %15 = tpu.matmul %11, %14, %cst {dimension_numbers = #tpu.dot_dimension_numbers<[1], [0], [0], [1], [0, 0, 1, 1], [], []>} : vector<32x32xbf16>, vector<32x64xbf16>, vector<32x64xf32> -> vector<32x64xf32>
    %16 = vector.extract_strided_slice %13 {offsets = [0, 0], sizes = [1, 64], strides = [1, 1]} : vector<1x192xbf16> to vector<1x64xbf16>
    %17 = arith.extf %16 : vector<1x64xbf16> to vector<1x64xf32>
    %18 = vector.broadcast %17 : vector<1x64xf32> to vector<32x64xf32>
    %19 = arith.addf %15, %18 : vector<32x64xf32>
    %20 = vector.shape_cast %19 : vector<32x64xf32> to vector<2x16x64xf32>
    %21 = vector.extract_strided_slice %12 {offsets = [0, 64], sizes = [32, 64], strides = [1, 1]} : vector<32x192xbf16> to vector<32x64xbf16>
    %cst_14 = arith.constant dense<0.000000e+00> : vector<32x64xf32>
    %22 = tpu.matmul %10, %21, %cst_14 {dimension_numbers = #tpu.dot_dimension_numbers<[1], [0], [0], [1], [0, 0, 1, 1], [], []>} : vector<32x32xbf16>, vector<32x64xbf16>, vector<32x64xf32> -> vector<32x64xf32>
    %23 = vector.extract_strided_slice %13 {offsets = [0, 64], sizes = [1, 64], strides = [1, 1]} : vector<1x192xbf16> to vector<1x64xbf16>
    %24 = arith.extf %23 : vector<1x64xbf16> to vector<1x64xf32>
    %25 = vector.broadcast %24 : vector<1x64xf32> to vector<32x64xf32>
    %26 = arith.addf %22, %25 : vector<32x64xf32>
    %27 = vector.shape_cast %26 : vector<32x64xf32> to vector<2x16x64xf32>
    %28 = vector.extract_strided_slice %12 {offsets = [0, 128], sizes = [32, 64], strides = [1, 1]} : vector<32x192xbf16> to vector<32x64xbf16>
    %cst_15 = arith.constant dense<0.000000e+00> : vector<16x64xf32>
    %29 = tpu.matmul %9, %28, %cst_15 {dimension_numbers = #tpu.dot_dimension_numbers<[1], [0], [0], [1], [0, 0, 1, 1], [], []>} : vector<16x32xbf16>, vector<32x64xbf16>, vector<16x64xf32> -> vector<16x64xf32>
    %30 = vector.shape_cast %29 : vector<16x64xf32> to vector<2x8x64xf32>
    %c0_16 = arith.constant 0 : index
    %c0_17 = arith.constant 0 : index
    %31 = vector.load %arg10[%c0_16, %c0_17] : memref<2x32xf32, #tpu.memory_space<vmem>>, vector<1x32xf32>
    %c1 = arith.constant 1 : index
    %c0_18 = arith.constant 0 : index
    %32 = vector.load %arg10[%c1, %c0_18] : memref<2x32xf32, #tpu.memory_space<vmem>>, vector<1x32xf32>
    %c0_19 = arith.constant 0 : index
    %c0_20 = arith.constant 0 : index
    %c0_21 = arith.constant 0 : index
    %33 = vector.load %arg9[%c0_19, %c0_20, %c0_21] : memref<2x5x96xf32, #tpu.memory_space<vmem>>, vector<1x5x96xf32>
    %34 = vector.shape_cast %33 : vector<1x5x96xf32> to vector<5x96xf32>
    %35 = vector.extract_strided_slice %34 {offsets = [0, 0], sizes = [1, 96], strides = [1, 1]} : vector<5x96xf32> to vector<1x96xf32>
    %36 = vector.extract_strided_slice %34 {offsets = [1, 0], sizes = [1, 32], strides = [1, 1]} : vector<5x96xf32> to vector<1x32xf32>
    %37 = vector.extract_strided_slice %34 {offsets = [1, 32], sizes = [1, 32], strides = [1, 1]} : vector<5x96xf32> to vector<1x32xf32>
    %38 = vector.extract_strided_slice %34 {offsets = [1, 64], sizes = [1, 32], strides = [1, 1]} : vector<5x96xf32> to vector<1x32xf32>
    %39 = vector.extract_strided_slice %34 {offsets = [2, 0], sizes = [1, 64], strides = [1, 1]} : vector<5x96xf32> to vector<1x64xf32>
    %40 = vector.extract_strided_slice %34 {offsets = [2, 64], sizes = [1, 32], strides = [1, 1]} : vector<5x96xf32> to vector<1x32xf32>
    %41 = vector.extract_strided_slice %34 {offsets = [3, 0], sizes = [1, 32], strides = [1, 1]} : vector<5x96xf32> to vector<1x32xf32>
    %42 = vector.extract_strided_slice %34 {offsets = [3, 32], sizes = [1, 32], strides = [1, 1]} : vector<5x96xf32> to vector<1x32xf32>
    %43 = vector.extract_strided_slice %34 {offsets = [3, 64], sizes = [1, 32], strides = [1, 1]} : vector<5x96xf32> to vector<1x32xf32>
    %44 = vector.extract_strided_slice %34 {offsets = [4, 0], sizes = [1, 32], strides = [1, 1]} : vector<5x96xf32> to vector<1x32xf32>
    %45 = vector.extract_strided_slice %34 {offsets = [4, 32], sizes = [1, 32], strides = [1, 1]} : vector<5x96xf32> to vector<1x32xf32>
    %46 = vector.extract_strided_slice %34 {offsets = [4, 64], sizes = [1, 32], strides = [1, 1]} : vector<5x96xf32> to vector<1x32xf32>
    %c0_22 = arith.constant 0 : index
    %c0_23 = arith.constant 0 : index
    %c0_24 = arith.constant 0 : index
    %c0_25 = arith.constant 0 : index
    %47 = vector.load %arg5[%c0_22, %c0_23, %c0_24, %c0_25] : memref<2x3x32x32xbf16, #tpu.memory_space<vmem>>, vector<1x3x32x32xbf16>
    %48 = vector.shape_cast %47 : vector<1x3x32x32xbf16> to vector<3x32x32xbf16>
    %49 = arith.addf %1, %3 : vector<16x32xf32>
    %50 = arith.truncf %49 : vector<16x32xf32> to vector<16x32xbf16>
    %c0_26 = arith.constant 0 : index
    %c0_27 = arith.constant 0 : index
    %c0_28 = arith.constant 0 : index
    %51 = vector.load %arg4[%c0_26, %c0_27, %c0_28] : memref<2x32x96xbf16, #tpu.memory_space<vmem>>, vector<1x32x96xbf16>
    %52 = vector.shape_cast %51 : vector<1x32x96xbf16> to vector<32x96xbf16>
    %cst_29 = arith.constant dense<0.000000e+00> : vector<16x96xf32>
    %53 = tpu.matmul %50, %52, %cst_29 {dimension_numbers = #tpu.dot_dimension_numbers<[1], [0], [0], [1], [0, 0, 1, 1], [], []>} : vector<16x32xbf16>, vector<32x96xbf16>, vector<16x96xf32> -> vector<16x96xf32>
    %54 = vector.broadcast %35 : vector<1x96xf32> to vector<16x96xf32>
    %55 = arith.addf %53, %54 : vector<16x96xf32>
    %56 = vector.shape_cast %55 : vector<16x96xf32> to vector<2x8x96xf32>
    %57 = vector.extract_strided_slice %56 {offsets = [0, 0, 0], sizes = [2, 8, 8], strides = [1, 1, 1]} : vector<2x8x96xf32> to vector<2x8x8xf32>
    %58 = vector.extract_strided_slice %56 {offsets = [0, 0, 8], sizes = [2, 8, 8], strides = [1, 1, 1]} : vector<2x8x96xf32> to vector<2x8x8xf32>
    %59 = vector.extract_strided_slice %56 {offsets = [0, 0, 16], sizes = [2, 8, 8], strides = [1, 1, 1]} : vector<2x8x96xf32> to vector<2x8x8xf32>
    %60 = vector.extract_strided_slice %56 {offsets = [0, 0, 24], sizes = [2, 8, 8], strides = [1, 1, 1]} : vector<2x8x96xf32> to vector<2x8x8xf32>
    %61 = vector.extract_strided_slice %56 {offsets = [0, 0, 32], sizes = [2, 8, 8], strides = [1, 1, 1]} : vector<2x8x96xf32> to vector<2x8x8xf32>
    %62 = vector.extract_strided_slice %56 {offsets = [0, 0, 40], sizes = [2, 8, 8], strides = [1, 1, 1]} : vector<2x8x96xf32> to vector<2x8x8xf32>
    %63 = vector.extract_strided_slice %56 {offsets = [0, 0, 48], sizes = [2, 8, 8], strides = [1, 1, 1]} : vector<2x8x96xf32> to vector<2x8x8xf32>
    %64 = vector.extract_strided_slice %56 {offsets = [0, 0, 56], sizes = [2, 8, 8], strides = [1, 1, 1]} : vector<2x8x96xf32> to vector<2x8x8xf32>
    %65 = vector.extract_strided_slice %56 {offsets = [0, 0, 64], sizes = [2, 8, 8], strides = [1, 1, 1]} : vector<2x8x96xf32> to vector<2x8x8xf32>
    %66 = vector.extract_strided_slice %30 {offsets = [0, 0, 0], sizes = [2, 8, 8], strides = [1, 1, 1]} : vector<2x8x64xf32> to vector<2x8x8xf32>
    %67 = arith.subf %65, %66 : vector<2x8x8xf32>
    %68 = vector.extract_strided_slice %56 {offsets = [0, 0, 72], sizes = [2, 8, 8], strides = [1, 1, 1]} : vector<2x8x96xf32> to vector<2x8x8xf32>
    %69 = vector.extract_strided_slice %30 {offsets = [0, 0, 8], sizes = [2, 8, 8], strides = [1, 1, 1]} : vector<2x8x64xf32> to vector<2x8x8xf32>
    %70 = arith.subf %68, %69 : vector<2x8x8xf32>
    %71 = vector.extract_strided_slice %56 {offsets = [0, 0, 80], sizes = [2, 8, 8], strides = [1, 1, 1]} : vector<2x8x96xf32> to vector<2x8x8xf32>
    %72 = vector.extract_strided_slice %30 {offsets = [0, 0, 16], sizes = [2, 8, 8], strides = [1, 1, 1]} : vector<2x8x64xf32> to vector<2x8x8xf32>
    %73 = arith.subf %71, %72 : vector<2x8x8xf32>
    %74 = vector.extract_strided_slice %56 {offsets = [0, 0, 88], sizes = [2, 8, 8], strides = [1, 1, 1]} : vector<2x8x96xf32> to vector<2x8x8xf32>
    %75 = vector.extract_strided_slice %30 {offsets = [0, 0, 24], sizes = [2, 8, 8], strides = [1, 1, 1]} : vector<2x8x64xf32> to vector<2x8x8xf32>
    %76 = arith.subf %74, %75 : vector<2x8x8xf32>
    %cst_30 = arith.constant 0.353553385 : f32
    %77 = vector.broadcast %cst_30 : f32 to vector<2x8x8xf32>
    %78 = arith.mulf %57, %77 : vector<2x8x8xf32>
    %79 = arith.truncf %78 : vector<2x8x8xf32> to vector<2x8x8xbf16>
    %80 = arith.truncf %61 : vector<2x8x8xf32> to vector<2x8x8xbf16>
    "tpu.trace_start"() <{level = 10 : i32, message = "bqd,bkd->bqk"}> : () -> ()
    %cst_31 = arith.constant dense<0.000000e+00> : vector<2x8x8xf32>
    %81 = tpu.matmul %79, %80, %cst_31 {dimension_numbers = #tpu.dot_dimension_numbers<[2], [2], [1], [1], [0, 0, 0, 1, 1, 1], [0], [0]>} : vector<2x8x8xbf16>, vector<2x8x8xbf16>, vector<2x8x8xf32> -> vector<2x8x8xf32>
    "tpu.trace_stop"() : () -> ()
    %cst_32 = arith.constant 0.353553385 : f32
    %82 = vector.broadcast %cst_32 : f32 to vector<2x8x8xf32>
    %83 = arith.mulf %58, %82 : vector<2x8x8xf32>
    %84 = arith.truncf %83 : vector<2x8x8xf32> to vector<2x8x8xbf16>
    %85 = arith.truncf %62 : vector<2x8x8xf32> to vector<2x8x8xbf16>
    "tpu.trace_start"() <{level = 10 : i32, message = "bqd,bkd->bqk"}> : () -> ()
    %cst_33 = arith.constant dense<0.000000e+00> : vector<2x8x8xf32>
    %86 = tpu.matmul %84, %85, %cst_33 {dimension_numbers = #tpu.dot_dimension_numbers<[2], [2], [1], [1], [0, 0, 0, 1, 1, 1], [0], [0]>} : vector<2x8x8xbf16>, vector<2x8x8xbf16>, vector<2x8x8xf32> -> vector<2x8x8xf32>
    "tpu.trace_stop"() : () -> ()
    %cst_34 = arith.constant 0.353553385 : f32
    %87 = vector.broadcast %cst_34 : f32 to vector<2x8x8xf32>
    %88 = arith.mulf %59, %87 : vector<2x8x8xf32>
    %89 = arith.truncf %88 : vector<2x8x8xf32> to vector<2x8x8xbf16>
    %90 = arith.truncf %63 : vector<2x8x8xf32> to vector<2x8x8xbf16>
    "tpu.trace_start"() <{level = 10 : i32, message = "bqd,bkd->bqk"}> : () -> ()
    %cst_35 = arith.constant dense<0.000000e+00> : vector<2x8x8xf32>
    %91 = tpu.matmul %89, %90, %cst_35 {dimension_numbers = #tpu.dot_dimension_numbers<[2], [2], [1], [1], [0, 0, 0, 1, 1, 1], [0], [0]>} : vector<2x8x8xbf16>, vector<2x8x8xbf16>, vector<2x8x8xf32> -> vector<2x8x8xf32>
    "tpu.trace_stop"() : () -> ()
    %cst_36 = arith.constant 0.353553385 : f32
    %92 = vector.broadcast %cst_36 : f32 to vector<2x8x8xf32>
    %93 = arith.mulf %60, %92 : vector<2x8x8xf32>
    %94 = arith.truncf %93 : vector<2x8x8xf32> to vector<2x8x8xbf16>
    %95 = arith.truncf %64 : vector<2x8x8xf32> to vector<2x8x8xbf16>
    "tpu.trace_start"() <{level = 10 : i32, message = "bqd,bkd->bqk"}> : () -> ()
    %cst_37 = arith.constant dense<0.000000e+00> : vector<2x8x8xf32>
    %96 = tpu.matmul %94, %95, %cst_37 {dimension_numbers = #tpu.dot_dimension_numbers<[2], [2], [1], [1], [0, 0, 0, 1, 1, 1], [0], [0]>} : vector<2x8x8xbf16>, vector<2x8x8xbf16>, vector<2x8x8xf32> -> vector<2x8x8xf32>
    "tpu.trace_stop"() : () -> ()
    %97 = tpu.concatenate %81, %86, %91, %96 in 0 : vector<2x8x8xf32>, vector<2x8x8xf32>, vector<2x8x8xf32>, vector<2x8x8xf32> -> vector<8x8x8xf32>
    %cst_38 = arith.constant dense<0xFF800000> : vector<8x8xf32>
    %98 = vector.multi_reduction <maximumf>, %97, %cst_38 [2] : vector<8x8x8xf32> to vector<8x8xf32>
    %99 = vector.shape_cast %98 : vector<8x8xf32> to vector<8x8x1xf32>
    %100 = vector.broadcast %99 : vector<8x8x1xf32> to vector<8x8x8xf32>
    %101 = arith.subf %97, %100 : vector<8x8x8xf32>
    %102 = math.exp %101 : vector<8x8x8xf32>
    %cst_39 = arith.constant dense<0.000000e+00> : vector<8x8xf32>
    %103 = vector.multi_reduction <add>, %102, %cst_39 [2] : vector<8x8x8xf32> to vector<8x8xf32>
    %104 = vector.shape_cast %103 : vector<8x8xf32> to vector<8x8x1xf32>
    %105 = vector.broadcast %104 : vector<8x8x1xf32> to vector<8x8x8xf32>
    %106 = arith.divf %102, %105 : vector<8x8x8xf32>
    %107 = vector.extract_strided_slice %106 {offsets = [0, 0, 0], sizes = [2, 8, 8], strides = [1, 1, 1]} : vector<8x8x8xf32> to vector<2x8x8xf32>
    %108 = arith.truncf %107 : vector<2x8x8xf32> to vector<2x8x8xbf16>
    %109 = arith.truncf %67 : vector<2x8x8xf32> to vector<2x8x8xbf16>
    "tpu.trace_start"() <{level = 10 : i32, message = "bqk,bkd->bqd"}> : () -> ()
    %cst_40 = arith.constant dense<0.000000e+00> : vector<2x8x8xf32>
    %110 = tpu.matmul %108, %109, %cst_40 {dimension_numbers = #tpu.dot_dimension_numbers<[2], [1], [1], [2], [0, 0, 0, 1, 1, 2], [0], [0]>} : vector<2x8x8xbf16>, vector<2x8x8xbf16>, vector<2x8x8xf32> -> vector<2x8x8xf32>
    "tpu.trace_stop"() : () -> ()
    %111 = vector.extract_strided_slice %106 {offsets = [2, 0, 0], sizes = [2, 8, 8], strides = [1, 1, 1]} : vector<8x8x8xf32> to vector<2x8x8xf32>
    %112 = arith.truncf %111 : vector<2x8x8xf32> to vector<2x8x8xbf16>
    %113 = arith.truncf %70 : vector<2x8x8xf32> to vector<2x8x8xbf16>
    "tpu.trace_start"() <{level = 10 : i32, message = "bqk,bkd->bqd"}> : () -> ()
    %cst_41 = arith.constant dense<0.000000e+00> : vector<2x8x8xf32>
    %114 = tpu.matmul %112, %113, %cst_41 {dimension_numbers = #tpu.dot_dimension_numbers<[2], [1], [1], [2], [0, 0, 0, 1, 1, 2], [0], [0]>} : vector<2x8x8xbf16>, vector<2x8x8xbf16>, vector<2x8x8xf32> -> vector<2x8x8xf32>
    "tpu.trace_stop"() : () -> ()
    %115 = vector.extract_strided_slice %106 {offsets = [4, 0, 0], sizes = [2, 8, 8], strides = [1, 1, 1]} : vector<8x8x8xf32> to vector<2x8x8xf32>
    %116 = arith.truncf %115 : vector<2x8x8xf32> to vector<2x8x8xbf16>
    %117 = arith.truncf %73 : vector<2x8x8xf32> to vector<2x8x8xbf16>
    "tpu.trace_start"() <{level = 10 : i32, message = "bqk,bkd->bqd"}> : () -> ()
    %cst_42 = arith.constant dense<0.000000e+00> : vector<2x8x8xf32>
    %118 = tpu.matmul %116, %117, %cst_42 {dimension_numbers = #tpu.dot_dimension_numbers<[2], [1], [1], [2], [0, 0, 0, 1, 1, 2], [0], [0]>} : vector<2x8x8xbf16>, vector<2x8x8xbf16>, vector<2x8x8xf32> -> vector<2x8x8xf32>
    "tpu.trace_stop"() : () -> ()
    %119 = vector.extract_strided_slice %106 {offsets = [6, 0, 0], sizes = [2, 8, 8], strides = [1, 1, 1]} : vector<8x8x8xf32> to vector<2x8x8xf32>
    %120 = arith.truncf %119 : vector<2x8x8xf32> to vector<2x8x8xbf16>
    %121 = arith.truncf %76 : vector<2x8x8xf32> to vector<2x8x8xbf16>
    "tpu.trace_start"() <{level = 10 : i32, message = "bqk,bkd->bqd"}> : () -> ()
    %cst_43 = arith.constant dense<0.000000e+00> : vector<2x8x8xf32>
    %122 = tpu.matmul %120, %121, %cst_43 {dimension_numbers = #tpu.dot_dimension_numbers<[2], [1], [1], [2], [0, 0, 0, 1, 1, 2], [0], [0]>} : vector<2x8x8xbf16>, vector<2x8x8xbf16>, vector<2x8x8xf32> -> vector<2x8x8xf32>
    "tpu.trace_stop"() : () -> ()
    %123 = tpu.concatenate %110, %114, %118, %122 in 2 : vector<2x8x8xf32>, vector<2x8x8xf32>, vector<2x8x8xf32>, vector<2x8x8xf32> -> vector<2x8x32xf32>
    %124 = vector.shape_cast %123 : vector<2x8x32xf32> to vector<16x32xf32>
    %125 = arith.truncf %124 : vector<16x32xf32> to vector<16x32xbf16>
    %126 = vector.extract_strided_slice %48 {offsets = [1, 0, 0], sizes = [1, 32, 32], strides = [1, 1, 1]} : vector<3x32x32xbf16> to vector<1x32x32xbf16>
    %127 = vector.shape_cast %126 : vector<1x32x32xbf16> to vector<32x32xbf16>
    %cst_44 = arith.constant dense<0.000000e+00> : vector<16x32xf32>
    %128 = tpu.matmul %125, %127, %cst_44 {dimension_numbers = #tpu.dot_dimension_numbers<[1], [0], [0], [1], [0, 0, 1, 1], [], []>} : vector<16x32xbf16>, vector<32x32xbf16>, vector<16x32xf32> -> vector<16x32xf32>
    %129 = vector.broadcast %37 : vector<1x32xf32> to vector<16x32xf32>
    %130 = arith.addf %128, %129 : vector<16x32xf32>
    %131 = arith.addf %1, %130 : vector<16x32xf32>
    %cst_45 = arith.constant dense<0.000000e+00> : vector<16xf32>
    %132 = vector.multi_reduction <add>, %131, %cst_45 [1] : vector<16x32xf32> to vector<16xf32>
    %133 = vector.shape_cast %132 : vector<16xf32> to vector<16x1xf32>
    %cst_46 = arith.constant 3.200000e+01 : f32
    %134 = vector.broadcast %cst_46 : f32 to vector<16x1xf32>
    %135 = arith.divf %133, %134 : vector<16x1xf32>
    %136 = vector.broadcast %135 : vector<16x1xf32> to vector<16x32xf32>
    %137 = arith.subf %131, %136 : vector<16x32xf32>
    %138 = arith.mulf %137, %137 : vector<16x32xf32>
    %cst_47 = arith.constant dense<0.000000e+00> : vector<16xf32>
    %139 = vector.multi_reduction <add>, %138, %cst_47 [1] : vector<16x32xf32> to vector<16xf32>
    %140 = vector.shape_cast %139 : vector<16xf32> to vector<16x1xf32>
    %cst_48 = arith.constant 3.200000e+01 : f32
    %141 = vector.broadcast %cst_48 : f32 to vector<16x1xf32>
    %142 = arith.divf %140, %141 : vector<16x1xf32>
    %143 = vector.broadcast %135 : vector<16x1xf32> to vector<16x32xf32>
    %144 = arith.subf %131, %143 : vector<16x32xf32>
    %cst_49 = arith.constant 9.99999974E-6 : f32
    %145 = vector.broadcast %cst_49 : f32 to vector<16x1xf32>
    %146 = arith.addf %142, %145 : vector<16x1xf32>
    %147 = math.rsqrt %146 : vector<16x1xf32>
    %148 = vector.broadcast %147 : vector<16x1xf32> to vector<16x32xf32>
    %149 = arith.mulf %144, %148 : vector<16x32xf32>
    %150 = vector.broadcast %41 : vector<1x32xf32> to vector<16x32xf32>
    %151 = arith.mulf %149, %150 : vector<16x32xf32>
    %152 = vector.broadcast %44 : vector<1x32xf32> to vector<16x32xf32>
    %153 = arith.addf %151, %152 : vector<16x32xf32>
    %154 = arith.addf %153, %3 : vector<16x32xf32>
    %155 = arith.truncf %154 : vector<16x32xf32> to vector<16x32xbf16>
    %156 = vector.extract_strided_slice %48 {offsets = [0, 0, 0], sizes = [1, 32, 32], strides = [1, 1, 1]} : vector<3x32x32xbf16> to vector<1x32x32xbf16>
    %157 = vector.shape_cast %156 : vector<1x32x32xbf16> to vector<32x32xbf16>
    %cst_50 = arith.constant dense<0.000000e+00> : vector<16x32xf32>
    %158 = tpu.matmul %155, %157, %cst_50 {dimension_numbers = #tpu.dot_dimension_numbers<[1], [0], [0], [1], [0, 0, 1, 1], [], []>} : vector<16x32xbf16>, vector<32x32xbf16>, vector<16x32xf32> -> vector<16x32xf32>
    %159 = vector.broadcast %36 : vector<1x32xf32> to vector<16x32xf32>
    %160 = arith.addf %158, %159 : vector<16x32xf32>
    %161 = vector.shape_cast %160 : vector<16x32xf32> to vector<2x8x32xf32>
    %162 = vector.extract_strided_slice %161 {offsets = [0, 0, 0], sizes = [2, 8, 8], strides = [1, 1, 1]} : vector<2x8x32xf32> to vector<2x8x8xf32>
    %163 = vector.extract_strided_slice %161 {offsets = [0, 0, 8], sizes = [2, 8, 8], strides = [1, 1, 1]} : vector<2x8x32xf32> to vector<2x8x8xf32>
    %164 = vector.extract_strided_slice %161 {offsets = [0, 0, 16], sizes = [2, 8, 8], strides = [1, 1, 1]} : vector<2x8x32xf32> to vector<2x8x8xf32>
    %165 = vector.extract_strided_slice %161 {offsets = [0, 0, 24], sizes = [2, 8, 8], strides = [1, 1, 1]} : vector<2x8x32xf32> to vector<2x8x8xf32>
    %166 = vector.extract_strided_slice %20 {offsets = [0, 0, 0], sizes = [2, 16, 8], strides = [1, 1, 1]} : vector<2x16x64xf32> to vector<2x16x8xf32>
    %167 = vector.extract_strided_slice %20 {offsets = [0, 0, 8], sizes = [2, 16, 8], strides = [1, 1, 1]} : vector<2x16x64xf32> to vector<2x16x8xf32>
    %168 = vector.extract_strided_slice %20 {offsets = [0, 0, 16], sizes = [2, 16, 8], strides = [1, 1, 1]} : vector<2x16x64xf32> to vector<2x16x8xf32>
    %169 = vector.extract_strided_slice %20 {offsets = [0, 0, 24], sizes = [2, 16, 8], strides = [1, 1, 1]} : vector<2x16x64xf32> to vector<2x16x8xf32>
    %170 = vector.extract_strided_slice %27 {offsets = [0, 0, 0], sizes = [2, 16, 8], strides = [1, 1, 1]} : vector<2x16x64xf32> to vector<2x16x8xf32>
    %171 = vector.extract_strided_slice %27 {offsets = [0, 0, 8], sizes = [2, 16, 8], strides = [1, 1, 1]} : vector<2x16x64xf32> to vector<2x16x8xf32>
    %172 = vector.extract_strided_slice %27 {offsets = [0, 0, 16], sizes = [2, 16, 8], strides = [1, 1, 1]} : vector<2x16x64xf32> to vector<2x16x8xf32>
    %173 = vector.extract_strided_slice %27 {offsets = [0, 0, 24], sizes = [2, 16, 8], strides = [1, 1, 1]} : vector<2x16x64xf32> to vector<2x16x8xf32>
    %cst_51 = arith.constant 0.353553385 : f32
    %174 = vector.broadcast %cst_51 : f32 to vector<2x8x8xf32>
    %175 = arith.mulf %162, %174 : vector<2x8x8xf32>
    %176 = arith.truncf %175 : vector<2x8x8xf32> to vector<2x8x8xbf16>
    %177 = arith.truncf %166 : vector<2x16x8xf32> to vector<2x16x8xbf16>
    "tpu.trace_start"() <{level = 10 : i32, message = "bqd,bkd->bqk"}> : () -> ()
    %cst_52 = arith.constant dense<0.000000e+00> : vector<2x8x16xf32>
    %178 = tpu.matmul %176, %177, %cst_52 {dimension_numbers = #tpu.dot_dimension_numbers<[2], [2], [1], [1], [0, 0, 0, 1, 1, 1], [0], [0]>} : vector<2x8x8xbf16>, vector<2x16x8xbf16>, vector<2x8x16xf32> -> vector<2x8x16xf32>
    "tpu.trace_stop"() : () -> ()
    %cst_53 = arith.constant 0.353553385 : f32
    %179 = vector.broadcast %cst_53 : f32 to vector<2x8x8xf32>
    %180 = arith.mulf %163, %179 : vector<2x8x8xf32>
    %181 = arith.truncf %180 : vector<2x8x8xf32> to vector<2x8x8xbf16>
    %182 = arith.truncf %167 : vector<2x16x8xf32> to vector<2x16x8xbf16>
    "tpu.trace_start"() <{level = 10 : i32, message = "bqd,bkd->bqk"}> : () -> ()
    %cst_54 = arith.constant dense<0.000000e+00> : vector<2x8x16xf32>
    %183 = tpu.matmul %181, %182, %cst_54 {dimension_numbers = #tpu.dot_dimension_numbers<[2], [2], [1], [1], [0, 0, 0, 1, 1, 1], [0], [0]>} : vector<2x8x8xbf16>, vector<2x16x8xbf16>, vector<2x8x16xf32> -> vector<2x8x16xf32>
    "tpu.trace_stop"() : () -> ()
    %cst_55 = arith.constant 0.353553385 : f32
    %184 = vector.broadcast %cst_55 : f32 to vector<2x8x8xf32>
    %185 = arith.mulf %164, %184 : vector<2x8x8xf32>
    %186 = arith.truncf %185 : vector<2x8x8xf32> to vector<2x8x8xbf16>
    %187 = arith.truncf %168 : vector<2x16x8xf32> to vector<2x16x8xbf16>
    "tpu.trace_start"() <{level = 10 : i32, message = "bqd,bkd->bqk"}> : () -> ()
    %cst_56 = arith.constant dense<0.000000e+00> : vector<2x8x16xf32>
    %188 = tpu.matmul %186, %187, %cst_56 {dimension_numbers = #tpu.dot_dimension_numbers<[2], [2], [1], [1], [0, 0, 0, 1, 1, 1], [0], [0]>} : vector<2x8x8xbf16>, vector<2x16x8xbf16>, vector<2x8x16xf32> -> vector<2x8x16xf32>
    "tpu.trace_stop"() : () -> ()
    %cst_57 = arith.constant 0.353553385 : f32
    %189 = vector.broadcast %cst_57 : f32 to vector<2x8x8xf32>
    %190 = arith.mulf %165, %189 : vector<2x8x8xf32>
    %191 = arith.truncf %190 : vector<2x8x8xf32> to vector<2x8x8xbf16>
    %192 = arith.truncf %169 : vector<2x16x8xf32> to vector<2x16x8xbf16>
    "tpu.trace_start"() <{level = 10 : i32, message = "bqd,bkd->bqk"}> : () -> ()
    %cst_58 = arith.constant dense<0.000000e+00> : vector<2x8x16xf32>
    %193 = tpu.matmul %191, %192, %cst_58 {dimension_numbers = #tpu.dot_dimension_numbers<[2], [2], [1], [1], [0, 0, 0, 1, 1, 1], [0], [0]>} : vector<2x8x8xbf16>, vector<2x16x8xbf16>, vector<2x8x16xf32> -> vector<2x8x16xf32>
    "tpu.trace_stop"() : () -> ()
    %194 = tpu.concatenate %178, %183, %188, %193 in 0 : vector<2x8x16xf32>, vector<2x8x16xf32>, vector<2x8x16xf32>, vector<2x8x16xf32> -> vector<8x8x16xf32>
    %cst_59 = arith.constant dense<0xFF800000> : vector<8x8xf32>
    %195 = vector.multi_reduction <maximumf>, %194, %cst_59 [2] : vector<8x8x16xf32> to vector<8x8xf32>
    %196 = vector.shape_cast %195 : vector<8x8xf32> to vector<8x8x1xf32>
    %197 = vector.broadcast %196 : vector<8x8x1xf32> to vector<8x8x16xf32>
    %198 = arith.subf %194, %197 : vector<8x8x16xf32>
    %199 = math.exp %198 : vector<8x8x16xf32>
    %cst_60 = arith.constant dense<0.000000e+00> : vector<8x8xf32>
    %200 = vector.multi_reduction <add>, %199, %cst_60 [2] : vector<8x8x16xf32> to vector<8x8xf32>
    %201 = vector.shape_cast %200 : vector<8x8xf32> to vector<8x8x1xf32>
    %202 = vector.broadcast %201 : vector<8x8x1xf32> to vector<8x8x16xf32>
    %203 = arith.divf %199, %202 : vector<8x8x16xf32>
    %204 = vector.extract_strided_slice %203 {offsets = [0, 0, 0], sizes = [2, 8, 16], strides = [1, 1, 1]} : vector<8x8x16xf32> to vector<2x8x16xf32>
    %205 = arith.truncf %204 : vector<2x8x16xf32> to vector<2x8x16xbf16>
    %206 = arith.truncf %170 : vector<2x16x8xf32> to vector<2x16x8xbf16>
    "tpu.trace_start"() <{level = 10 : i32, message = "bqk,bkd->bqd"}> : () -> ()
    %cst_61 = arith.constant dense<0.000000e+00> : vector<2x8x8xf32>
    %207 = tpu.matmul %205, %206, %cst_61 {dimension_numbers = #tpu.dot_dimension_numbers<[2], [1], [1], [2], [0, 0, 0, 1, 1, 2], [0], [0]>} : vector<2x8x16xbf16>, vector<2x16x8xbf16>, vector<2x8x8xf32> -> vector<2x8x8xf32>
    "tpu.trace_stop"() : () -> ()
    %208 = vector.extract_strided_slice %203 {offsets = [2, 0, 0], sizes = [2, 8, 16], strides = [1, 1, 1]} : vector<8x8x16xf32> to vector<2x8x16xf32>
    %209 = arith.truncf %208 : vector<2x8x16xf32> to vector<2x8x16xbf16>
    %210 = arith.truncf %171 : vector<2x16x8xf32> to vector<2x16x8xbf16>
    "tpu.trace_start"() <{level = 10 : i32, message = "bqk,bkd->bqd"}> : () -> ()
    %cst_62 = arith.constant dense<0.000000e+00> : vector<2x8x8xf32>
    %211 = tpu.matmul %209, %210, %cst_62 {dimension_numbers = #tpu.dot_dimension_numbers<[2], [1], [1], [2], [0, 0, 0, 1, 1, 2], [0], [0]>} : vector<2x8x16xbf16>, vector<2x16x8xbf16>, vector<2x8x8xf32> -> vector<2x8x8xf32>
    "tpu.trace_stop"() : () -> ()
    %212 = vector.extract_strided_slice %203 {offsets = [4, 0, 0], sizes = [2, 8, 16], strides = [1, 1, 1]} : vector<8x8x16xf32> to vector<2x8x16xf32>
    %213 = arith.truncf %212 : vector<2x8x16xf32> to vector<2x8x16xbf16>
    %214 = arith.truncf %172 : vector<2x16x8xf32> to vector<2x16x8xbf16>
    "tpu.trace_start"() <{level = 10 : i32, message = "bqk,bkd->bqd"}> : () -> ()
    %cst_63 = arith.constant dense<0.000000e+00> : vector<2x8x8xf32>
    %215 = tpu.matmul %213, %214, %cst_63 {dimension_numbers = #tpu.dot_dimension_numbers<[2], [1], [1], [2], [0, 0, 0, 1, 1, 2], [0], [0]>} : vector<2x8x16xbf16>, vector<2x16x8xbf16>, vector<2x8x8xf32> -> vector<2x8x8xf32>
    "tpu.trace_stop"() : () -> ()
    %216 = vector.extract_strided_slice %203 {offsets = [6, 0, 0], sizes = [2, 8, 16], strides = [1, 1, 1]} : vector<8x8x16xf32> to vector<2x8x16xf32>
    %217 = arith.truncf %216 : vector<2x8x16xf32> to vector<2x8x16xbf16>
    %218 = arith.truncf %173 : vector<2x16x8xf32> to vector<2x16x8xbf16>
    "tpu.trace_start"() <{level = 10 : i32, message = "bqk,bkd->bqd"}> : () -> ()
    %cst_64 = arith.constant dense<0.000000e+00> : vector<2x8x8xf32>
    %219 = tpu.matmul %217, %218, %cst_64 {dimension_numbers = #tpu.dot_dimension_numbers<[2], [1], [1], [2], [0, 0, 0, 1, 1, 2], [0], [0]>} : vector<2x8x16xbf16>, vector<2x16x8xbf16>, vector<2x8x8xf32> -> vector<2x8x8xf32>
    "tpu.trace_stop"() : () -> ()
    %220 = tpu.concatenate %207, %211, %215, %219 in 2 : vector<2x8x8xf32>, vector<2x8x8xf32>, vector<2x8x8xf32>, vector<2x8x8xf32> -> vector<2x8x32xf32>
    %221 = vector.shape_cast %220 : vector<2x8x32xf32> to vector<16x32xf32>
    %222 = arith.truncf %221 : vector<16x32xf32> to vector<16x32xbf16>
    %223 = vector.extract_strided_slice %48 {offsets = [2, 0, 0], sizes = [1, 32, 32], strides = [1, 1, 1]} : vector<3x32x32xbf16> to vector<1x32x32xbf16>
    %224 = vector.shape_cast %223 : vector<1x32x32xbf16> to vector<32x32xbf16>
    %cst_65 = arith.constant dense<0.000000e+00> : vector<16x32xf32>
    %225 = tpu.matmul %222, %224, %cst_65 {dimension_numbers = #tpu.dot_dimension_numbers<[1], [0], [0], [1], [0, 0, 1, 1], [], []>} : vector<16x32xbf16>, vector<32x32xbf16>, vector<16x32xf32> -> vector<16x32xf32>
    %226 = vector.broadcast %38 : vector<1x32xf32> to vector<16x32xf32>
    %227 = arith.addf %225, %226 : vector<16x32xf32>
    %228 = arith.addf %153, %227 : vector<16x32xf32>
    %cst_66 = arith.constant dense<0.000000e+00> : vector<16xf32>
    %229 = vector.multi_reduction <add>, %228, %cst_66 [1] : vector<16x32xf32> to vector<16xf32>
    %230 = vector.shape_cast %229 : vector<16xf32> to vector<16x1xf32>
    %cst_67 = arith.constant 3.200000e+01 : f32
    %231 = vector.broadcast %cst_67 : f32 to vector<16x1xf32>
    %232 = arith.divf %230, %231 : vector<16x1xf32>
    %233 = vector.broadcast %232 : vector<16x1xf32> to vector<16x32xf32>
    %234 = arith.subf %228, %233 : vector<16x32xf32>
    %235 = arith.mulf %234, %234 : vector<16x32xf32>
    %cst_68 = arith.constant dense<0.000000e+00> : vector<16xf32>
    %236 = vector.multi_reduction <add>, %235, %cst_68 [1] : vector<16x32xf32> to vector<16xf32>
    %237 = vector.shape_cast %236 : vector<16xf32> to vector<16x1xf32>
    %cst_69 = arith.constant 3.200000e+01 : f32
    %238 = vector.broadcast %cst_69 : f32 to vector<16x1xf32>
    %239 = arith.divf %237, %238 : vector<16x1xf32>
    %240 = vector.broadcast %232 : vector<16x1xf32> to vector<16x32xf32>
    %241 = arith.subf %228, %240 : vector<16x32xf32>
    %cst_70 = arith.constant 9.99999974E-6 : f32
    %242 = vector.broadcast %cst_70 : f32 to vector<16x1xf32>
    %243 = arith.addf %239, %242 : vector<16x1xf32>
    %244 = math.rsqrt %243 : vector<16x1xf32>
    %245 = vector.broadcast %244 : vector<16x1xf32> to vector<16x32xf32>
    %246 = arith.mulf %241, %245 : vector<16x32xf32>
    %247 = vector.broadcast %42 : vector<1x32xf32> to vector<16x32xf32>
    %248 = arith.mulf %246, %247 : vector<16x32xf32>
    %249 = vector.broadcast %45 : vector<1x32xf32> to vector<16x32xf32>
    %250 = arith.addf %248, %249 : vector<16x32xf32>
    %251 = arith.truncf %250 : vector<16x32xf32> to vector<16x32xbf16>
    %c0_71 = arith.constant 0 : index
    %c0_72 = arith.constant 0 : index
    %c0_73 = arith.constant 0 : index
    %252 = vector.load %arg6[%c0_71, %c0_72, %c0_73] : memref<2x32x64xbf16, #tpu.memory_space<vmem>>, vector<1x32x64xbf16>
    %253 = vector.shape_cast %252 : vector<1x32x64xbf16> to vector<32x64xbf16>
    %cst_74 = arith.constant dense<0.000000e+00> : vector<16x64xf32>
    %254 = tpu.matmul %251, %253, %cst_74 {dimension_numbers = #tpu.dot_dimension_numbers<[1], [0], [0], [1], [0, 0, 1, 1], [], []>} : vector<16x32xbf16>, vector<32x64xbf16>, vector<16x64xf32> -> vector<16x64xf32>
    %255 = vector.broadcast %39 : vector<1x64xf32> to vector<16x64xf32>
    %256 = arith.addf %254, %255 : vector<16x64xf32>
    %cst_75 = arith.constant 0.000000e+00 : f32
    %257 = vector.broadcast %cst_75 : f32 to vector<16x64xf32>
    %258 = arith.maximumf %256, %257 : vector<16x64xf32>
    %259 = arith.truncf %258 : vector<16x64xf32> to vector<16x64xbf16>
    %c0_76 = arith.constant 0 : index
    %c0_77 = arith.constant 0 : index
    %c0_78 = arith.constant 0 : index
    %260 = vector.load %arg7[%c0_76, %c0_77, %c0_78] : memref<2x64x32xbf16, #tpu.memory_space<vmem>>, vector<1x64x32xbf16>
    %261 = vector.shape_cast %260 : vector<1x64x32xbf16> to vector<64x32xbf16>
    %cst_79 = arith.constant dense<0.000000e+00> : vector<16x32xf32>
    %262 = tpu.matmul %259, %261, %cst_79 {dimension_numbers = #tpu.dot_dimension_numbers<[1], [0], [0], [1], [0, 0, 1, 1], [], []>} : vector<16x64xbf16>, vector<64x32xbf16>, vector<16x32xf32> -> vector<16x32xf32>
    %263 = vector.broadcast %40 : vector<1x32xf32> to vector<16x32xf32>
    %264 = arith.addf %262, %263 : vector<16x32xf32>
    %265 = arith.addf %250, %264 : vector<16x32xf32>
    %cst_80 = arith.constant dense<0.000000e+00> : vector<16xf32>
    %266 = vector.multi_reduction <add>, %265, %cst_80 [1] : vector<16x32xf32> to vector<16xf32>
    %267 = vector.shape_cast %266 : vector<16xf32> to vector<16x1xf32>
    %cst_81 = arith.constant 3.200000e+01 : f32
    %268 = vector.broadcast %cst_81 : f32 to vector<16x1xf32>
    %269 = arith.divf %267, %268 : vector<16x1xf32>
    %270 = vector.broadcast %269 : vector<16x1xf32> to vector<16x32xf32>
    %271 = arith.subf %265, %270 : vector<16x32xf32>
    %272 = arith.mulf %271, %271 : vector<16x32xf32>
    %cst_82 = arith.constant dense<0.000000e+00> : vector<16xf32>
    %273 = vector.multi_reduction <add>, %272, %cst_82 [1] : vector<16x32xf32> to vector<16xf32>
    %274 = vector.shape_cast %273 : vector<16xf32> to vector<16x1xf32>
    %cst_83 = arith.constant 3.200000e+01 : f32
    %275 = vector.broadcast %cst_83 : f32 to vector<16x1xf32>
    %276 = arith.divf %274, %275 : vector<16x1xf32>
    %277 = vector.broadcast %269 : vector<16x1xf32> to vector<16x32xf32>
    %278 = arith.subf %265, %277 : vector<16x32xf32>
    %cst_84 = arith.constant 9.99999974E-6 : f32
    %279 = vector.broadcast %cst_84 : f32 to vector<16x1xf32>
    %280 = arith.addf %276, %279 : vector<16x1xf32>
    %281 = math.rsqrt %280 : vector<16x1xf32>
    %282 = vector.broadcast %281 : vector<16x1xf32> to vector<16x32xf32>
    %283 = arith.mulf %278, %282 : vector<16x32xf32>
    %284 = vector.broadcast %43 : vector<1x32xf32> to vector<16x32xf32>
    %285 = arith.mulf %283, %284 : vector<16x32xf32>
    %286 = vector.broadcast %46 : vector<1x32xf32> to vector<16x32xf32>
    %287 = arith.addf %285, %286 : vector<16x32xf32>
    %cst_85 = arith.constant dense<0.000000e+00> : vector<16xf32>
    %288 = vector.multi_reduction <add>, %287, %cst_85 [1] : vector<16x32xf32> to vector<16xf32>
    %289 = vector.shape_cast %288 : vector<16xf32> to vector<16x1xf32>
    %cst_86 = arith.constant 3.200000e+01 : f32
    %290 = vector.broadcast %cst_86 : f32 to vector<16x1xf32>
    %291 = arith.divf %289, %290 : vector<16x1xf32>
    %292 = vector.broadcast %291 : vector<16x1xf32> to vector<16x32xf32>
    %293 = arith.subf %287, %292 : vector<16x32xf32>
    %294 = arith.mulf %293, %293 : vector<16x32xf32>
    %cst_87 = arith.constant dense<0.000000e+00> : vector<16xf32>
    %295 = vector.multi_reduction <add>, %294, %cst_87 [1] : vector<16x32xf32> to vector<16xf32>
    %296 = vector.shape_cast %295 : vector<16xf32> to vector<16x1xf32>
    %cst_88 = arith.constant 3.200000e+01 : f32
    %297 = vector.broadcast %cst_88 : f32 to vector<16x1xf32>
    %298 = arith.divf %296, %297 : vector<16x1xf32>
    %299 = vector.broadcast %291 : vector<16x1xf32> to vector<16x32xf32>
    %300 = arith.subf %287, %299 : vector<16x32xf32>
    %cst_89 = arith.constant 9.99999974E-6 : f32
    %301 = vector.broadcast %cst_89 : f32 to vector<16x1xf32>
    %302 = arith.addf %298, %301 : vector<16x1xf32>
    %303 = math.rsqrt %302 : vector<16x1xf32>
    %304 = vector.broadcast %303 : vector<16x1xf32> to vector<16x32xf32>
    %305 = arith.mulf %300, %304 : vector<16x32xf32>
    %306 = vector.broadcast %31 : vector<1x32xf32> to vector<16x32xf32>
    %307 = arith.mulf %305, %306 : vector<16x32xf32>
    %308 = vector.broadcast %32 : vector<1x32xf32> to vector<16x32xf32>
    %309 = arith.addf %307, %308 : vector<16x32xf32>
    %c1_90 = arith.constant 1 : index
    %c0_91 = arith.constant 0 : index
    %c0_92 = arith.constant 0 : index
    %310 = vector.load %arg9[%c1_90, %c0_91, %c0_92] : memref<2x5x96xf32, #tpu.memory_space<vmem>>, vector<1x5x96xf32>
    %311 = vector.shape_cast %310 : vector<1x5x96xf32> to vector<5x96xf32>
    %312 = vector.extract_strided_slice %311 {offsets = [0, 0], sizes = [1, 96], strides = [1, 1]} : vector<5x96xf32> to vector<1x96xf32>
    %313 = vector.extract_strided_slice %311 {offsets = [1, 0], sizes = [1, 32], strides = [1, 1]} : vector<5x96xf32> to vector<1x32xf32>
    %314 = vector.extract_strided_slice %311 {offsets = [1, 32], sizes = [1, 32], strides = [1, 1]} : vector<5x96xf32> to vector<1x32xf32>
    %315 = vector.extract_strided_slice %311 {offsets = [1, 64], sizes = [1, 32], strides = [1, 1]} : vector<5x96xf32> to vector<1x32xf32>
    %316 = vector.extract_strided_slice %311 {offsets = [2, 0], sizes = [1, 64], strides = [1, 1]} : vector<5x96xf32> to vector<1x64xf32>
    %317 = vector.extract_strided_slice %311 {offsets = [2, 64], sizes = [1, 32], strides = [1, 1]} : vector<5x96xf32> to vector<1x32xf32>
    %318 = vector.extract_strided_slice %311 {offsets = [3, 0], sizes = [1, 32], strides = [1, 1]} : vector<5x96xf32> to vector<1x32xf32>
    %319 = vector.extract_strided_slice %311 {offsets = [3, 32], sizes = [1, 32], strides = [1, 1]} : vector<5x96xf32> to vector<1x32xf32>
    %320 = vector.extract_strided_slice %311 {offsets = [3, 64], sizes = [1, 32], strides = [1, 1]} : vector<5x96xf32> to vector<1x32xf32>
    %321 = vector.extract_strided_slice %311 {offsets = [4, 0], sizes = [1, 32], strides = [1, 1]} : vector<5x96xf32> to vector<1x32xf32>
    %322 = vector.extract_strided_slice %311 {offsets = [4, 32], sizes = [1, 32], strides = [1, 1]} : vector<5x96xf32> to vector<1x32xf32>
    %323 = vector.extract_strided_slice %311 {offsets = [4, 64], sizes = [1, 32], strides = [1, 1]} : vector<5x96xf32> to vector<1x32xf32>
    %c1_93 = arith.constant 1 : index
    %c0_94 = arith.constant 0 : index
    %c0_95 = arith.constant 0 : index
    %c0_96 = arith.constant 0 : index
    %324 = vector.load %arg5[%c1_93, %c0_94, %c0_95, %c0_96] : memref<2x3x32x32xbf16, #tpu.memory_space<vmem>>, vector<1x3x32x32xbf16>
    %325 = vector.shape_cast %324 : vector<1x3x32x32xbf16> to vector<3x32x32xbf16>
    %326 = arith.addf %287, %3 : vector<16x32xf32>
    %327 = arith.truncf %326 : vector<16x32xf32> to vector<16x32xbf16>
    %c1_97 = arith.constant 1 : index
    %c0_98 = arith.constant 0 : index
    %c0_99 = arith.constant 0 : index
    %328 = vector.load %arg4[%c1_97, %c0_98, %c0_99] : memref<2x32x96xbf16, #tpu.memory_space<vmem>>, vector<1x32x96xbf16>
    %329 = vector.shape_cast %328 : vector<1x32x96xbf16> to vector<32x96xbf16>
    %cst_100 = arith.constant dense<0.000000e+00> : vector<16x96xf32>
    %330 = tpu.matmul %327, %329, %cst_100 {dimension_numbers = #tpu.dot_dimension_numbers<[1], [0], [0], [1], [0, 0, 1, 1], [], []>} : vector<16x32xbf16>, vector<32x96xbf16>, vector<16x96xf32> -> vector<16x96xf32>
    %331 = vector.broadcast %312 : vector<1x96xf32> to vector<16x96xf32>
    %332 = arith.addf %330, %331 : vector<16x96xf32>
    %333 = vector.shape_cast %332 : vector<16x96xf32> to vector<2x8x96xf32>
    %334 = vector.extract_strided_slice %333 {offsets = [0, 0, 0], sizes = [2, 8, 8], strides = [1, 1, 1]} : vector<2x8x96xf32> to vector<2x8x8xf32>
    %335 = vector.extract_strided_slice %333 {offsets = [0, 0, 8], sizes = [2, 8, 8], strides = [1, 1, 1]} : vector<2x8x96xf32> to vector<2x8x8xf32>
    %336 = vector.extract_strided_slice %333 {offsets = [0, 0, 16], sizes = [2, 8, 8], strides = [1, 1, 1]} : vector<2x8x96xf32> to vector<2x8x8xf32>
    %337 = vector.extract_strided_slice %333 {offsets = [0, 0, 24], sizes = [2, 8, 8], strides = [1, 1, 1]} : vector<2x8x96xf32> to vector<2x8x8xf32>
    %338 = vector.extract_strided_slice %333 {offsets = [0, 0, 32], sizes = [2, 8, 8], strides = [1, 1, 1]} : vector<2x8x96xf32> to vector<2x8x8xf32>
    %339 = vector.extract_strided_slice %333 {offsets = [0, 0, 40], sizes = [2, 8, 8], strides = [1, 1, 1]} : vector<2x8x96xf32> to vector<2x8x8xf32>
    %340 = vector.extract_strided_slice %333 {offsets = [0, 0, 48], sizes = [2, 8, 8], strides = [1, 1, 1]} : vector<2x8x96xf32> to vector<2x8x8xf32>
    %341 = vector.extract_strided_slice %333 {offsets = [0, 0, 56], sizes = [2, 8, 8], strides = [1, 1, 1]} : vector<2x8x96xf32> to vector<2x8x8xf32>
    %342 = vector.extract_strided_slice %333 {offsets = [0, 0, 64], sizes = [2, 8, 8], strides = [1, 1, 1]} : vector<2x8x96xf32> to vector<2x8x8xf32>
    %343 = vector.extract_strided_slice %30 {offsets = [0, 0, 32], sizes = [2, 8, 8], strides = [1, 1, 1]} : vector<2x8x64xf32> to vector<2x8x8xf32>
    %344 = arith.subf %342, %343 : vector<2x8x8xf32>
    %345 = vector.extract_strided_slice %333 {offsets = [0, 0, 72], sizes = [2, 8, 8], strides = [1, 1, 1]} : vector<2x8x96xf32> to vector<2x8x8xf32>
    %346 = vector.extract_strided_slice %30 {offsets = [0, 0, 40], sizes = [2, 8, 8], strides = [1, 1, 1]} : vector<2x8x64xf32> to vector<2x8x8xf32>
    %347 = arith.subf %345, %346 : vector<2x8x8xf32>
    %348 = vector.extract_strided_slice %333 {offsets = [0, 0, 80], sizes = [2, 8, 8], strides = [1, 1, 1]} : vector<2x8x96xf32> to vector<2x8x8xf32>
    %349 = vector.extract_strided_slice %30 {offsets = [0, 0, 48], sizes = [2, 8, 8], strides = [1, 1, 1]} : vector<2x8x64xf32> to vector<2x8x8xf32>
    %350 = arith.subf %348, %349 : vector<2x8x8xf32>
    %351 = vector.extract_strided_slice %333 {offsets = [0, 0, 88], sizes = [2, 8, 8], strides = [1, 1, 1]} : vector<2x8x96xf32> to vector<2x8x8xf32>
    %352 = vector.extract_strided_slice %30 {offsets = [0, 0, 56], sizes = [2, 8, 8], strides = [1, 1, 1]} : vector<2x8x64xf32> to vector<2x8x8xf32>
    %353 = arith.subf %351, %352 : vector<2x8x8xf32>
    %cst_101 = arith.constant 0.353553385 : f32
    %354 = vector.broadcast %cst_101 : f32 to vector<2x8x8xf32>
    %355 = arith.mulf %334, %354 : vector<2x8x8xf32>
    %356 = arith.truncf %355 : vector<2x8x8xf32> to vector<2x8x8xbf16>
    %357 = arith.truncf %338 : vector<2x8x8xf32> to vector<2x8x8xbf16>
    "tpu.trace_start"() <{level = 10 : i32, message = "bqd,bkd->bqk"}> : () -> ()
    %cst_102 = arith.constant dense<0.000000e+00> : vector<2x8x8xf32>
    %358 = tpu.matmul %356, %357, %cst_102 {dimension_numbers = #tpu.dot_dimension_numbers<[2], [2], [1], [1], [0, 0, 0, 1, 1, 1], [0], [0]>} : vector<2x8x8xbf16>, vector<2x8x8xbf16>, vector<2x8x8xf32> -> vector<2x8x8xf32>
    "tpu.trace_stop"() : () -> ()
    %cst_103 = arith.constant 0.353553385 : f32
    %359 = vector.broadcast %cst_103 : f32 to vector<2x8x8xf32>
    %360 = arith.mulf %335, %359 : vector<2x8x8xf32>
    %361 = arith.truncf %360 : vector<2x8x8xf32> to vector<2x8x8xbf16>
    %362 = arith.truncf %339 : vector<2x8x8xf32> to vector<2x8x8xbf16>
    "tpu.trace_start"() <{level = 10 : i32, message = "bqd,bkd->bqk"}> : () -> ()
    %cst_104 = arith.constant dense<0.000000e+00> : vector<2x8x8xf32>
    %363 = tpu.matmul %361, %362, %cst_104 {dimension_numbers = #tpu.dot_dimension_numbers<[2], [2], [1], [1], [0, 0, 0, 1, 1, 1], [0], [0]>} : vector<2x8x8xbf16>, vector<2x8x8xbf16>, vector<2x8x8xf32> -> vector<2x8x8xf32>
    "tpu.trace_stop"() : () -> ()
    %cst_105 = arith.constant 0.353553385 : f32
    %364 = vector.broadcast %cst_105 : f32 to vector<2x8x8xf32>
    %365 = arith.mulf %336, %364 : vector<2x8x8xf32>
    %366 = arith.truncf %365 : vector<2x8x8xf32> to vector<2x8x8xbf16>
    %367 = arith.truncf %340 : vector<2x8x8xf32> to vector<2x8x8xbf16>
    "tpu.trace_start"() <{level = 10 : i32, message = "bqd,bkd->bqk"}> : () -> ()
    %cst_106 = arith.constant dense<0.000000e+00> : vector<2x8x8xf32>
    %368 = tpu.matmul %366, %367, %cst_106 {dimension_numbers = #tpu.dot_dimension_numbers<[2], [2], [1], [1], [0, 0, 0, 1, 1, 1], [0], [0]>} : vector<2x8x8xbf16>, vector<2x8x8xbf16>, vector<2x8x8xf32> -> vector<2x8x8xf32>
    "tpu.trace_stop"() : () -> ()
    %cst_107 = arith.constant 0.353553385 : f32
    %369 = vector.broadcast %cst_107 : f32 to vector<2x8x8xf32>
    %370 = arith.mulf %337, %369 : vector<2x8x8xf32>
    %371 = arith.truncf %370 : vector<2x8x8xf32> to vector<2x8x8xbf16>
    %372 = arith.truncf %341 : vector<2x8x8xf32> to vector<2x8x8xbf16>
    "tpu.trace_start"() <{level = 10 : i32, message = "bqd,bkd->bqk"}> : () -> ()
    %cst_108 = arith.constant dense<0.000000e+00> : vector<2x8x8xf32>
    %373 = tpu.matmul %371, %372, %cst_108 {dimension_numbers = #tpu.dot_dimension_numbers<[2], [2], [1], [1], [0, 0, 0, 1, 1, 1], [0], [0]>} : vector<2x8x8xbf16>, vector<2x8x8xbf16>, vector<2x8x8xf32> -> vector<2x8x8xf32>
    "tpu.trace_stop"() : () -> ()
    %374 = tpu.concatenate %358, %363, %368, %373 in 0 : vector<2x8x8xf32>, vector<2x8x8xf32>, vector<2x8x8xf32>, vector<2x8x8xf32> -> vector<8x8x8xf32>
    %cst_109 = arith.constant dense<0xFF800000> : vector<8x8xf32>
    %375 = vector.multi_reduction <maximumf>, %374, %cst_109 [2] : vector<8x8x8xf32> to vector<8x8xf32>
    %376 = vector.shape_cast %375 : vector<8x8xf32> to vector<8x8x1xf32>
    %377 = vector.broadcast %376 : vector<8x8x1xf32> to vector<8x8x8xf32>
    %378 = arith.subf %374, %377 : vector<8x8x8xf32>
    %379 = math.exp %378 : vector<8x8x8xf32>
    %cst_110 = arith.constant dense<0.000000e+00> : vector<8x8xf32>
    %380 = vector.multi_reduction <add>, %379, %cst_110 [2] : vector<8x8x8xf32> to vector<8x8xf32>
    %381 = vector.shape_cast %380 : vector<8x8xf32> to vector<8x8x1xf32>
    %382 = vector.broadcast %381 : vector<8x8x1xf32> to vector<8x8x8xf32>
    %383 = arith.divf %379, %382 : vector<8x8x8xf32>
    %384 = vector.extract_strided_slice %383 {offsets = [0, 0, 0], sizes = [2, 8, 8], strides = [1, 1, 1]} : vector<8x8x8xf32> to vector<2x8x8xf32>
    %385 = arith.truncf %384 : vector<2x8x8xf32> to vector<2x8x8xbf16>
    %386 = arith.truncf %344 : vector<2x8x8xf32> to vector<2x8x8xbf16>
    "tpu.trace_start"() <{level = 10 : i32, message = "bqk,bkd->bqd"}> : () -> ()
    %cst_111 = arith.constant dense<0.000000e+00> : vector<2x8x8xf32>
    %387 = tpu.matmul %385, %386, %cst_111 {dimension_numbers = #tpu.dot_dimension_numbers<[2], [1], [1], [2], [0, 0, 0, 1, 1, 2], [0], [0]>} : vector<2x8x8xbf16>, vector<2x8x8xbf16>, vector<2x8x8xf32> -> vector<2x8x8xf32>
    "tpu.trace_stop"() : () -> ()
    %388 = vector.extract_strided_slice %383 {offsets = [2, 0, 0], sizes = [2, 8, 8], strides = [1, 1, 1]} : vector<8x8x8xf32> to vector<2x8x8xf32>
    %389 = arith.truncf %388 : vector<2x8x8xf32> to vector<2x8x8xbf16>
    %390 = arith.truncf %347 : vector<2x8x8xf32> to vector<2x8x8xbf16>
    "tpu.trace_start"() <{level = 10 : i32, message = "bqk,bkd->bqd"}> : () -> ()
    %cst_112 = arith.constant dense<0.000000e+00> : vector<2x8x8xf32>
    %391 = tpu.matmul %389, %390, %cst_112 {dimension_numbers = #tpu.dot_dimension_numbers<[2], [1], [1], [2], [0, 0, 0, 1, 1, 2], [0], [0]>} : vector<2x8x8xbf16>, vector<2x8x8xbf16>, vector<2x8x8xf32> -> vector<2x8x8xf32>
    "tpu.trace_stop"() : () -> ()
    %392 = vector.extract_strided_slice %383 {offsets = [4, 0, 0], sizes = [2, 8, 8], strides = [1, 1, 1]} : vector<8x8x8xf32> to vector<2x8x8xf32>
    %393 = arith.truncf %392 : vector<2x8x8xf32> to vector<2x8x8xbf16>
    %394 = arith.truncf %350 : vector<2x8x8xf32> to vector<2x8x8xbf16>
    "tpu.trace_start"() <{level = 10 : i32, message = "bqk,bkd->bqd"}> : () -> ()
    %cst_113 = arith.constant dense<0.000000e+00> : vector<2x8x8xf32>
    %395 = tpu.matmul %393, %394, %cst_113 {dimension_numbers = #tpu.dot_dimension_numbers<[2], [1], [1], [2], [0, 0, 0, 1, 1, 2], [0], [0]>} : vector<2x8x8xbf16>, vector<2x8x8xbf16>, vector<2x8x8xf32> -> vector<2x8x8xf32>
    "tpu.trace_stop"() : () -> ()
    %396 = vector.extract_strided_slice %383 {offsets = [6, 0, 0], sizes = [2, 8, 8], strides = [1, 1, 1]} : vector<8x8x8xf32> to vector<2x8x8xf32>
    %397 = arith.truncf %396 : vector<2x8x8xf32> to vector<2x8x8xbf16>
    %398 = arith.truncf %353 : vector<2x8x8xf32> to vector<2x8x8xbf16>
    "tpu.trace_start"() <{level = 10 : i32, message = "bqk,bkd->bqd"}> : () -> ()
    %cst_114 = arith.constant dense<0.000000e+00> : vector<2x8x8xf32>
    %399 = tpu.matmul %397, %398, %cst_114 {dimension_numbers = #tpu.dot_dimension_numbers<[2], [1], [1], [2], [0, 0, 0, 1, 1, 2], [0], [0]>} : vector<2x8x8xbf16>, vector<2x8x8xbf16>, vector<2x8x8xf32> -> vector<2x8x8xf32>
    "tpu.trace_stop"() : () -> ()
    %400 = tpu.concatenate %387, %391, %395, %399 in 2 : vector<2x8x8xf32>, vector<2x8x8xf32>, vector<2x8x8xf32>, vector<2x8x8xf32> -> vector<2x8x32xf32>
    %401 = vector.shape_cast %400 : vector<2x8x32xf32> to vector<16x32xf32>
    %402 = arith.truncf %401 : vector<16x32xf32> to vector<16x32xbf16>
    %403 = vector.extract_strided_slice %325 {offsets = [1, 0, 0], sizes = [1, 32, 32], strides = [1, 1, 1]} : vector<3x32x32xbf16> to vector<1x32x32xbf16>
    %404 = vector.shape_cast %403 : vector<1x32x32xbf16> to vector<32x32xbf16>
    %cst_115 = arith.constant dense<0.000000e+00> : vector<16x32xf32>
    %405 = tpu.matmul %402, %404, %cst_115 {dimension_numbers = #tpu.dot_dimension_numbers<[1], [0], [0], [1], [0, 0, 1, 1], [], []>} : vector<16x32xbf16>, vector<32x32xbf16>, vector<16x32xf32> -> vector<16x32xf32>
    %406 = vector.broadcast %314 : vector<1x32xf32> to vector<16x32xf32>
    %407 = arith.addf %405, %406 : vector<16x32xf32>
    %408 = arith.addf %287, %407 : vector<16x32xf32>
    %cst_116 = arith.constant dense<0.000000e+00> : vector<16xf32>
    %409 = vector.multi_reduction <add>, %408, %cst_116 [1] : vector<16x32xf32> to vector<16xf32>
    %410 = vector.shape_cast %409 : vector<16xf32> to vector<16x1xf32>
    %cst_117 = arith.constant 3.200000e+01 : f32
    %411 = vector.broadcast %cst_117 : f32 to vector<16x1xf32>
    %412 = arith.divf %410, %411 : vector<16x1xf32>
    %413 = vector.broadcast %412 : vector<16x1xf32> to vector<16x32xf32>
    %414 = arith.subf %408, %413 : vector<16x32xf32>
    %415 = arith.mulf %414, %414 : vector<16x32xf32>
    %cst_118 = arith.constant dense<0.000000e+00> : vector<16xf32>
    %416 = vector.multi_reduction <add>, %415, %cst_118 [1] : vector<16x32xf32> to vector<16xf32>
    %417 = vector.shape_cast %416 : vector<16xf32> to vector<16x1xf32>
    %cst_119 = arith.constant 3.200000e+01 : f32
    %418 = vector.broadcast %cst_119 : f32 to vector<16x1xf32>
    %419 = arith.divf %417, %418 : vector<16x1xf32>
    %420 = vector.broadcast %412 : vector<16x1xf32> to vector<16x32xf32>
    %421 = arith.subf %408, %420 : vector<16x32xf32>
    %cst_120 = arith.constant 9.99999974E-6 : f32
    %422 = vector.broadcast %cst_120 : f32 to vector<16x1xf32>
    %423 = arith.addf %419, %422 : vector<16x1xf32>
    %424 = math.rsqrt %423 : vector<16x1xf32>
    %425 = vector.broadcast %424 : vector<16x1xf32> to vector<16x32xf32>
    %426 = arith.mulf %421, %425 : vector<16x32xf32>
    %427 = vector.broadcast %318 : vector<1x32xf32> to vector<16x32xf32>
    %428 = arith.mulf %426, %427 : vector<16x32xf32>
    %429 = vector.broadcast %321 : vector<1x32xf32> to vector<16x32xf32>
    %430 = arith.addf %428, %429 : vector<16x32xf32>
    %431 = arith.addf %430, %3 : vector<16x32xf32>
    %432 = arith.truncf %431 : vector<16x32xf32> to vector<16x32xbf16>
    %433 = vector.extract_strided_slice %325 {offsets = [0, 0, 0], sizes = [1, 32, 32], strides = [1, 1, 1]} : vector<3x32x32xbf16> to vector<1x32x32xbf16>
    %434 = vector.shape_cast %433 : vector<1x32x32xbf16> to vector<32x32xbf16>
    %cst_121 = arith.constant dense<0.000000e+00> : vector<16x32xf32>
    %435 = tpu.matmul %432, %434, %cst_121 {dimension_numbers = #tpu.dot_dimension_numbers<[1], [0], [0], [1], [0, 0, 1, 1], [], []>} : vector<16x32xbf16>, vector<32x32xbf16>, vector<16x32xf32> -> vector<16x32xf32>
    %436 = vector.broadcast %313 : vector<1x32xf32> to vector<16x32xf32>
    %437 = arith.addf %435, %436 : vector<16x32xf32>
    %438 = vector.shape_cast %437 : vector<16x32xf32> to vector<2x8x32xf32>
    %439 = vector.extract_strided_slice %438 {offsets = [0, 0, 0], sizes = [2, 8, 8], strides = [1, 1, 1]} : vector<2x8x32xf32> to vector<2x8x8xf32>
    %440 = vector.extract_strided_slice %438 {offsets = [0, 0, 8], sizes = [2, 8, 8], strides = [1, 1, 1]} : vector<2x8x32xf32> to vector<2x8x8xf32>
    %441 = vector.extract_strided_slice %438 {offsets = [0, 0, 16], sizes = [2, 8, 8], strides = [1, 1, 1]} : vector<2x8x32xf32> to vector<2x8x8xf32>
    %442 = vector.extract_strided_slice %438 {offsets = [0, 0, 24], sizes = [2, 8, 8], strides = [1, 1, 1]} : vector<2x8x32xf32> to vector<2x8x8xf32>
    %443 = vector.extract_strided_slice %20 {offsets = [0, 0, 32], sizes = [2, 16, 8], strides = [1, 1, 1]} : vector<2x16x64xf32> to vector<2x16x8xf32>
    %444 = vector.extract_strided_slice %20 {offsets = [0, 0, 40], sizes = [2, 16, 8], strides = [1, 1, 1]} : vector<2x16x64xf32> to vector<2x16x8xf32>
    %445 = vector.extract_strided_slice %20 {offsets = [0, 0, 48], sizes = [2, 16, 8], strides = [1, 1, 1]} : vector<2x16x64xf32> to vector<2x16x8xf32>
    %446 = vector.extract_strided_slice %20 {offsets = [0, 0, 56], sizes = [2, 16, 8], strides = [1, 1, 1]} : vector<2x16x64xf32> to vector<2x16x8xf32>
    %447 = vector.extract_strided_slice %27 {offsets = [0, 0, 32], sizes = [2, 16, 8], strides = [1, 1, 1]} : vector<2x16x64xf32> to vector<2x16x8xf32>
    %448 = vector.extract_strided_slice %27 {offsets = [0, 0, 40], sizes = [2, 16, 8], strides = [1, 1, 1]} : vector<2x16x64xf32> to vector<2x16x8xf32>
    %449 = vector.extract_strided_slice %27 {offsets = [0, 0, 48], sizes = [2, 16, 8], strides = [1, 1, 1]} : vector<2x16x64xf32> to vector<2x16x8xf32>
    %450 = vector.extract_strided_slice %27 {offsets = [0, 0, 56], sizes = [2, 16, 8], strides = [1, 1, 1]} : vector<2x16x64xf32> to vector<2x16x8xf32>
    %cst_122 = arith.constant 0.353553385 : f32
    %451 = vector.broadcast %cst_122 : f32 to vector<2x8x8xf32>
    %452 = arith.mulf %439, %451 : vector<2x8x8xf32>
    %453 = arith.truncf %452 : vector<2x8x8xf32> to vector<2x8x8xbf16>
    %454 = arith.truncf %443 : vector<2x16x8xf32> to vector<2x16x8xbf16>
    "tpu.trace_start"() <{level = 10 : i32, message = "bqd,bkd->bqk"}> : () -> ()
    %cst_123 = arith.constant dense<0.000000e+00> : vector<2x8x16xf32>
    %455 = tpu.matmul %453, %454, %cst_123 {dimension_numbers = #tpu.dot_dimension_numbers<[2], [2], [1], [1], [0, 0, 0, 1, 1, 1], [0], [0]>} : vector<2x8x8xbf16>, vector<2x16x8xbf16>, vector<2x8x16xf32> -> vector<2x8x16xf32>
    "tpu.trace_stop"() : () -> ()
    %cst_124 = arith.constant 0.353553385 : f32
    %456 = vector.broadcast %cst_124 : f32 to vector<2x8x8xf32>
    %457 = arith.mulf %440, %456 : vector<2x8x8xf32>
    %458 = arith.truncf %457 : vector<2x8x8xf32> to vector<2x8x8xbf16>
    %459 = arith.truncf %444 : vector<2x16x8xf32> to vector<2x16x8xbf16>
    "tpu.trace_start"() <{level = 10 : i32, message = "bqd,bkd->bqk"}> : () -> ()
    %cst_125 = arith.constant dense<0.000000e+00> : vector<2x8x16xf32>
    %460 = tpu.matmul %458, %459, %cst_125 {dimension_numbers = #tpu.dot_dimension_numbers<[2], [2], [1], [1], [0, 0, 0, 1, 1, 1], [0], [0]>} : vector<2x8x8xbf16>, vector<2x16x8xbf16>, vector<2x8x16xf32> -> vector<2x8x16xf32>
    "tpu.trace_stop"() : () -> ()
    %cst_126 = arith.constant 0.353553385 : f32
    %461 = vector.broadcast %cst_126 : f32 to vector<2x8x8xf32>
    %462 = arith.mulf %441, %461 : vector<2x8x8xf32>
    %463 = arith.truncf %462 : vector<2x8x8xf32> to vector<2x8x8xbf16>
    %464 = arith.truncf %445 : vector<2x16x8xf32> to vector<2x16x8xbf16>
    "tpu.trace_start"() <{level = 10 : i32, message = "bqd,bkd->bqk"}> : () -> ()
    %cst_127 = arith.constant dense<0.000000e+00> : vector<2x8x16xf32>
    %465 = tpu.matmul %463, %464, %cst_127 {dimension_numbers = #tpu.dot_dimension_numbers<[2], [2], [1], [1], [0, 0, 0, 1, 1, 1], [0], [0]>} : vector<2x8x8xbf16>, vector<2x16x8xbf16>, vector<2x8x16xf32> -> vector<2x8x16xf32>
    "tpu.trace_stop"() : () -> ()
    %cst_128 = arith.constant 0.353553385 : f32
    %466 = vector.broadcast %cst_128 : f32 to vector<2x8x8xf32>
    %467 = arith.mulf %442, %466 : vector<2x8x8xf32>
    %468 = arith.truncf %467 : vector<2x8x8xf32> to vector<2x8x8xbf16>
    %469 = arith.truncf %446 : vector<2x16x8xf32> to vector<2x16x8xbf16>
    "tpu.trace_start"() <{level = 10 : i32, message = "bqd,bkd->bqk"}> : () -> ()
    %cst_129 = arith.constant dense<0.000000e+00> : vector<2x8x16xf32>
    %470 = tpu.matmul %468, %469, %cst_129 {dimension_numbers = #tpu.dot_dimension_numbers<[2], [2], [1], [1], [0, 0, 0, 1, 1, 1], [0], [0]>} : vector<2x8x8xbf16>, vector<2x16x8xbf16>, vector<2x8x16xf32> -> vector<2x8x16xf32>
    "tpu.trace_stop"() : () -> ()
    %471 = tpu.concatenate %455, %460, %465, %470 in 0 : vector<2x8x16xf32>, vector<2x8x16xf32>, vector<2x8x16xf32>, vector<2x8x16xf32> -> vector<8x8x16xf32>
    %cst_130 = arith.constant dense<0xFF800000> : vector<8x8xf32>
    %472 = vector.multi_reduction <maximumf>, %471, %cst_130 [2] : vector<8x8x16xf32> to vector<8x8xf32>
    %473 = vector.shape_cast %472 : vector<8x8xf32> to vector<8x8x1xf32>
    %474 = vector.broadcast %473 : vector<8x8x1xf32> to vector<8x8x16xf32>
    %475 = arith.subf %471, %474 : vector<8x8x16xf32>
    %476 = math.exp %475 : vector<8x8x16xf32>
    %cst_131 = arith.constant dense<0.000000e+00> : vector<8x8xf32>
    %477 = vector.multi_reduction <add>, %476, %cst_131 [2] : vector<8x8x16xf32> to vector<8x8xf32>
    %478 = vector.shape_cast %477 : vector<8x8xf32> to vector<8x8x1xf32>
    %479 = vector.broadcast %478 : vector<8x8x1xf32> to vector<8x8x16xf32>
    %480 = arith.divf %476, %479 : vector<8x8x16xf32>
    %481 = vector.extract_strided_slice %480 {offsets = [0, 0, 0], sizes = [2, 8, 16], strides = [1, 1, 1]} : vector<8x8x16xf32> to vector<2x8x16xf32>
    %482 = arith.truncf %481 : vector<2x8x16xf32> to vector<2x8x16xbf16>
    %483 = arith.truncf %447 : vector<2x16x8xf32> to vector<2x16x8xbf16>
    "tpu.trace_start"() <{level = 10 : i32, message = "bqk,bkd->bqd"}> : () -> ()
    %cst_132 = arith.constant dense<0.000000e+00> : vector<2x8x8xf32>
    %484 = tpu.matmul %482, %483, %cst_132 {dimension_numbers = #tpu.dot_dimension_numbers<[2], [1], [1], [2], [0, 0, 0, 1, 1, 2], [0], [0]>} : vector<2x8x16xbf16>, vector<2x16x8xbf16>, vector<2x8x8xf32> -> vector<2x8x8xf32>
    "tpu.trace_stop"() : () -> ()
    %485 = vector.extract_strided_slice %480 {offsets = [2, 0, 0], sizes = [2, 8, 16], strides = [1, 1, 1]} : vector<8x8x16xf32> to vector<2x8x16xf32>
    %486 = arith.truncf %485 : vector<2x8x16xf32> to vector<2x8x16xbf16>
    %487 = arith.truncf %448 : vector<2x16x8xf32> to vector<2x16x8xbf16>
    "tpu.trace_start"() <{level = 10 : i32, message = "bqk,bkd->bqd"}> : () -> ()
    %cst_133 = arith.constant dense<0.000000e+00> : vector<2x8x8xf32>
    %488 = tpu.matmul %486, %487, %cst_133 {dimension_numbers = #tpu.dot_dimension_numbers<[2], [1], [1], [2], [0, 0, 0, 1, 1, 2], [0], [0]>} : vector<2x8x16xbf16>, vector<2x16x8xbf16>, vector<2x8x8xf32> -> vector<2x8x8xf32>
    "tpu.trace_stop"() : () -> ()
    %489 = vector.extract_strided_slice %480 {offsets = [4, 0, 0], sizes = [2, 8, 16], strides = [1, 1, 1]} : vector<8x8x16xf32> to vector<2x8x16xf32>
    %490 = arith.truncf %489 : vector<2x8x16xf32> to vector<2x8x16xbf16>
    %491 = arith.truncf %449 : vector<2x16x8xf32> to vector<2x16x8xbf16>
    "tpu.trace_start"() <{level = 10 : i32, message = "bqk,bkd->bqd"}> : () -> ()
    %cst_134 = arith.constant dense<0.000000e+00> : vector<2x8x8xf32>
    %492 = tpu.matmul %490, %491, %cst_134 {dimension_numbers = #tpu.dot_dimension_numbers<[2], [1], [1], [2], [0, 0, 0, 1, 1, 2], [0], [0]>} : vector<2x8x16xbf16>, vector<2x16x8xbf16>, vector<2x8x8xf32> -> vector<2x8x8xf32>
    "tpu.trace_stop"() : () -> ()
    %493 = vector.extract_strided_slice %480 {offsets = [6, 0, 0], sizes = [2, 8, 16], strides = [1, 1, 1]} : vector<8x8x16xf32> to vector<2x8x16xf32>
    %494 = arith.truncf %493 : vector<2x8x16xf32> to vector<2x8x16xbf16>
    %495 = arith.truncf %450 : vector<2x16x8xf32> to vector<2x16x8xbf16>
    "tpu.trace_start"() <{level = 10 : i32, message = "bqk,bkd->bqd"}> : () -> ()
    %cst_135 = arith.constant dense<0.000000e+00> : vector<2x8x8xf32>
    %496 = tpu.matmul %494, %495, %cst_135 {dimension_numbers = #tpu.dot_dimension_numbers<[2], [1], [1], [2], [0, 0, 0, 1, 1, 2], [0], [0]>} : vector<2x8x16xbf16>, vector<2x16x8xbf16>, vector<2x8x8xf32> -> vector<2x8x8xf32>
    "tpu.trace_stop"() : () -> ()
    %497 = tpu.concatenate %484, %488, %492, %496 in 2 : vector<2x8x8xf32>, vector<2x8x8xf32>, vector<2x8x8xf32>, vector<2x8x8xf32> -> vector<2x8x32xf32>
    %498 = vector.shape_cast %497 : vector<2x8x32xf32> to vector<16x32xf32>
    %499 = arith.truncf %498 : vector<16x32xf32> to vector<16x32xbf16>
    %500 = vector.extract_strided_slice %325 {offsets = [2, 0, 0], sizes = [1, 32, 32], strides = [1, 1, 1]} : vector<3x32x32xbf16> to vector<1x32x32xbf16>
    %501 = vector.shape_cast %500 : vector<1x32x32xbf16> to vector<32x32xbf16>
    %cst_136 = arith.constant dense<0.000000e+00> : vector<16x32xf32>
    %502 = tpu.matmul %499, %501, %cst_136 {dimension_numbers = #tpu.dot_dimension_numbers<[1], [0], [0], [1], [0, 0, 1, 1], [], []>} : vector<16x32xbf16>, vector<32x32xbf16>, vector<16x32xf32> -> vector<16x32xf32>
    %503 = vector.broadcast %315 : vector<1x32xf32> to vector<16x32xf32>
    %504 = arith.addf %502, %503 : vector<16x32xf32>
    %505 = arith.addf %430, %504 : vector<16x32xf32>
    %cst_137 = arith.constant dense<0.000000e+00> : vector<16xf32>
    %506 = vector.multi_reduction <add>, %505, %cst_137 [1] : vector<16x32xf32> to vector<16xf32>
    %507 = vector.shape_cast %506 : vector<16xf32> to vector<16x1xf32>
    %cst_138 = arith.constant 3.200000e+01 : f32
    %508 = vector.broadcast %cst_138 : f32 to vector<16x1xf32>
    %509 = arith.divf %507, %508 : vector<16x1xf32>
    %510 = vector.broadcast %509 : vector<16x1xf32> to vector<16x32xf32>
    %511 = arith.subf %505, %510 : vector<16x32xf32>
    %512 = arith.mulf %511, %511 : vector<16x32xf32>
    %cst_139 = arith.constant dense<0.000000e+00> : vector<16xf32>
    %513 = vector.multi_reduction <add>, %512, %cst_139 [1] : vector<16x32xf32> to vector<16xf32>
    %514 = vector.shape_cast %513 : vector<16xf32> to vector<16x1xf32>
    %cst_140 = arith.constant 3.200000e+01 : f32
    %515 = vector.broadcast %cst_140 : f32 to vector<16x1xf32>
    %516 = arith.divf %514, %515 : vector<16x1xf32>
    %517 = vector.broadcast %509 : vector<16x1xf32> to vector<16x32xf32>
    %518 = arith.subf %505, %517 : vector<16x32xf32>
    %cst_141 = arith.constant 9.99999974E-6 : f32
    %519 = vector.broadcast %cst_141 : f32 to vector<16x1xf32>
    %520 = arith.addf %516, %519 : vector<16x1xf32>
    %521 = math.rsqrt %520 : vector<16x1xf32>
    %522 = vector.broadcast %521 : vector<16x1xf32> to vector<16x32xf32>
    %523 = arith.mulf %518, %522 : vector<16x32xf32>
    %524 = vector.broadcast %319 : vector<1x32xf32> to vector<16x32xf32>
    %525 = arith.mulf %523, %524 : vector<16x32xf32>
    %526 = vector.broadcast %322 : vector<1x32xf32> to vector<16x32xf32>
    %527 = arith.addf %525, %526 : vector<16x32xf32>
    %528 = arith.truncf %527 : vector<16x32xf32> to vector<16x32xbf16>
    %c1_142 = arith.constant 1 : index
    %c0_143 = arith.constant 0 : index
    %c0_144 = arith.constant 0 : index
    %529 = vector.load %arg6[%c1_142, %c0_143, %c0_144] : memref<2x32x64xbf16, #tpu.memory_space<vmem>>, vector<1x32x64xbf16>
    %530 = vector.shape_cast %529 : vector<1x32x64xbf16> to vector<32x64xbf16>
    %cst_145 = arith.constant dense<0.000000e+00> : vector<16x64xf32>
    %531 = tpu.matmul %528, %530, %cst_145 {dimension_numbers = #tpu.dot_dimension_numbers<[1], [0], [0], [1], [0, 0, 1, 1], [], []>} : vector<16x32xbf16>, vector<32x64xbf16>, vector<16x64xf32> -> vector<16x64xf32>
    %532 = vector.broadcast %316 : vector<1x64xf32> to vector<16x64xf32>
    %533 = arith.addf %531, %532 : vector<16x64xf32>
    %cst_146 = arith.constant 0.000000e+00 : f32
    %534 = vector.broadcast %cst_146 : f32 to vector<16x64xf32>
    %535 = arith.maximumf %533, %534 : vector<16x64xf32>
    %536 = arith.truncf %535 : vector<16x64xf32> to vector<16x64xbf16>
    %c1_147 = arith.constant 1 : index
    %c0_148 = arith.constant 0 : index
    %c0_149 = arith.constant 0 : index
    %537 = vector.load %arg7[%c1_147, %c0_148, %c0_149] : memref<2x64x32xbf16, #tpu.memory_space<vmem>>, vector<1x64x32xbf16>
    %538 = vector.shape_cast %537 : vector<1x64x32xbf16> to vector<64x32xbf16>
    %cst_150 = arith.constant dense<0.000000e+00> : vector<16x32xf32>
    %539 = tpu.matmul %536, %538, %cst_150 {dimension_numbers = #tpu.dot_dimension_numbers<[1], [0], [0], [1], [0, 0, 1, 1], [], []>} : vector<16x64xbf16>, vector<64x32xbf16>, vector<16x32xf32> -> vector<16x32xf32>
    %540 = vector.broadcast %317 : vector<1x32xf32> to vector<16x32xf32>
    %541 = arith.addf %539, %540 : vector<16x32xf32>
    %542 = arith.addf %527, %541 : vector<16x32xf32>
    %cst_151 = arith.constant dense<0.000000e+00> : vector<16xf32>
    %543 = vector.multi_reduction <add>, %542, %cst_151 [1] : vector<16x32xf32> to vector<16xf32>
    %544 = vector.shape_cast %543 : vector<16xf32> to vector<16x1xf32>
    %cst_152 = arith.constant 3.200000e+01 : f32
    %545 = vector.broadcast %cst_152 : f32 to vector<16x1xf32>
    %546 = arith.divf %544, %545 : vector<16x1xf32>
    %547 = vector.broadcast %546 : vector<16x1xf32> to vector<16x32xf32>
    %548 = arith.subf %542, %547 : vector<16x32xf32>
    %549 = arith.mulf %548, %548 : vector<16x32xf32>
    %cst_153 = arith.constant dense<0.000000e+00> : vector<16xf32>
    %550 = vector.multi_reduction <add>, %549, %cst_153 [1] : vector<16x32xf32> to vector<16xf32>
    %551 = vector.shape_cast %550 : vector<16xf32> to vector<16x1xf32>
    %cst_154 = arith.constant 3.200000e+01 : f32
    %552 = vector.broadcast %cst_154 : f32 to vector<16x1xf32>
    %553 = arith.divf %551, %552 : vector<16x1xf32>
    %554 = vector.broadcast %546 : vector<16x1xf32> to vector<16x32xf32>
    %555 = arith.subf %542, %554 : vector<16x32xf32>
    %cst_155 = arith.constant 9.99999974E-6 : f32
    %556 = vector.broadcast %cst_155 : f32 to vector<16x1xf32>
    %557 = arith.addf %553, %556 : vector<16x1xf32>
    %558 = math.rsqrt %557 : vector<16x1xf32>
    %559 = vector.broadcast %558 : vector<16x1xf32> to vector<16x32xf32>
    %560 = arith.mulf %555, %559 : vector<16x32xf32>
    %561 = vector.broadcast %320 : vector<1x32xf32> to vector<16x32xf32>
    %562 = arith.mulf %560, %561 : vector<16x32xf32>
    %563 = vector.broadcast %323 : vector<1x32xf32> to vector<16x32xf32>
    %564 = arith.addf %562, %563 : vector<16x32xf32>
    %cst_156 = arith.constant dense<0.000000e+00> : vector<16xf32>
    %565 = vector.multi_reduction <add>, %564, %cst_156 [1] : vector<16x32xf32> to vector<16xf32>
    %566 = vector.shape_cast %565 : vector<16xf32> to vector<16x1xf32>
    %cst_157 = arith.constant 3.200000e+01 : f32
    %567 = vector.broadcast %cst_157 : f32 to vector<16x1xf32>
    %568 = arith.divf %566, %567 : vector<16x1xf32>
    %569 = vector.broadcast %568 : vector<16x1xf32> to vector<16x32xf32>
    %570 = arith.subf %564, %569 : vector<16x32xf32>
    %571 = arith.mulf %570, %570 : vector<16x32xf32>
    %cst_158 = arith.constant dense<0.000000e+00> : vector<16xf32>
    %572 = vector.multi_reduction <add>, %571, %cst_158 [1] : vector<16x32xf32> to vector<16xf32>
    %573 = vector.shape_cast %572 : vector<16xf32> to vector<16x1xf32>
    %cst_159 = arith.constant 3.200000e+01 : f32
    %574 = vector.broadcast %cst_159 : f32 to vector<16x1xf32>
    %575 = arith.divf %573, %574 : vector<16x1xf32>
    %576 = vector.broadcast %568 : vector<16x1xf32> to vector<16x32xf32>
    %577 = arith.subf %564, %576 : vector<16x32xf32>
    %cst_160 = arith.constant 9.99999974E-6 : f32
    %578 = vector.broadcast %cst_160 : f32 to vector<16x1xf32>
    %579 = arith.addf %575, %578 : vector<16x1xf32>
    %580 = math.rsqrt %579 : vector<16x1xf32>
    %581 = vector.broadcast %580 : vector<16x1xf32> to vector<16x32xf32>
    %582 = arith.mulf %577, %581 : vector<16x32xf32>
    %583 = vector.broadcast %31 : vector<1x32xf32> to vector<16x32xf32>
    %584 = arith.mulf %582, %583 : vector<16x32xf32>
    %585 = vector.broadcast %32 : vector<1x32xf32> to vector<16x32xf32>
    %586 = arith.addf %584, %585 : vector<16x32xf32>
    %587 = vector.shape_cast %309 : vector<16x32xf32> to vector<1x16x32xf32>
    %588 = vector.shape_cast %586 : vector<16x32xf32> to vector<1x16x32xf32>
    %589 = tpu.concatenate %587, %588 in 0 : vector<1x16x32xf32>, vector<1x16x32xf32> -> vector<2x16x32xf32>
    %590 = vector.shape_cast %589 : vector<2x16x32xf32> to vector<2x2x8x32xf32>
    %c0_161 = arith.constant 0 : index
    %c0_162 = arith.constant 0 : index
    %c0_163 = arith.constant 0 : index
    %c0_164 = arith.constant 0 : index
    %591 = vector.load %arg11[%c0_161, %c0_162, %c0_163, %c0_164] : memref<2x2x8x32xf32, #tpu.memory_space<vmem>>, vector<2x2x8x32xf32>
    tpu.vector_store %arg11[%c0_161, %c0_162, %c0_163, %c0_164], %590 {strides = array<i32>} : memref<2x2x8x32xf32, #tpu.memory_space<vmem>>, vector<2x2x8x32xf32>,
    return
  }
}

</mosaic_0001>

<bundles_post_ra>
// kernel: transformer_decoder_forward.1
= control target key start
LH: loop header
LB: loop body
LE: loop exit
PB: predicated region body
PF: predicated region fallthrough
CT: control target
= control target key end

     0   :  { %vm79_vm0 = vcmask 261120   ;;  %s4012_s22 = smov 64   ;;  %s4013_s29 = smov 80   ;;  %vm238_vm1 = vcmask 64512   ;;  %vm630_vm2 = vcmask 1043456   ;;  %s5186_s4 = inlined_call_operand.vmem [shape: bf16[2,32,96], index: 4, kind: input, shape index: {}]   ;;  %s5187_s0 = inlined_call_operand.vmem [shape: f32[2,8,32], index: 0, kind: input, shape index: {}]   ;;  %s5188_s2 = inlined_call_operand.vmem [shape: f32[2,8,32], index: 2, kind: input, shape index: {}]   ;;  %s5189_s8 = inlined_call_operand.vmem [shape: bf16[33,192], index: 8, kind: input, shape index: {}]   ;;  %s5190_s9 = inlined_call_operand.vmem [shape: f32[2,5,96], index: 9, kind: input, shape index: {}]   ;;  %s5191_s1 = inlined_call_operand.vmem [shape: f32[2,16,32], index: 1, kind: input, shape index: {}]   ;;  %s5192_s3 = inlined_call_operand.vmem [shape: f32[2,16,32], index: 3, kind: input, shape index: {}]   ;;  %s5193_s5 = inlined_call_operand.vmem [shape: bf16[2,3,32,32], index: 5, kind: input, shape index: {}]   ;;  %s5194_s6 = inlined_call_operand.vmem [shape: bf16[2,32,64], index: 6, kind: input, shape index: {}]   ;;  %s5195_s7 = inlined_call_operand.vmem [shape: bf16[2,64,32], index: 7, kind: input, shape index: {}]   ;;  %s5196_s10 = inlined_call_operand.vmem [shape: f32[2,32], index: 10, kind: input, shape index: {}]   ;;  %s5197_s11 = inlined_call_operand.vmem [shape: f32[2,2,8,32], index: 11, kind: output, shape index: {}]  }
   0x1   :  { %v3743_v0 = vld [vmem:[%s5186_s4 + $0x8] sm:$0xff]  ;;  %v3742_v1 = vld [vmem:[%s5186_s4] sm:$0xff]  ;;  %v3734_v8 = vld [vmem:[%s5189_s8 + $0x14] sm:$0xf]  ;;  %s4014_s30 = smov 88   ;;  %s4015_s12 = smov 96  }
   0x2   :  { %v39_v2 = vld [vmem:[%s5187_s0] sm:$0xff]  ;;  %v40_v3 = vld [vmem:[%s5187_s0 + $0x8] sm:$0xff]  ;;  %209 = vmatpush.bf16.msra.mxu3 %v3743_v0  ;;  %v3510_v9 = vld [vmem:[%s5189_s8 + $0x18] sm:$0xf0]  ;;  %s4016_s21 = smov 120   ;;  %s4017_s15 = smov 72  }
   0x3   :  { %v41_v4 = vld [vmem:[%s5188_s2] sm:$0xff]  ;;  %v42_v5 = vld [vmem:[%s5188_s2 + $0x8] sm:$0xff]  ;;  %v3513_v11 = vor.u32 %v3734_v8, %v3510_v9  ;;  %v3500_v13 = vld [vmem:[%s5189_s8 + $0x10] sm:$0xf]  ;;  %s4019_s16 = smov 112   ;;  %s4021_s17 = smov 48  }
   0x4   :  { %v180_v6 = vadd.f32 %v41_v4, %v39_v2  ;;  %v181_v7 = vadd.f32 %v42_v5, %v40_v3  ;;  %v3732_v10 = vld [vmem:[%s5189_s8 + $0x4] sm:$0xf]  ;;  %v3506_v12 = vld [vmem:[%s5189_s8 + $0x8] sm:$0xf0]  ;;  %v3735_v14 = vld [vmem:[%s5189_s8 + $0x14] sm:$0xf0]  ;;  %v55_v20 = vpack.c.bf16 %v42_v5, %v41_v4 }
   0x5   :  { %v3501_v15 = vor.u32 %v3735_v14, %v3500_v13  ;;  %157 = vmatpush.bf16.msra.mxu2 %v3513_v11  ;;  %v3509_v17 = vor.u32 %v3732_v10, %v3506_v12  ;;  %v3496_v18 = vld [vmem:[%s5189_s8] sm:$0xf]  ;;  %v3733_v19 = vld [vmem:[%s5189_s8 + $0x4] sm:$0xf0]  ;;  %v45_v52 = vld [vmem:[%s5191_s1 + $0x10] sm:$0xff]  ;;  %s4022_s18 = smov 40  }
   0x6   :  { %v182_v16 = vpack.c.bf16 %v181_v7, %v180_v6  ;;  %210 = vmatpush.bf16.msra.mxu3 %v3742_v1  ;;  %v3497_v21 = vor.u32 %v3733_v19, %v3496_v18  ;;  %v4137_v22 = vld [vmem:[%s5190_s9] sm:$0x1f]  ;;  %v44_v37 = vld [vmem:[%s5191_s1 + $0x8] sm:$0xff]  ;;  %v46_v53 = vld [vmem:[%s5191_s1 + $0x18] sm:$0xff]  ;;  %s4024_s23 = smov 24   ;;  %s4025_s24 = smov 16  }
   0x7   :  { %107 = vrot.lane.b32.xlu0 %v3501_v15, %s4012_s22  ;;  %92 = vmatpush.bf16.msra.mxu0 %v3501_v15  ;;  %v187_v23 = vperm.slane %v4137_v22, 0  ;;  %v43_v36 = vld [vmem:[%s5191_s1] sm:$0xff]  ;;  %v48_v40 = vld [vmem:[%s5192_s3 + $0x8] sm:$0xff]  ;;  %v49_v54 = vld [vmem:[%s5192_s3 + $0x10] sm:$0xff]  ;;  %s4018_s1 = smov 104   ;;  %v57_v60 = vpack.c.bf16 %v46_v53, %v45_v52 }
   0x8   :  { %v47_v38 = vld [vmem:[%s5192_s3] sm:$0xff]  ;;  %v52_v44 = vadd.f32 %v48_v40, %v44_v37  ;;  %v56_v51 = vpack.c.bf16 %v44_v37, %v43_v36  ;;  %v50_v55 = vld [vmem:[%s5192_s3 + $0x18] sm:$0xff]  ;;  %v53_v56 = vadd.f32 %v49_v54, %v45_v52  ;;  %s4020_s3 = smov 56  }
   0x9   :  { %3523 = vmatmul.msk.bf16.vlgmr.msra.gmra.mxu3 %vm79_vm0, %v182_v16  ;;  %158 = vmatpush.bf16.msra.mxu2 %v3509_v17  ;;  %v51_v41 = vadd.f32 %v47_v38, %v43_v36  ;;  %v54_v57 = vadd.f32 %v50_v55, %v46_v53 }
   0xb   :  { %93 = vmatpush.bf16.msra.mxu0 %v3497_v21  ;;  %v58_v48 = vpack.c.bf16 %v52_v44, %v51_v41  ;;  %v59_v58 = vpack.c.bf16 %v54_v57, %v53_v56 }
   0xc   :  { %3514 = vmatmul.msk.bf16.vlgmr.msra.gmra.mxu2 %vm79_vm0, %v55_v20 }
   0xe   :  { %3502 = vmatmul.msk.bf16.vlgmr.msra.gmra.mxu0 %vm79_vm0, %v58_v48 }
   0xf   :  { %105 = vrot.lane.b32.xlu0 %v3497_v21, %s4012_s22 }
  0x1e   :  { %3503 = vmatmul.msk.bf16.gmra.mxu0 %vm79_vm0, %v59_v58 }
  0x79   :  { %v108_v39 = vpop.permute.xlu0 %107 }
  0x7a   :  { %127 = vmatpush.bf16.msra.mxu1 %v108_v39 }
  0x81   :  { %v106_v50 = vpop.permute.xlu0 %105 }
  0x82   :  { %128 = vmatpush.bf16.msra.mxu1 %v106_v50 }
  0x85   :  { %3504 = vmatmul.msk.bf16.vlgmr.msra.gmra.mxu1 %vm79_vm0, %v56_v51 }
  0x8b   :  { %v4216_v19 = vpop.f32.mrf.mxu0 }
  0x8c   :  { %v212_v24 = vpop.f32.mrf.mxu3 }
  0x8d   :  { %v4140_v25 = vadd.f32 %v212_v24, %v187_v23 }
  0x8f   :  { %v227_v26 = vmul.f32 0.35355338, %v4140_v25  ;;  %v231_v27 = vpack.c.bf16 %v4140_v25, %v4140_v25  ;;  %v4192_v59 = vpop.f32.mrf.mxu2 }
  0x91   :  { %v234_v28 = vunpack.c.l.b16 %v231_v27  ;;  %v4145_v29 = vpack.c.bf16 %v227_v26, %v227_v26 }
  0x93   :  { %v235_v30 = vpack.c.b16 %v234_v28, %v234_v28  ;;  %v283_v35 = vunpack.c.l.b16 %v4145_v29  ;;  %v4218_v20 = vpop.f32.mrf.mxu0 }
  0x94   :  { %v214_v31 = vpop.f32.mrf.mxu3 }
  0x95   :  { %v4147_v32 = vadd.f32 %v214_v31, %v187_v23  ;;  %336 = vrot.lane.b32.xlu0 %v235_v30, %s4013_s29  ;;  %287 = vrot.lane.b32.xlu2 %v235_v30, %s4014_s30  ;;  %v284_v46 = vpack.c.b16 %v283_v35, %v283_v35 }
  0x96   :  { %236 = vrot.lane.b32.xlu1 %v235_v30, %s4015_s12  ;;  %3505 = vmatmul.msk.bf16.gmra.mxu1 %vm79_vm0, %v57_v60 }
  0x97   :  { %v228_v33 = vmul.f32 0.35355338, %v4147_v32  ;;  %v232_v34 = vpack.c.bf16 %v4147_v32, %v4147_v32 }
  0x99   :  { %v259_v42 = vunpack.c.l.b16 %v232_v34  ;;  %v230_v43 = vpack.c.bf16 %v228_v33, %v228_v33  ;;  %v4233_v33 = vpop.f32.mrf.mxu2 }
  0x9b   :  { %v260_v45 = vpack.c.b16 %v259_v42, %v259_v42  ;;  %v309_v47 = vunpack.c.l.b16 %v230_v43  ;;  %v4220_v21 = vpop.f32.mrf.mxu0 }
  0x9d   :  { %285 = vrot.lane.b32.xlu2 %v284_v46, %s4016_s21  ;;  %v310_v49 = vpack.c.b16 %v309_v47, %v309_v47 }
  0x9e   :  { %261 = vrot.lane.b32.xlu1 %v260_v45, %s4015_s12 }
  0x9f   :  { %311 = vrot.lane.b32.xlu0 %v310_v49, %s4016_s21 }
  0xa3   :  { %v4224_v24 = vpop.f32.mrf.mxu0 }
  0xa5   :  { %313 = vrot.lane.b32.xlu2 %v260_v45, %s4014_s30 }
  0xa6   :  { %359 = vrot.lane.b32.xlu1 %v260_v45, %s4013_s29 }
  0xa7   :  { %382 = vrot.lane.b32.xlu0 %v235_v30, %s4017_s15 }
  0xad   :  { %380 = vrot.lane.b32.xlu2 %v284_v46, %s4018_s1 }
  0xae   :  { %334 = vrot.lane.b32.xlu1 %v284_v46, %s4019_s16 }
  0xaf   :  { %403 = vrot.lane.b32.xlu0 %v310_v49, %s4018_s1 }
  0xb5   :  { %357 = vrot.lane.b32.xlu2 %v310_v49, %s4019_s16 }
  0xb6   :  { %405 = vrot.lane.b32.xlu1 %v260_v45, %s4017_s15 }
  0xb7   :  { %219 = vrot.lane.b32.xlu0 %v4192_v59, %s4012_s22 }
  0xef   :  { %v288_v61 = vpop.permute.xlu2 %287 }
  0xf0   :  { %v293_v62 = vsel %vm238_vm1, %v288_v61, 0 }
  0xf1   :  { %302 = vmatpush.bf16.xpose.msrb.mxu0 %v293_v62 }
  0xf7   :  { %v286_v63 = vpop.permute.xlu2 %285 }
  0xf8   :  { %3526 = vmatmul.msk.bf16.vlgmr.msrb.gmra.mxu0 %vm238_vm1, %v286_v63 }
  0xff   :  { %v314_v0 = vpop.permute.xlu2 %313 }
 0x100   :  { %v319_v1 = vsel %vm238_vm1, %v314_v0, 0 }
 0x101   :  { %328 = vmatpush.bf16.xpose.msrb.mxu1 %v319_v1 }
 0x102   :  { %v4222_v23 = vpop.f32.mrf.mxu1 }
 0x107   :  { %v337_v2 = vpop.permute.xlu0 %336  ;;  %v381_v13 = vpop.permute.xlu2 %380 }
 0x108   :  { %v342_v3 = vsel %vm238_vm1, %v337_v2, 0  ;;  %v237_v4 = vpop.permute.xlu1 %236 }
 0x109   :  { %v243_v5 = vsel %vm238_vm1, %v237_v4, 0 }
 0x10a   :  { %252 = vmatpush.bf16.xpose.msrb.mxu2 %v243_v5  ;;  %v4226_v26 = vpop.f32.mrf.mxu1 }
 0x10f   :  { %v358_v15 = vpop.permute.xlu2 %357 }
 0x110   :  { %v262_v6 = vpop.permute.xlu1 %261 }
 0x111   :  { %3524 = vmatmul.msk.bf16.vlgmr.msrb.gmra.mxu2 %vm238_vm1, %v4145_v29  ;;  %v312_v7 = vpop.permute.xlu0 %311  ;;  %v267_v8 = vsel %vm238_vm1, %v262_v6, 0 }
 0x112   :  { %351 = vmatpush.bf16.xpose.msra.mxu2 %v342_v3  ;;  %276 = vmatpush.bf16.xpose.msrb.mxu3 %v267_v8 }
 0x113   :  { %3527 = vmatmul.msk.bf16.vlgmr.msrb.gmra.mxu1 %vm238_vm1, %v312_v7  ;;  %v4229_v29 = vpop.f32.mrf.mxu1 }
 0x118   :  { %v360_v9 = vpop.permute.xlu1 %359 }
 0x119   :  { %v365_v10 = vsel %vm238_vm1, %v360_v9, 0  ;;  %3525 = vmatmul.msk.bf16.vlgmr.msrb.gmra.mxu3 %vm238_vm1, %v230_v43  ;;  %v383_v11 = vpop.permute.xlu0 %382 }
 0x11a   :  { %v388_v12 = vsel %vm238_vm1, %v383_v11, 0  ;;  %374 = vmatpush.bf16.xpose.msra.mxu3 %v365_v10 }
 0x11b   :  { %397 = vmatpush.bf16.xpose.msra.mxu0 %v388_v12  ;;  %v4231_v31 = vpop.f32.mrf.mxu1 }
 0x120   :  { %v335_v14 = vpop.permute.xlu1 %334 }
 0x121   :  { %3528 = vmatmul.msk.bf16.vlgmr.msra.gmra.mxu2 %vm238_vm1, %v335_v14  ;;  %v404_v18 = vpop.permute.xlu0 %403 }
 0x122   :  { %3530 = vmatmul.msk.bf16.vlgmr.msra.gmra.mxu0 %vm238_vm1, %v381_v13 }
 0x128   :  { %v406_v16 = vpop.permute.xlu1 %405 }
 0x129   :  { %v411_v17 = vsel %vm238_vm1, %v406_v16, 0  ;;  %3529 = vmatmul.msk.bf16.vlgmr.msra.gmra.mxu3 %vm238_vm1, %v358_v15  ;;  %v220_v50 = vpop.permute.xlu0 %219 }
 0x12a   :  { %420 = vmatpush.bf16.xpose.msra.mxu1 %v411_v17  ;;  %v225_v52 = vsub.f32 %v4140_v25, %v220_v50 }
 0x12c   :  { %v620_v53 = vpack.c.bf16 %v225_v52, %v225_v52 }
 0x12e   :  { %v623_v56 = vunpack.c.l.b16 %v620_v53 }
 0x130   :  { %v4248_v57 = vpack.c.b16 %v623_v56, %v623_v56 }
 0x131   :  { %3531 = vmatmul.msk.bf16.vlgmr.msra.gmra.mxu1 %vm238_vm1, %v404_v18 }
 0x175   :  { %v304_v27 = vpop.f32.mrf.mxu0 }
 0x176   :  { %v432_v28 = vsel %vm238_vm1, %v304_v27, -inf }
 0x177   :  { %433 = vmax.xlane.f32.xlu0 %v432_v28 }
 0x17d   :  { %v306_v30 = vpop.f32.mrf.mxu0 }
 0x190   :  { %v330_v34 = vpop.f32.mrf.mxu1 }
 0x191   :  { %v435_v35 = vsel %vm238_vm1, %v330_v34, -inf }
 0x192   :  { %436 = vmax.xlane.f32.xlu2 %v435_v35 }
 0x194   :  { %v4236_v36 = vpop.f32.mrf.mxu2 }
 0x195   :  { %v426_v37 = vsel %vm238_vm1, %v4236_v36, -inf }
 0x196   :  { %427 = vmax.xlane.f32.xlu1 %v426_v37 }
 0x198   :  { %v332_v38 = vpop.f32.mrf.mxu1 }
 0x19c   :  { %v256_v39 = vpop.f32.mrf.mxu2  ;;  %v278_v40 = vpop.f32.mrf.mxu3 }
 0x19d   :  { %v429_v41 = vsel %vm238_vm1, %v278_v40, -inf }
 0x19e   :  { %430 = vmax.xlane.f32.xlu2 %v429_v41 }
 0x19f   :  { %v399_v42 = vpop.f32.mrf.mxu0 }
 0x1a0   :  { %v444_v45 = vsel %vm238_vm1, %v399_v42, -inf }
 0x1a4   :  { %v280_v43 = vpop.f32.mrf.mxu3  ;;  %v353_v44 = vpop.f32.mrf.mxu2 }
 0x1a5   :  { %v438_v46 = vsel %vm238_vm1, %v353_v44, -inf }
 0x1a6   :  { %445 = vmax.xlane.f32.xlu2 %v444_v45  ;;  %439 = vmax.xlane.f32.xlu1 %v438_v46 }
 0x1a7   :  { %v401_v47 = vpop.f32.mrf.mxu0 }
 0x1ac   :  { %v355_v48 = vpop.f32.mrf.mxu2  ;;  %v4243_v49 = vpop.f32.mrf.mxu3 }
 0x1ad   :  { %v441_v63 = vsel %vm238_vm1, %v4243_v49, -inf }
 0x1ae   :  { %v4245_v51 = vpop.f32.mrf.mxu1 }
 0x1af   :  { %v447_v25 = vsel %vm238_vm1, %v4245_v51, -inf }
 0x1b4   :  { %v378_v54 = vpop.f32.mrf.mxu3 }
 0x1b6   :  { %v424_v55 = vpop.f32.mrf.mxu1 }
 0x1be   :  { %625 = vrot.lane.b32.xlu2 %v4248_v57, %s4012_s22 }
 0x1bf   :  { %221 = vrot.lane.b32.xlu1 %v4233_v33, %s4012_s22 }
 0x1c6   :  { %673 = vrot.lane.b32.xlu2 %v4248_v57, %s4020_s3 }
 0x1ea   :  { %v434_v58 = vpop.xlane.xlu0 %433 }
 0x1eb   :  { %v452_v60 = vsub.f32 %v304_v27, %v434_v58 }
 0x1ed   :  { %v462_v61 = vmul.f32 1.442695, %v452_v60 }
 0x1ef   :  { %3842 = vpow2.f32 %v462_v61  ;;  %448 = vmax.xlane.f32.xlu2 %v447_v25 }
 0x1f5   :  { %v4258_v62 = vpop.eup %3842 }
 0x1f6   :  { %v480_v0 = vsel %vm238_vm1, %v4258_v62, 0.0 }
 0x1f7   :  { %442 = vmax.xlane.f32.xlu2 %v441_v63  ;;  %481 = vadd.xlane.f32.xlu1 %v480_v0 }
 0x205   :  { %v437_v1 = vpop.xlane.xlu2 %436 }
 0x206   :  { %v453_v2 = vsub.f32 %v330_v34, %v437_v1 }
 0x208   :  { %v464_v3 = vmul.f32 1.442695, %v453_v2 }
 0x209   :  { %v428_v6 = vpop.xlane.xlu1 %427 }
 0x20a   :  { %3844 = vpow2.f32 %v464_v3 }
 0x210   :  { %v4264_v4 = vpop.eup %3844 }
 0x211   :  { %v483_v5 = vsel %vm238_vm1, %v4264_v4, 0.0  ;;  %v431_v7 = vpop.xlane.xlu2 %430 }
 0x212   :  { %484 = vadd.xlane.f32.xlu2 %v483_v5  ;;  %v451_v8 = vsub.f32 %v278_v40, %v431_v7 }
 0x214   :  { %v460_v9 = vmul.f32 1.442695, %v451_v8 }
 0x216   :  { %3846 = vpow2.f32 %v460_v9 }
 0x219   :  { %v446_v10 = vpop.xlane.xlu2 %445  ;;  %v440_v11 = vpop.xlane.xlu1 %439 }
 0x21a   :  { %v456_v12 = vsub.f32 %v399_v42, %v446_v10  ;;  %v454_v13 = vsub.f32 %v353_v44, %v440_v11  ;;  %v450_v44 = vsub.f32 %v4236_v36, %v428_v6 }
 0x21c   :  { %v4268_v14 = vpop.eup %3846  ;;  %v470_v15 = vmul.f32 1.442695, %v456_v12  ;;  %v466_v16 = vmul.f32 1.442695, %v454_v13  ;;  %v458_v45 = vmul.f32 1.442695, %v450_v44 }
 0x21d   :  { %v477_v17 = vsel %vm238_vm1, %v4268_v14, 0.0 }
 0x21e   :  { %3848 = vpow2.f32 %v470_v15  ;;  %478 = vadd.xlane.f32.xlu2 %v477_v17 }
 0x21f   :  { %3850 = vpow2.f32 %v466_v16 }
 0x220   :  { %3852 = vpow2.f32 %v458_v45 }
 0x221   :  { %v626_v18 = vpop.permute.xlu2 %625 }
 0x222   :  { %v632_v27 = vsel %vm630_vm2, %v626_v18, 0 }
 0x223   :  { %641 = vmatpush.bf16.msrb.mxu2 %v632_v27 }
 0x224   :  { %v4273_v28 = vpop.eup %3848 }
 0x225   :  { %v4275_v30 = vpop.eup %3850  ;;  %v492_v34 = vsel %vm238_vm1, %v4273_v28, 0.0 }
 0x226   :  { %493 = vadd.xlane.f32.xlu1 %v492_v34  ;;  %v486_v35 = vsel %vm238_vm1, %v4275_v30, 0.0 }
 0x227   :  { %487 = vadd.xlane.f32.xlu2 %v486_v35 }
 0x229   :  { %v674_v37 = vpop.permute.xlu2 %673 }
 0x22a   :  { %v679_v38 = vsel %vm630_vm2, %v674_v37, 0 }
 0x22b   :  { %688 = vmatpush.bf16.msrb.mxu0 %v679_v38 }
 0x231   :  { %v222_v39 = vpop.permute.xlu1 %221 }
 0x232   :  { %v226_v40 = vsub.f32 %v4147_v32, %v222_v39  ;;  %v4288_v32 = vpop.eup %3852 }
 0x233   :  { %v474_v54 = vsel %vm238_vm1, %v4288_v32, 0.0 }
 0x234   :  { %v621_v41 = vpack.c.bf16 %v226_v40, %v226_v40 }
 0x236   :  { %v648_v42 = vunpack.c.l.b16 %v621_v41 }
 0x238   :  { %v649_v43 = vpack.c.b16 %v648_v42, %v648_v42 }
 0x23a   :  { %650 = vrot.lane.b32.xlu0 %v649_v43, %s4012_s22 }
 0x23f   :  { %738 = vrot.lane.b32.xlu2 %v649_v43, %s4021_s17 }
 0x242   :  { %694 = vrot.lane.b32.xlu0 %v649_v43, %s4020_s3 }
 0x262   :  { %v449_v46 = vpop.xlane.xlu2 %448 }
 0x263   :  { %v457_v47 = vsub.f32 %v4245_v51, %v449_v46 }
 0x265   :  { %v472_v48 = vmul.f32 1.442695, %v457_v47 }
 0x267   :  { %3854 = vpow2.f32 %v472_v48 }
 0x26a   :  { %v443_v50 = vpop.xlane.xlu2 %442  ;;  %v482_v52 = vpop.xlane.xlu1 %481 }
 0x26b   :  { %v455_v53 = vsub.f32 %v4243_v49, %v443_v50  ;;  %3856 = vrcp.f32 %v482_v52  ;;  %v539_v25 = vand.u32 2147483648, %v482_v52  ;;  %v537_v63 = vand.u32 2147483647, %v482_v52 }
 0x26c   :  { %475 = vadd.xlane.f32.xlu0 %v474_v54  ;;  %vm533_vm4 = vweird.f32 %v482_v52 }
 0x26d   :  { %v4293_v55 = vpop.eup %3854  ;;  %v468_v36 = vmul.f32 1.442695, %v455_v53  ;;  %v540_v2 = vor.u32 1.1754944e-38, %v539_v25  ;;  %vm538_vm6 = vcmp.eq.f32.partialorder %v537_v63, 8.507059e+37 }
 0x26e   :  { %v495_v56 = vsel %vm238_vm1, %v4293_v55, 0.0 }
 0x26f   :  { %3858 = vpow2.f32 %v468_v36  ;;  %496 = vadd.xlane.f32.xlu1 %v495_v56 }
 0x271   :  { %v3857_v51 = vpop.eup %3856 }
 0x272   :  { %v529_v58 = vmul.f32 %v3857_v51, %v482_v52  ;;  %vm534_vm3 = vweird.f32 %v3857_v51 }
 0x273   :  { %vm535_vm5 = vmor %vm533_vm4, %vm534_vm3 }
 0x274   :  { %v530_v60 = vsub.f32 1.0, %v529_v58 }
 0x275   :  { %v4297_v61 = vpop.eup %3858 }
 0x276   :  { %v531_v49 = vmul.f32 %v3857_v51, %v530_v60  ;;  %v489_v0 = vsel %vm238_vm1, %v4297_v61, 0.0 }
 0x277   :  { %490 = vadd.xlane.f32.xlu2 %v489_v0 }
 0x278   :  { %v532_v1 = vadd.f32 %v3857_v51, %v531_v49 }
 0x27a   :  { %v536_v3 = vsel %vm535_vm5, %v3857_v51, %v532_v1  ;;  %v64_v51 = vld [vmem:[%s5189_s8 + $0x20] sm:$0x1]  ;;  %s4023_s8 = smov 8  }
 0x27b   :  { %v541_v5 = vsel %vm538_vm6, %v540_v2, %v536_v3  ;;  %v65_v58 = vunpack.c.l.bf16 %v64_v51 }
 0x27c   :  { %v542_v6 = vmul.f32 %v4258_v62, %v541_v5 }
 0x27d   :  { %v4320_v25 = vperm.slane %v65_v58, 0 }
 0x27e   :  { %v671_v7 = vpack.c.bf16 %v542_v6, %v542_v6 }
 0x27f   :  { %v98_v63 = vadd.f32 %v4218_v20, %v4320_v25  ;;  %v101_v5 = vadd.f32 %v4220_v21, %v4320_v25 }
 0x280   :  { %761 = vrot.lane.b32.xlu0 %v4248_v57, %s4022_s18  ;;  %3534 = vmatmul.msk.bf16.vlgmr.msrb.gmra.mxu0 %vm238_vm1, %v671_v7 }
 0x281   :  { %v966_v3 = vpack.c.bf16 %v98_v63, %v98_v63 }
 0x283   :  { %v972_v20 = vunpack.c.l.b16 %v966_v3 }
 0x285   :  { %v485_v8 = vpop.xlane.xlu2 %484 }
 0x286   :  { %v554_v40 = vand.u32 2147483648, %v485_v8  ;;  %vm548_vm12 = vweird.f32 %v485_v8  ;;  %v552_v41 = vand.u32 2147483647, %v485_v8 }
 0x288   :  { %717 = vrot.lane.b32.xlu1 %v4248_v57, %s4021_s17  ;;  %v555_v47 = vor.u32 1.1754944e-38, %v554_v40  ;;  %vm553_vm14 = vcmp.eq.f32.partialorder %v552_v41, 8.507059e+37 }
 0x28f   :  { %782 = vrot.lane.b32.xlu2 %v649_v43, %s4022_s18 }
 0x291   :  { %v479_v9 = vpop.xlane.xlu2 %478 }
 0x292   :  { %3860 = vrcp.f32 %v479_v9  ;;  %v524_v27 = vand.u32 2147483648, %v479_v9  ;;  %vm518_vm8 = vweird.f32 %v479_v9  ;;  %v522_v57 = vand.u32 2147483647, %v479_v9 }
 0x293   :  { %3862 = vrcp.f32 %v485_v8 }
 0x294   :  { %v525_v37 = vor.u32 1.1754944e-38, %v524_v27  ;;  %vm523_vm10 = vcmp.eq.f32.partialorder %v522_v57, 8.507059e+37 }
 0x298   :  { %v3861_v10 = vpop.eup %3860 }
 0x299   :  { %v514_v11 = vmul.f32 %v3861_v10, %v479_v9  ;;  %v3863_v12 = vpop.eup %3862  ;;  %vm519_vm7 = vweird.f32 %v3861_v10  ;;  %v494_v56 = vpop.xlane.xlu1 %493 }
 0x29a   :  { %v544_v13 = vmul.f32 %v3863_v12, %v485_v8  ;;  %v4308_v18 = vpop.xlane.xlu2 %487  ;;  %vm520_vm9 = vmor %vm518_vm8, %vm519_vm7  ;;  %vm549_vm11 = vweird.f32 %v3863_v12  ;;  %3864 = vrcp.f32 %v494_v56  ;;  %v103_v8 = vadd.f32 %v4224_v24, %v4320_v25 }
 0x29b   :  { %v515_v62 = vsub.f32 1.0, %v514_v11  ;;  %vm550_vm13 = vmor %vm548_vm12, %vm549_vm11  ;;  %3866 = vrcp.f32 %v4308_v18  ;;  %vm593_vm3 = vweird.f32 %v494_v56 }
 0x29c   :  { %v545_v16 = vsub.f32 1.0, %v544_v13 }
 0x29d   :  { %v516_v15 = vmul.f32 %v3861_v10, %v515_v62  ;;  %v599_v62 = vand.u32 2147483648, %v494_v56 }
 0x29e   :  { %v546_v34 = vmul.f32 %v3863_v12, %v545_v16  ;;  %v597_v16 = vand.u32 2147483647, %v494_v56 }
 0x29f   :  { %v517_v17 = vadd.f32 %v3861_v10, %v516_v15  ;;  %v968_v15 = vpack.c.bf16 %v103_v8, %v103_v8 }
 0x2a0   :  { %v547_v39 = vadd.f32 %v3863_v12, %v546_v34  ;;  %v3865_v60 = vpop.eup %3864  ;;  %vm598_vm6 = vcmp.eq.f32.partialorder %v597_v16, 8.507059e+37 }
 0x2a1   :  { %v521_v35 = vsel %vm520_vm9, %v3861_v10, %v517_v17  ;;  %v589_v49 = vmul.f32 %v3865_v60, %v494_v56  ;;  %v967_v10 = vpack.c.bf16 %v101_v5, %v101_v5  ;;  %vm594_vm15 = vweird.f32 %v3865_v60 }
 0x2a2   :  { %v526_v38 = vsel %vm523_vm10, %v525_v37, %v521_v35  ;;  %v739_v42 = vpop.permute.xlu2 %738  ;;  %v551_v45 = vsel %vm550_vm13, %v3863_v12, %v547_v39  ;;  %vm4337_vm4 = vmor %vm593_vm3, %vm594_vm15  ;;  %v600_v37 = vor.u32 1.1754944e-38, %v599_v62  ;;  %vm563_vm3 = vweird.f32 %v4308_v18 }
 0x2a3   :  { %v527_v43 = vmul.f32 %v4268_v14, %v526_v38  ;;  %v744_v48 = vsel %vm630_vm2, %v739_v42, 0  ;;  %v556_v52 = vsel %vm553_vm14, %v555_v47, %v551_v45  ;;  %v590_v0 = vsub.f32 1.0, %v589_v49 }
 0x2a4   :  { %v557_v53 = vmul.f32 %v4264_v4, %v556_v52  ;;  %v96_v4 = vadd.f32 %v4216_v19, %v4320_v25  ;;  %v4331_v19 = vpop.eup %3866  ;;  %v995_v24 = vunpack.c.l.b16 %v967_v10 }
 0x2a5   :  { %v619_v50 = vpack.c.bf16 %v527_v43, %v527_v43  ;;  %v591_v6 = vmul.f32 %v3865_v60, %v590_v0  ;;  %v559_v21 = vmul.f32 %v4331_v19, %v4308_v18  ;;  %v996_v43 = vunpack.c.l.b16 %v968_v15 }
 0x2a6   :  { %v672_v36 = vpack.c.bf16 %v557_v53, %v557_v53  ;;  %v965_v2 = vpack.c.bf16 %v96_v4, %v96_v4  ;;  %vm564_vm14 = vweird.f32 %v4331_v19 }
 0x2a7   :  { %v592_v12 = vadd.f32 %v3865_v60, %v591_v6 }
 0x2a8   :  { %v971_v9 = vunpack.c.l.b16 %v965_v2 }
 0x2a9   :  { %v596_v35 = vsel %vm4337_vm4, %v3865_v60, %v592_v12  ;;  %vm4368_vm4 = vmor %vm563_vm3, %vm564_vm14 }
 0x2aa   :  { %v4335_v27 = vpack.c.b16 %v972_v20, %v971_v9  ;;  %v569_v9 = vand.u32 2147483648, %v4308_v18 }
 0x2ac   :  { %v651_v44 = vpop.permute.xlu0 %650  ;;  %v978_v3 = vsel %vm238_vm1, %v4335_v27, 0  ;;  %v570_v57 = vor.u32 1.1754944e-38, %v569_v9 }
 0x2ad   :  { %v656_v46 = vsel %vm630_vm2, %v651_v44, 0  ;;  %v560_v44 = vsub.f32 1.0, %v559_v21  ;;  %v4004_v21 = vld [vmem:[%s5187_s0] sm:$0xff] }
 0x2ae   :  { %665 = vmatpush.bf16.msrb.mxu3 %v656_v46 }
 0x2af   :  { %v561_v58 = vmul.f32 %v4331_v19, %v560_v44 }
 0x2b1   :  { %3533 = vmatmul.msk.bf16.vlgmr.msrb.gmra.mxu3 %vm238_vm1, %v619_v50  ;;  %v562_v10 = vadd.f32 %v4331_v19, %v561_v58 }
 0x2b2   :  { %753 = vmatpush.bf16.msra.mxu3 %v744_v48  ;;  %v601_v48 = vsel %vm598_vm6, %v600_v37, %v596_v35 }
 0x2b3   :  { %v602_v4 = vmul.f32 %v4273_v28, %v601_v48 }
 0x2b4   :  { %v695_v54 = vpop.permute.xlu0 %694 }
 0x2b5   :  { %v700_v14 = vsel %vm630_vm2, %v695_v54, 0  ;;  %v759_v12 = vpack.c.bf16 %v602_v4, %v602_v4  ;;  %v3739_v4 = vld [vmem:[%s5193_s5 + $0x18] sm:$0xff] }
 0x2b6   :  { %709 = vmatpush.bf16.msrb.mxu1 %v700_v14  ;;  %v4346_v14 = vpack.c.b16 %v996_v43, %v995_v24 }
 0x2b8   :  { %v1002_v28 = vsel %vm238_vm1, %v4346_v14, 0 }
 0x2b9   :  { %3535 = vmatmul.msk.bf16.vlgmr.msrb.gmra.mxu1 %vm238_vm1, %v672_v36 }
 0x2df   :  { %v476_v1 = vpop.xlane.xlu0 %475 }
 0x2e0   :  { %3868 = vrcp.f32 %v476_v1  ;;  %v509_v38 = vand.u32 2147483648, %v476_v1  ;;  %v507_v42 = vand.u32 2147483647, %v476_v1  ;;  %vm503_vm7 = vweird.f32 %v476_v1 }
 0x2e2   :  { %v497_v7 = vpop.xlane.xlu1 %496  ;;  %v510_v50 = vor.u32 1.1754944e-38, %v509_v38  ;;  %vm508_vm10 = vcmp.eq.f32.partialorder %v507_v42, 8.507059e+37 }
 0x2e3   :  { %3870 = vrcp.f32 %v497_v7  ;;  %v614_v47 = vand.u32 2147483648, %v497_v7  ;;  %v612_v53 = vand.u32 2147483647, %v497_v7  ;;  %vm608_vm11 = vweird.f32 %v497_v7 }
 0x2e5   :  { %v615_v60 = vor.u32 1.1754944e-38, %v614_v47  ;;  %vm613_vm13 = vcmp.eq.f32.partialorder %v612_v53, 8.507059e+37 }
 0x2e6   :  { %v3869_v11 = vpop.eup %3868 }
 0x2e7   :  { %v499_v13 = vmul.f32 %v3869_v11, %v476_v1  ;;  %vm504_vm5 = vweird.f32 %v3869_v11 }
 0x2e8   :  { %vm505_vm8 = vmor %vm503_vm7, %vm504_vm5 }
 0x2e9   :  { %v3871_v17 = vpop.eup %3870  ;;  %v500_v34 = vsub.f32 1.0, %v499_v13 }
 0x2ea   :  { %v604_v39 = vmul.f32 %v3871_v17, %v497_v7  ;;  %v4343_v40 = vpop.xlane.xlu2 %490  ;;  %vm609_vm9 = vweird.f32 %v3871_v17 }
 0x2eb   :  { %v501_v41 = vmul.f32 %v3869_v11, %v500_v34  ;;  %3872 = vrcp.f32 %v4343_v40  ;;  %vm610_vm12 = vmor %vm608_vm11, %vm609_vm9  ;;  %v582_v13 = vand.u32 2147483647, %v4343_v40  ;;  %vm578_vm5 = vweird.f32 %v4343_v40 }
 0x2ec   :  { %v605_v45 = vsub.f32 1.0, %v604_v39  ;;  %vm829_vm9 = vcmask 130048  }
 0x2ed   :  { %v502_v46 = vadd.f32 %v3869_v11, %v501_v41  ;;  %vm583_vm7 = vcmp.eq.f32.partialorder %v582_v13, 8.507059e+37 }
 0x2ee   :  { %v606_v52 = vmul.f32 %v3871_v17, %v605_v45 }
 0x2ef   :  { %v506_v54 = vsel %vm505_vm8, %v3869_v11, %v502_v46  ;;  %v584_v11 = vand.u32 2147483648, %v4343_v40 }
 0x2f0   :  { %v607_v36 = vadd.f32 %v3871_v17, %v606_v52  ;;  %v511_v56 = vsel %vm508_vm10, %v510_v50, %v506_v54  ;;  %vm832_vm10 = vcmask 195584  }
 0x2f1   :  { %v3873_v51 = vpop.eup %3872  ;;  %v512_v49 = vmul.f32 %v4288_v32, %v511_v56  ;;  %v585_v24 = vor.u32 1.1754944e-38, %v584_v11 }
 0x2f2   :  { %v611_v63 = vsel %vm610_vm12, %v3871_v17, %v607_v36  ;;  %v574_v0 = vmul.f32 %v3873_v51, %v4343_v40  ;;  %v783_v1 = vpop.permute.xlu2 %782  ;;  %v762_v2 = vpop.permute.xlu0 %761  ;;  %vm579_vm15 = vweird.f32 %v3873_v51  ;;  %v566_v17 = vsel %vm4368_vm4, %v4331_v19, %v562_v10 }
 0x2f3   :  { %v788_v5 = vsel %vm630_vm2, %v783_v1, 0  ;;  %v767_v6 = vsel %vm630_vm2, %v762_v2, 0  ;;  %v618_v7 = vpack.c.bf16 %v512_v49, %v512_v49  ;;  %v616_v8 = vsel %vm613_vm13, %v615_v60, %v611_v63  ;;  %vm580_vm6 = vmor %vm578_vm5, %vm579_vm15  ;;  %v3738_v63 = vld [vmem:[%s5193_s5 + $0x10] sm:$0xff] }
 0x2f4   :  { %v575_v32 = vsub.f32 1.0, %v574_v0  ;;  %776 = vmatpush.bf16.msra.mxu0 %v767_v6  ;;  %797 = vmatpush.bf16.msra.mxu1 %v788_v5  ;;  %v617_v20 = vmul.f32 %v4293_v55, %v616_v8  ;;  %v567_v55 = vand.u32 2147483647, %v4308_v18  ;;  %v4392_v0 = vperm.slane %v4137_v22, 1 }
 0x2f5   :  { %3532 = vmatmul.msk.bf16.vlgmr.msrb.gmra.mxu2 %vm238_vm1, %v618_v7 }
 0x2f6   :  { %v576_v62 = vmul.f32 %v3873_v51, %v575_v32  ;;  %v760_v15 = vpack.c.bf16 %v617_v20, %v617_v20  ;;  %vm568_vm8 = vcmp.eq.f32.partialorder %v567_v55, 8.507059e+37  ;;  %850 = vrot.lane.b32.xlu1 %v4392_v0, %s4015_s12 }
 0x2f7   :  { %3538 = vmatmul.msk.bf16.vlgmr.msra.gmra.mxu0 %vm238_vm1, %v759_v12  ;;  %v571_v39 = vsel %vm568_vm8, %v570_v57, %v566_v17 }
 0x2f8   :  { %987 = vmatpush.bf16.xpose.msrb.mxu0 %v978_v3  ;;  %1011 = vmatpush.bf16.xpose.msrb.mxu1 %v1002_v28  ;;  %v577_v16 = vadd.f32 %v3873_v51, %v576_v62  ;;  %v572_v42 = vmul.f32 %v4275_v30, %v571_v39 }
 0x2f9   :  { %3539 = vmatmul.msk.bf16.vlgmr.msra.gmra.mxu1 %vm238_vm1, %v760_v15 }
 0x2fa   :  { %v581_v34 = vsel %vm580_vm6, %v3873_v51, %v577_v16  ;;  %v718_v18 = vpop.permute.xlu1 %717  ;;  %v715_v19 = vpack.c.bf16 %v572_v42, %v572_v42 }
 0x2fb   :  { %v723_v35 = vsel %vm630_vm2, %v718_v18, 0  ;;  %v586_v37 = vsel %vm583_vm7, %v585_v24, %v581_v34  ;;  %v4005_v34 = vld [vmem:[%s5187_s0 + $0x8] sm:$0xff] }
 0x2fc   :  { %732 = vmatpush.bf16.msra.mxu2 %v723_v35  ;;  %v587_v38 = vmul.f32 %v4297_v61, %v586_v37  ;;  %v4026_v37 = vmov 32.0  }
 0x2fd   :  { %v690_v40 = vpop.f32.mrf.mxu0  ;;  %3874 = vrcp.f32 %v4026_v37  ;;  %v4007_v37 = vld [vmem:[%s5188_s2] sm:$0xff] }
 0x2fe   :  { %v716_v41 = vpack.c.bf16 %v587_v38, %v587_v38 }
 0x300   :  { %3537 = vmatmul.msk.bf16.vlgmr.msra.gmra.mxu3 %vm238_vm1, %v716_v41  ;;  %862 = vmatpush.bf16.msrb.mxu2 %v3739_v4 }
 0x303   :  { %v3875_v38 = vpop.eup %3874 }
 0x304   :  { %863 = vmatpush.bf16.msrb.mxu2 %v3738_v63  ;;  %v879_v39 = vmul.f32 32.0, %v3875_v38  ;;  %vm883_vm11 = vweird.f32 %v3875_v38 }
 0x305   :  { %3536 = vmatmul.msk.bf16.vlgmr.msra.gmra.mxu2 %vm238_vm1, %v715_v19  ;;  %v692_v43 = vpop.f32.mrf.mxu0 }
 0x334   :  { %v667_v44 = vpop.f32.mrf.mxu3 }
 0x336   :  { %v711_v45 = vpop.f32.mrf.mxu1 }
 0x337   :  { %v3780_v46 = vpack.i.bf16 %v711_v45, %v690_v40  ;;  %v880_v40 = vsub.f32 1.0, %v879_v39  ;;  %v4008_v39 = vld [vmem:[%s5188_s2 + $0x8] sm:$0xff] }
 0x339   :  { %3781 = vrot.lane.b32.xlu0 %v3780_v46, %s4023_s8  ;;  %v881_v41 = vmul.f32 %v3875_v38, %v880_v40 }
 0x33b   :  { %v882_v42 = vadd.f32 %v3875_v38, %v881_v41 }
 0x33c   :  { %v669_v47 = vpop.f32.mrf.mxu3 }
 0x33d   :  { %v4413_v19 = vsel %vm883_vm11, %v3875_v38, %v882_v42 }
 0x33e   :  { %v713_v48 = vpop.f32.mrf.mxu1 }
 0x368   :  { %v851_v13 = vpop.permute.xlu1 %850 }
 0x374   :  { %v778_v61 = vpop.f32.mrf.mxu0 }
 0x376   :  { %v799_v50 = vpop.f32.mrf.mxu1 }
 0x377   :  { %v3790_v52 = vpack.i.bf16 %v799_v50, %v778_v61 }
 0x378   :  { %v643_v30 = vpop.f32.mrf.mxu2 }
 0x379   :  { %3791 = vrot.lane.b32.xlu0 %v3790_v52, %s4024_s23 }
 0x37c   :  { %v780_v53 = vpop.f32.mrf.mxu0 }
 0x37e   :  { %v801_v54 = vpop.f32.mrf.mxu1 }
 0x380   :  { %v645_v36 = vpop.f32.mrf.mxu2 }
 0x381   :  { %v3737_v36 = vld [vmem:[%s5193_s5 + $0x8] sm:$0xff] }
 0x382   :  { %953 = vmatpush.bf16.msrb.mxu3 %v3737_v36 }
 0x383   :  { %v755_v56 = vpop.f32.mrf.mxu3 }
 0x388   :  { %v734_v51 = vpop.f32.mrf.mxu2 }
 0x389   :  { %v3785_v58 = vpack.i.bf16 %v755_v56, %v734_v51  ;;  %v3736_v56 = vld [vmem:[%s5193_s5] sm:$0xff] }
 0x38a   :  { %954 = vmatpush.bf16.msrb.mxu3 %v3736_v56 }
 0x38b   :  { %v757_v60 = vpop.f32.mrf.mxu3  ;;  %3786 = vrot.lane.b32.xlu2 %v3785_v58, %s4025_s24 }
 0x390   :  { %v736_v49 = vpop.f32.mrf.mxu2 }
 0x3ab   :  { %v3782_v1 = vpop.permute.xlu0 %3781 }
 0x3ac   :  { %v3784_v3 = vunpack.i.h.bf16 %v3782_v1  ;;  %v3783_v5 = vunpack.i.l.bf16 %v3782_v1 }
 0x3ae   :  { %v828_v9 = vsel %vm238_vm1, %v667_v44, %v3784_v3  ;;  %v827_v32 = vsel %vm238_vm1, %v643_v30, %v3783_v5 }
 0x3e5   :  { %v3787_v2 = vpop.permute.xlu2 %3786 }
 0x3e6   :  { %v3789_v6 = vunpack.i.h.bf16 %v3787_v2  ;;  %v3788_v7 = vunpack.i.l.bf16 %v3787_v2 }
 0x3e8   :  { %v831_v22 = vsel %vm829_vm9, %v828_v9, %v3789_v6  ;;  %v830_v10 = vsel %vm829_vm9, %v827_v32, %v3788_v7 }
 0x3eb   :  { %v3792_v8 = vpop.permute.xlu0 %3791 }
 0x3ec   :  { %v3794_v28 = vunpack.i.h.bf16 %v3792_v8  ;;  %v3793_v20 = vunpack.i.l.bf16 %v3792_v8 }
 0x3ee   :  { %v833_v11 = vsel %vm832_vm10, %v830_v10, %v3793_v20  ;;  %v834_v12 = vsel %vm832_vm10, %v831_v22, %v3794_v28  ;;  %v4435_v10 = vld [vmem:[%s5190_s9] sm:$0x1f] }
 0x3ef   :  { %v835_v62 = vpack.c.bf16 %v834_v12, %v833_v11  ;;  %v4438_v11 = vperm.slane %v4435_v10, 3 }
 0x3f1   :  { %3548 = vmatmul.msk.bf16.vlgmr.msrb.gmra.mxu2 %vm79_vm0, %v835_v62 }
 0x474   :  { %v865_v15 = vpop.f32.mrf.mxu2 }
 0x475   :  { %v866_v55 = vadd.f32 %v865_v15, %v851_v13 }
 0x477   :  { %v870_v16 = vadd.f32 %v4004_v21, %v866_v55  ;;  %v4442_v55 = vperm.slane %v4435_v10, 4 }
 0x479   :  { %v872_v17 = vsel %vm79_vm0, %v870_v16, 0.0 }
 0x47a   :  { %873 = vadd.xlane.f32.xlu2 %v872_v17 }
 0x47c   :  { %v867_v24 = vpop.f32.mrf.mxu2 }
 0x47d   :  { %v868_v57 = vadd.f32 %v867_v24, %v851_v13 }
 0x47f   :  { %v871_v18 = vadd.f32 %v4005_v34, %v868_v57 }
 0x481   :  { %v875_v35 = vsel %vm79_vm0, %v871_v18, 0.0 }
 0x482   :  { %876 = vadd.xlane.f32.xlu0 %v875_v35 }
 0x496   :  { %1022 = vrot.lane.b32.xlu0 %v4335_v27, %s4016_s21 }
 0x4ed   :  { %v874_v43 = vpop.xlane.xlu2 %873 }
 0x4ee   :  { %v885_v44 = vmul.f32 %v4413_v19, %v874_v43 }
 0x4f0   :  { %v887_v45 = vsub.f32 %v870_v16, %v885_v44 }
 0x4f2   :  { %v889_v46 = vmul.f32 %v887_v45, %v887_v45 }
 0x4f4   :  { %v891_v47 = vsel %vm79_vm0, %v889_v46, 0.0 }
 0x4f5   :  { %v877_v48 = vpop.xlane.xlu0 %876  ;;  %892 = vadd.xlane.f32.xlu1 %v891_v47 }
 0x4f6   :  { %v886_v61 = vmul.f32 %v4413_v19, %v877_v48 }
 0x4f8   :  { %v888_v50 = vsub.f32 %v871_v18, %v886_v61 }
 0x4fa   :  { %v890_v52 = vmul.f32 %v888_v50, %v888_v50 }
 0x4fc   :  { %v894_v30 = vsel %vm79_vm0, %v890_v52, 0.0 }
 0x4fd   :  { %895 = vadd.xlane.f32.xlu2 %v894_v30 }
 0x508   :  { %v1023_v53 = vpop.permute.xlu0 %1022 }
 0x509   :  { %v1028_v54 = vsel %vm238_vm1, %v1023_v53, 0 }
 0x50a   :  { %1037 = vmatpush.bf16.xpose.msra.mxu2 %v1028_v54 }
 0x50e   :  { %1048 = vrot.lane.b32.xlu1 %v4346_v14, %s4016_s21 }
 0x516   :  { %1117 = vrot.lane.b32.xlu1 %v4335_v27, %s4018_s1 }
 0x568   :  { %v893_v51 = vpop.xlane.xlu1 %892 }
 0x569   :  { %v897_v58 = vmul.f32 %v893_v51, %v4413_v19 }
 0x56b   :  { %v899_v60 = vadd.f32 1e-05, %v897_v58 }
 0x56d   :  { %3876 = vrsqrt.f32 %v899_v60  ;;  %vm907_vm13 = vweird.f32 %v899_v60 }
 0x570   :  { %v896_v49 = vpop.xlane.xlu2 %895 }
 0x571   :  { %v898_v4 = vmul.f32 %v896_v49, %v4413_v19 }
 0x573   :  { %v3877_v63 = vpop.eup %3876  ;;  %v900_v1 = vadd.f32 1e-05, %v898_v4 }
 0x574   :  { %v902_v2 = vmul.f32 %v3877_v63, %v899_v60  ;;  %vm908_vm12 = vweird.f32 %v3877_v63 }
 0x575   :  { %3878 = vrsqrt.f32 %v900_v1  ;;  %vm909_vm14 = vmor %vm907_vm13, %vm908_vm12  ;;  %vm917_vm3 = vweird.f32 %v900_v1 }
 0x576   :  { %v903_v3 = vmul.f32 %v3877_v63, %v902_v2 }
 0x578   :  { %v904_v5 = vmul.f32 0.5, %v903_v3 }
 0x57a   :  { %v905_v6 = vsub.f32 1.5, %v904_v5 }
 0x57b   :  { %v3879_v7 = vpop.eup %3878 }
 0x57c   :  { %v906_v8 = vmul.f32 %v3877_v63, %v905_v6  ;;  %v912_v9 = vmul.f32 %v3879_v7, %v900_v1  ;;  %vm918_vm15 = vweird.f32 %v3879_v7 }
 0x57d   :  { %vm919_vm4 = vmor %vm917_vm3, %vm918_vm15 }
 0x57e   :  { %v910_v32 = vsel %vm909_vm14, %v3877_v63, %v906_v8  ;;  %v913_v28 = vmul.f32 %v3879_v7, %v912_v9 }
 0x57f   :  { %v921_v12 = vmul.f32 %v910_v32, %v887_v45 }
 0x580   :  { %v914_v20 = vmul.f32 0.5, %v913_v28  ;;  %v1049_v22 = vpop.permute.xlu1 %1048 }
 0x581   :  { %v1054_v62 = vsel %vm238_vm1, %v1049_v22, 0  ;;  %v924_v21 = vmul.f32 %v4438_v11, %v921_v12 }
 0x582   :  { %v915_v13 = vsub.f32 1.5, %v914_v20  ;;  %1063 = vmatpush.bf16.xpose.msra.mxu3 %v1054_v62 }
 0x583   :  { %v4446_v57 = vadd.f32 %v4442_v55, %v924_v21 }
 0x584   :  { %v916_v15 = vmul.f32 %v3879_v7, %v915_v13 }
 0x585   :  { %v929_v38 = vadd.f32 %v4007_v37, %v4446_v57 }
 0x586   :  { %v920_v16 = vsel %vm919_vm4, %v3879_v7, %v916_v15 }
 0x587   :  { %v922_v17 = vmul.f32 %v920_v16, %v888_v50 }
 0x588   :  { %v1118_v24 = vpop.permute.xlu1 %1117 }
 0x589   :  { %v925_v34 = vmul.f32 %v4438_v11, %v922_v17  ;;  %v1123_v18 = vsel %vm238_vm1, %v1118_v24, 0 }
 0x58a   :  { %1132 = vmatpush.bf16.xpose.msrb.mxu2 %v1123_v18 }
 0x58b   :  { %v4451_v35 = vadd.f32 %v4442_v55, %v925_v34 }
 0x58d   :  { %v930_v40 = vadd.f32 %v4008_v39, %v4451_v35 }
 0x58f   :  { %v931_v41 = vpack.c.bf16 %v930_v40, %v929_v38 }
 0x591   :  { %3557 = vmatmul.msk.bf16.vlgmr.msrb.gmra.mxu3 %vm79_vm0, %v931_v41 }
 0x614   :  { %v956_v42 = vpop.f32.mrf.mxu3 }
 0x615   :  { %v957_v43 = vadd.f32 %v956_v42, %v4392_v0 }
 0x617   :  { %v961_v44 = vmul.f32 0.35355338, %v957_v43 }
 0x619   :  { %v963_v45 = vpack.c.bf16 %v961_v44, %v961_v44 }
 0x61b   :  { %v1018_v46 = vunpack.c.l.b16 %v963_v45  ;;  %3558 = vmatmul.msk.bf16.vlgmr.msrb.gmra.mxu0 %vm238_vm1, %v963_v45 }
 0x61c   :  { %v958_v47 = vpop.f32.mrf.mxu3 }
 0x61d   :  { %v959_v48 = vadd.f32 %v958_v47, %v4392_v0  ;;  %v1019_v61 = vpack.c.b16 %v1018_v46, %v1018_v46 }
 0x61f   :  { %v962_v50 = vmul.f32 0.35355338, %v959_v48  ;;  %1020 = vrot.lane.b32.xlu2 %v1019_v61, %s4016_s21 }
 0x621   :  { %v964_v52 = vpack.c.bf16 %v962_v50, %v962_v50 }
 0x623   :  { %3559 = vmatmul.msk.bf16.vlgmr.msrb.gmra.mxu1 %vm238_vm1, %v964_v52  ;;  %v1044_v30 = vunpack.c.l.b16 %v964_v52 }
 0x625   :  { %v1045_v53 = vpack.c.b16 %v1044_v30, %v1044_v30 }
 0x627   :  { %1138 = vrot.lane.b32.xlu1 %v1045_v53, %s4018_s1  ;;  %1046 = vrot.lane.b32.xlu0 %v1045_v53, %s4016_s21 }
 0x628   :  { %1115 = vrot.lane.b32.xlu2 %v1019_v61, %s4018_s1 }
 0x62f   :  { %1140 = vrot.lane.b32.xlu0 %v4346_v14, %s4018_s1  ;;  %1069 = vrot.lane.b32.xlu1 %v1019_v61, %s4019_s16 }
 0x630   :  { %1094 = vrot.lane.b32.xlu2 %v4346_v14, %s4019_s16 }
 0x637   :  { %1071 = vrot.lane.b32.xlu0 %v4335_v27, %s4019_s16 }
 0x63f   :  { %1092 = vrot.lane.b32.xlu0 %v1045_v53, %s4019_s16 }
 0x679   :  { %v1021_v54 = vpop.permute.xlu2 %1020 }
 0x67a   :  { %3560 = vmatmul.msk.bf16.vlgmr.msra.gmra.mxu2 %vm238_vm1, %v1021_v54 }
 0x682   :  { %v1116_v36 = vpop.permute.xlu2 %1115 }
 0x68a   :  { %v1095_v56 = vpop.permute.xlu2 %1094  ;;  %3564 = vmatmul.msk.bf16.vlgmr.msrb.gmra.mxu2 %vm238_vm1, %v1116_v36 }
 0x68b   :  { %v1100_v51 = vsel %vm238_vm1, %v1095_v56, 0 }
 0x68c   :  { %1109 = vmatpush.bf16.xpose.msra.mxu1 %v1100_v51 }
 0x698   :  { %v989_v58 = vpop.f32.mrf.mxu0 }
 0x699   :  { %v1047_v60 = vpop.permute.xlu0 %1046  ;;  %v1161_v49 = vsel %vm829_vm9, %v989_v58, -inf  ;;  %v1139_v5 = vpop.permute.xlu1 %1138 }
 0x69a   :  { %3561 = vmatmul.msk.bf16.vlgmr.msra.gmra.mxu3 %vm238_vm1, %v1047_v60  ;;  %1162 = vmax.xlane.f32.xlu0 %v1161_v49 }
 0x6a0   :  { %v991_v4 = vpop.f32.mrf.mxu0  ;;  %v1013_v63 = vpop.f32.mrf.mxu1 }
 0x6a1   :  { %v1141_v1 = vpop.permute.xlu0 %1140  ;;  %v1164_v2 = vsel %vm829_vm9, %v1013_v63, -inf  ;;  %v1070_v9 = vpop.permute.xlu1 %1069 }
 0x6a2   :  { %v1146_v3 = vsel %vm238_vm1, %v1141_v1, 0  ;;  %1165 = vmax.xlane.f32.xlu2 %v1164_v2 }
 0x6a3   :  { %1155 = vmatpush.bf16.xpose.msrb.mxu3 %v1146_v3 }
 0x6a8   :  { %v1015_v6 = vpop.f32.mrf.mxu1 }
 0x6a9   :  { %v1072_v7 = vpop.permute.xlu0 %1071 }
 0x6aa   :  { %v1077_v8 = vsel %vm238_vm1, %v1072_v7, 0  ;;  %3565 = vmatmul.msk.bf16.vlgmr.msrb.gmra.mxu3 %vm238_vm1, %v1139_v5 }
 0x6ab   :  { %1086 = vmatpush.bf16.xpose.msra.mxu0 %v1077_v8 }
 0x6b1   :  { %v1093_v32 = vpop.permute.xlu0 %1092 }
 0x6b2   :  { %3562 = vmatmul.msk.bf16.vlgmr.msra.gmra.mxu0 %vm238_vm1, %v1070_v9  ;;  %3563 = vmatmul.msk.bf16.vlgmr.msra.gmra.mxu1 %vm238_vm1, %v1093_v32 }
 0x6fd   :  { %v1039_v28 = vpop.f32.mrf.mxu2 }
 0x6fe   :  { %v1167_v20 = vsel %vm829_vm9, %v1039_v28, -inf }
 0x6ff   :  { %1168 = vmax.xlane.f32.xlu2 %v1167_v20 }
 0x705   :  { %v1041_v22 = vpop.f32.mrf.mxu2 }
 0x70d   :  { %v4490_v12 = vpop.f32.mrf.mxu2  ;;  %v1163_v21 = vpop.xlane.xlu0 %1162 }
 0x70e   :  { %v1185_v17 = vsub.f32 %v989_v58, %v1163_v21  ;;  %v1179_v46 = vsel %vm829_vm9, %v4490_v12, -inf }
 0x710   :  { %v1193_v24 = vmul.f32 1.442695, %v1185_v17 }
 0x712   :  { %3880 = vpow2.f32 %v1193_v24 }
 0x715   :  { %v1136_v62 = vpop.f32.mrf.mxu2  ;;  %v1166_v34 = vpop.xlane.xlu2 %1165 }
 0x716   :  { %v1186_v37 = vsub.f32 %v1013_v63, %v1166_v34 }
 0x717   :  { %112 = vrot.lane.b32.xlu2 %v4320_v25, %s4012_s22 }
 0x718   :  { %v1195_v41 = vmul.f32 1.442695, %v1186_v37  ;;  %v4502_v42 = vpop.eup %3880 }
 0x719   :  { %v1209_v47 = vsel %vm829_vm9, %v4502_v42, 0.0 }
 0x71a   :  { %3882 = vpow2.f32 %v1195_v41 }
 0x71d   :  { %v4494_v13 = vpop.f32.mrf.mxu3 }
 0x71e   :  { %v1170_v15 = vsel %vm829_vm9, %v4494_v13, -inf }
 0x71f   :  { %1171 = vmax.xlane.f32.xlu1 %v1170_v15 }
 0x720   :  { %v4508_v48 = vpop.eup %3882 }
 0x721   :  { %v1212_v50 = vsel %vm829_vm9, %v4508_v48, 0.0 }
 0x725   :  { %v1067_v16 = vpop.f32.mrf.mxu3 }
 0x72d   :  { %v4498_v18 = vpop.f32.mrf.mxu3 }
 0x72e   :  { %v1182_v61 = vsel %vm829_vm9, %v4498_v18, -inf }
 0x72f   :  { %v1088_v38 = vpop.f32.mrf.mxu0  ;;  %v1111_v39 = vpop.f32.mrf.mxu1 }
 0x730   :  { %v1176_v40 = vsel %vm829_vm9, %v1111_v39, -inf  ;;  %v1173_v25 = vsel %vm829_vm9, %v1088_v38, -inf }
 0x731   :  { %1177 = vmax.xlane.f32.xlu1 %v1176_v40  ;;  %1174 = vmax.xlane.f32.xlu0 %v1173_v25 }
 0x735   :  { %v1159_v43 = vpop.f32.mrf.mxu3 }
 0x737   :  { %v1090_v44 = vpop.f32.mrf.mxu0  ;;  %v1113_v45 = vpop.f32.mrf.mxu1 }
 0x739   :  { %1180 = vmax.xlane.f32.xlu1 %v1179_v46  ;;  %1210 = vadd.xlane.f32.xlu0 %v1209_v47 }
 0x740   :  { %1183 = vmax.xlane.f32.xlu2 %v1182_v61 }
 0x741   :  { %1213 = vadd.xlane.f32.xlu1 %v1212_v50 }
 0x772   :  { %v1169_v52 = vpop.xlane.xlu2 %1168 }
 0x77a   :  { %v113_v30 = vpop.permute.xlu2 %112 }
 0x77b   :  { %v131_v53 = vadd.f32 %v4222_v23, %v113_v30  ;;  %v133_v54 = vadd.f32 %v4226_v26, %v113_v30  ;;  %v136_v36 = vadd.f32 %v4229_v29, %v113_v30  ;;  %v138_v56 = vadd.f32 %v4231_v31, %v113_v30 }
 0x77c   :  { %v1187_v23 = vsub.f32 %v1039_v28, %v1169_v52 }
 0x77d   :  { %v1355_v51 = vpack.c.bf16 %v131_v53, %v131_v53  ;;  %v1356_v58 = vpack.c.bf16 %v133_v54, %v133_v54  ;;  %v1357_v60 = vpack.c.bf16 %v136_v36, %v136_v36  ;;  %v1358_v49 = vpack.c.bf16 %v138_v56, %v138_v56 }
 0x77e   :  { %v1197_v29 = vmul.f32 1.442695, %v1187_v23 }
 0x77f   :  { %v1361_v4 = vunpack.c.l.b16 %v1355_v51  ;;  %v1362_v63 = vunpack.c.l.b16 %v1356_v58  ;;  %v1383_v1 = vunpack.c.l.b16 %v1357_v60  ;;  %v1384_v2 = vunpack.c.l.b16 %v1358_v49 }
 0x780   :  { %3884 = vpow2.f32 %v1197_v29 }
 0x781   :  { %v4518_v3 = vpack.c.b16 %v1362_v63, %v1361_v4  ;;  %v4520_v5 = vpack.c.b16 %v1384_v2, %v1383_v1 }
 0x783   :  { %1397 = vmatpush.bf16.msrb.mxu1 %v4520_v5  ;;  %1405 = vrot.lane.b32.xlu2 %v4518_v3, %s4016_s21 }
 0x784   :  { %1375 = vmatpush.bf16.msrb.mxu0 %v4518_v3  ;;  %1424 = vrot.lane.b32.xlu0 %v4520_v5, %s4016_s21 }
 0x786   :  { %v4529_v22 = vpop.eup %3884 }
 0x787   :  { %v1215_v16 = vsel %vm829_vm9, %v4529_v22, 0.0 }
 0x792   :  { %v1172_v26 = vpop.xlane.xlu1 %1171 }
 0x793   :  { %v1188_v20 = vsub.f32 %v4494_v13, %v1172_v26 }
 0x795   :  { %v1199_v62 = vmul.f32 1.442695, %v1188_v20 }
 0x7a4   :  { %v1178_v31 = vpop.xlane.xlu1 %1177  ;;  %v1175_v6 = vpop.xlane.xlu0 %1174 }
 0x7a5   :  { %v1190_v7 = vsub.f32 %v1111_v39, %v1178_v31  ;;  %v1189_v8 = vsub.f32 %v1088_v38, %v1175_v6 }
 0x7a7   :  { %v1203_v9 = vmul.f32 1.442695, %v1190_v7  ;;  %v1201_v32 = vmul.f32 1.442695, %v1189_v8 }
 0x7a9   :  { %3886 = vpow2.f32 %v1203_v9 }
 0x7aa   :  { %3888 = vpow2.f32 %v1201_v32 }
 0x7ac   :  { %v1181_v15 = vpop.xlane.xlu1 %1180  ;;  %v1211_v21 = vpop.xlane.xlu0 %1210 }
 0x7ad   :  { %v1191_v28 = vsub.f32 %v4490_v12, %v1181_v15  ;;  %3890 = vrcp.f32 %v1211_v21  ;;  %v1242_v46 = vand.u32 2147483647, %v1211_v21  ;;  %v1244_v47 = vand.u32 2147483648, %v1211_v21 }
 0x7ae   :  { %1216 = vadd.xlane.f32.xlu0 %v1215_v16  ;;  %3892 = vpow2.f32 %v1199_v62  ;;  %vm1238_vm6 = vweird.f32 %v1211_v21 }
 0x7af   :  { %v4534_v17 = vpop.eup %3886  ;;  %v1205_v24 = vmul.f32 1.442695, %v1191_v28  ;;  %v1245_v53 = vor.u32 1.1754944e-38, %v1244_v47  ;;  %vm1243_vm8 = vcmp.eq.f32.partialorder %v1242_v46, 8.507059e+37 }
 0x7b0   :  { %v4536_v34 = vpop.eup %3888  ;;  %v1224_v13 = vsel %vm829_vm9, %v4534_v17, 0.0 }
 0x7b1   :  { %3894 = vpow2.f32 %v1205_v24  ;;  %1225 = vadd.xlane.f32.xlu2 %v1224_v13  ;;  %v1221_v37 = vsel %vm829_vm9, %v4536_v34, 0.0 }
 0x7b2   :  { %1222 = vadd.xlane.f32.xlu1 %v1221_v37 }
 0x7b3   :  { %v3891_v12 = vpop.eup %3890  ;;  %v1184_v38 = vpop.xlane.xlu2 %1183 }
 0x7b4   :  { %v1234_v39 = vmul.f32 %v3891_v12, %v1211_v21  ;;  %v1192_v40 = vsub.f32 %v4498_v18, %v1184_v38  ;;  %v1214_v25 = vpop.xlane.xlu1 %1213  ;;  %v4543_v41 = vpop.eup %3892  ;;  %vm1239_vm5 = vweird.f32 %v3891_v12 }
 0x7b5   :  { %3896 = vrcp.f32 %v1214_v25  ;;  %v1218_v18 = vsel %vm829_vm9, %v4543_v41, 0.0  ;;  %vm1240_vm7 = vmor %vm1238_vm6, %vm1239_vm5  ;;  %v1259_v49 = vand.u32 2147483648, %v1214_v25  ;;  %v1257_v1 = vand.u32 2147483647, %v1214_v25 }
 0x7b6   :  { %v1235_v43 = vsub.f32 1.0, %v1234_v39  ;;  %v1207_v44 = vmul.f32 1.442695, %v1192_v40  ;;  %vm1253_vm12 = vweird.f32 %v1214_v25 }
 0x7b7   :  { %v4545_v45 = vpop.eup %3894  ;;  %v1260_v26 = vor.u32 1.1754944e-38, %v1259_v49  ;;  %vm1258_vm14 = vcmp.eq.f32.partialorder %v1257_v1, 8.507059e+37 }
 0x7b8   :  { %v1236_v61 = vmul.f32 %v3891_v12, %v1235_v43  ;;  %3898 = vpow2.f32 %v1207_v44  ;;  %v1227_v50 = vsel %vm829_vm9, %v4545_v45, 0.0 }
 0x7b9   :  { %1228 = vadd.xlane.f32.xlu0 %v1227_v50 }
 0x7ba   :  { %v1237_v52 = vadd.f32 %v3891_v12, %v1236_v61  ;;  %1219 = vadd.xlane.f32.xlu1 %v1218_v18 }
 0x7bb   :  { %v3897_v30 = vpop.eup %3896 }
 0x7bc   :  { %v1241_v54 = vsel %vm1240_vm7, %v3891_v12, %v1237_v52  ;;  %v1249_v36 = vmul.f32 %v3897_v30, %v1214_v25  ;;  %vm1254_vm11 = vweird.f32 %v3897_v30 }
 0x7bd   :  { %v1246_v56 = vsel %vm1243_vm8, %v1245_v53, %v1241_v54  ;;  %vm1255_vm13 = vmor %vm1253_vm12, %vm1254_vm11 }
 0x7be   :  { %v4551_v51 = vpop.eup %3898  ;;  %v1250_v58 = vsub.f32 1.0, %v1249_v36  ;;  %v1247_v60 = vmul.f32 %v4502_v42, %v1246_v56 }
 0x7bf   :  { %v1230_v4 = vsel %vm829_vm9, %v4551_v51, 0.0 }
 0x7c0   :  { %v1251_v63 = vmul.f32 %v3897_v30, %v1250_v58  ;;  %v1353_v2 = vpack.c.bf16 %v1247_v60, %v1247_v60 }
 0x7c2   :  { %v1252_v23 = vadd.f32 %v3897_v30, %v1251_v63  ;;  %1231 = vadd.xlane.f32.xlu1 %v1230_v4  ;;  %3566 = vmatmul.msk.bf16.vlgmr.msrb.gmra.mxu0 %vm829_vm9, %v1353_v2 }
 0x7c4   :  { %v1256_v29 = vsel %vm1255_vm13, %v3897_v30, %v1252_v23 }
 0x7c5   :  { %v1261_v31 = vsel %vm1258_vm14, %v1260_v26, %v1256_v29 }
 0x7c6   :  { %v1262_v42 = vmul.f32 %v4508_v48, %v1261_v31 }
 0x7c8   :  { %v1354_v6 = vpack.c.bf16 %v1262_v42, %v1262_v42 }
 0x7c9   :  { %1566 = vrot.lane.b32.xlu2 %v4392_v0, %s4012_s22 }
 0x7ca   :  { %3567 = vmatmul.msk.bf16.vlgmr.msrb.gmra.mxu1 %vm829_vm9, %v1354_v6 }
 0x7cd   :  { %1504 = vrot.lane.b32.xlu0 %v4520_v5, %s4018_s1 }
 0x7d5   :  { %1445 = vrot.lane.b32.xlu0 %v4518_v3, %s4019_s16 }
 0x7db   :  { %1485 = vrot.lane.b32.xlu1 %v4518_v3, %s4018_s1 }
 0x7dd   :  { %v1406_v7 = vpop.permute.xlu2 %1405  ;;  %1464 = vrot.lane.b32.xlu0 %v4520_v5, %s4019_s16 }
 0x7de   :  { %1418 = vmatpush.bf16.msra.mxu2 %v1406_v7 }
 0x7f6   :  { %v1425_v48 = vpop.permute.xlu0 %1424 }
 0x7f7   :  { %1437 = vmatpush.bf16.msra.mxu3 %v1425_v48 }
 0x821   :  { %v1217_v8 = vpop.xlane.xlu0 %1216 }
 0x822   :  { %3900 = vrcp.f32 %v1217_v8  ;;  %v1274_v21 = vand.u32 2147483648, %v1217_v8  ;;  %v1272_v24 = vand.u32 2147483647, %v1217_v8  ;;  %vm1268_vm3 = vweird.f32 %v1217_v8 }
 0x824   :  { %v4572_v20 = vpop.xlane.xlu2 %1225  ;;  %v1275_v38 = vor.u32 1.1754944e-38, %v1274_v21  ;;  %vm1273_vm5 = vcmp.eq.f32.partialorder %v1272_v24, 8.507059e+37 }
 0x825   :  { %v4569_v0 = vpop.xlane.xlu1 %1222 }
 0x826   :  { %3902 = vrcp.f32 %v4569_v0  ;;  %vm1298_vm11 = vweird.f32 %v4569_v0  ;;  %v1302_v1 = vand.u32 2147483647, %v4569_v0  ;;  %v1304_v2 = vand.u32 2147483648, %v4569_v0 }
 0x827   :  { %3904 = vrcp.f32 %v4572_v20 }
 0x828   :  { %v3901_v9 = vpop.eup %3900 }
 0x829   :  { %v1264_v32 = vmul.f32 %v3901_v9, %v1217_v8  ;;  %vm1269_vm15 = vweird.f32 %v3901_v9 }
 0x82a   :  { %vm1270_vm4 = vmor %vm1268_vm3, %vm1269_vm15  ;;  %vm1303_vm15 = vcmp.eq.f32.partialorder %v1302_v1, 8.507059e+37 }
 0x82b   :  { %v1265_v62 = vsub.f32 1.0, %v1264_v32 }
 0x82c   :  { %v4574_v15 = vpop.eup %3902  ;;  %v4577_v28 = vpop.xlane.xlu0 %1228 }
 0x82d   :  { %v1266_v16 = vmul.f32 %v3901_v9, %v1265_v62  ;;  %v1220_v13 = vpop.xlane.xlu1 %1219  ;;  %3906 = vrcp.f32 %v4577_v28  ;;  %v1294_v12 = vmul.f32 %v4574_v15, %v4569_v0  ;;  %v4582_v40 = vpop.eup %3904  ;;  %vm1299_vm7 = vweird.f32 %v4574_v15 }
 0x82e   :  { %3908 = vrcp.f32 %v1220_v13  ;;  %v1309_v52 = vmul.f32 %v4582_v40, %v4572_v20  ;;  %v1289_v54 = vand.u32 2147483648, %v1220_v13  ;;  %v1287_v58 = vand.u32 2147483647, %v1220_v13  ;;  %vm4605_vm14 = vmor %vm1298_vm11, %vm1299_vm7 }
 0x82f   :  { %v1267_v37 = vadd.f32 %v3901_v9, %v1266_v16  ;;  %v1295_v44 = vsub.f32 1.0, %v1294_v12  ;;  %vm1283_vm8 = vweird.f32 %v1220_v13  ;;  %v1305_v62 = vor.u32 1.1754944e-38, %v1304_v2 }
 0x830   :  { %v1310_v60 = vsub.f32 1.0, %v1309_v52  ;;  %v1290_v23 = vor.u32 1.1754944e-38, %v1289_v54  ;;  %vm1288_vm13 = vcmp.eq.f32.partialorder %v1287_v58, 8.507059e+37  ;;  %vm1313_vm7 = vweird.f32 %v4572_v20 }
 0x831   :  { %v1271_v39 = vsel %vm1270_vm4, %v3901_v9, %v1267_v37  ;;  %v1296_v30 = vmul.f32 %v4574_v15, %v1295_v44  ;;  %vm1314_vm4 = vweird.f32 %v4582_v40  ;;  %v1332_v37 = vand.u32 2147483647, %v4577_v28 }
 0x832   :  { %v1276_v25 = vsel %vm1273_vm5, %v1275_v38, %v1271_v39  ;;  %v1311_v7 = vmul.f32 %v4582_v40, %v1310_v60  ;;  %vm1328_vm5 = vweird.f32 %v4577_v28  ;;  %v1317_v38 = vand.u32 2147483647, %v4572_v20  ;;  %vm4634_vm11 = vmor %vm1313_vm7, %vm1314_vm4 }
 0x833   :  { %v4584_v43 = vpop.eup %3906  ;;  %v1277_v47 = vmul.f32 %v4529_v22, %v1276_v25  ;;  %v1297_v49 = vadd.f32 %v4574_v15, %v1296_v30  ;;  %v1319_v39 = vand.u32 2147483648, %v4572_v20 }
 0x834   :  { %v3909_v46 = vpop.eup %3908  ;;  %v1324_v50 = vmul.f32 %v4584_v43, %v4577_v28  ;;  %vm1329_vm3 = vweird.f32 %v4584_v43 }
 0x835   :  { %v1279_v61 = vmul.f32 %v3909_v46, %v1220_v13  ;;  %v4589_v18 = vpop.xlane.xlu1 %1231  ;;  %v1403_v36 = vpack.c.bf16 %v1277_v47, %v1277_v47  ;;  %vm1284_vm6 = vweird.f32 %v3909_v46  ;;  %v1301_v48 = vsel %vm4605_vm14, %v4574_v15, %v1297_v49 }
 0x836   :  { %3910 = vrcp.f32 %v4589_v18  ;;  %v1325_v22 = vsub.f32 1.0, %v1324_v50  ;;  %vm1285_vm12 = vmor %vm1283_vm8, %vm1284_vm6  ;;  %v1306_v13 = vsel %vm1303_vm15, %v1305_v62, %v1301_v48  ;;  %v1312_v15 = vadd.f32 %v4582_v40, %v1311_v7 }
 0x837   :  { %v1280_v53 = vsub.f32 1.0, %v1279_v61  ;;  %3568 = vmatmul.msk.bf16.vlgmr.msra.gmra.mxu2 %vm829_vm9, %v1403_v36  ;;  %vm4629_vm8 = vmor %vm1328_vm5, %vm1329_vm3  ;;  %v1349_v44 = vand.u32 2147483648, %v4589_v18  ;;  %v1347_v20 = vand.u32 2147483647, %v4589_v18  ;;  %vm1333_vm14 = vcmp.eq.f32.partialorder %v1332_v37, 8.507059e+37 }
 0x838   :  { %v1326_v29 = vmul.f32 %v4584_v43, %v1325_v22  ;;  %v1316_v52 = vsel %vm4634_vm11, %v4582_v40, %v1312_v15  ;;  %vm1318_vm15 = vcmp.eq.f32.partialorder %v1317_v38, 8.507059e+37 }
 0x839   :  { %v1281_v56 = vmul.f32 %v3909_v46, %v1280_v53  ;;  %v1350_v36 = vor.u32 1.1754944e-38, %v1349_v44  ;;  %vm1348_vm3 = vcmp.eq.f32.partialorder %v1347_v20, 8.507059e+37 }
 0x83a   :  { %v1327_v21 = vadd.f32 %v4584_v43, %v1326_v29 }
 0x83b   :  { %v1282_v4 = vadd.f32 %v3909_v46, %v1281_v56 }
 0x83c   :  { %v3911_v63 = vpop.eup %3910  ;;  %v1331_v47 = vsel %vm4629_vm8, %v4584_v43, %v1327_v21  ;;  %v1320_v43 = vor.u32 1.1754944e-38, %v1319_v39 }
 0x83d   :  { %v1286_v26 = vsel %vm1285_vm12, %v3909_v46, %v1282_v4  ;;  %v1339_v31 = vmul.f32 %v3911_v63, %v4589_v18  ;;  %vm1344_vm6 = vweird.f32 %v3911_v63  ;;  %v1307_v46 = vmul.f32 %v4536_v34, %v1306_v13  ;;  %v3740_v13 = vld [vmem:[%s5193_s5 + $0x20] sm:$0xff] }
 0x83e   :  { %v1291_v6 = vsel %vm1288_vm13, %v1290_v23, %v1286_v26  ;;  %vm1343_vm12 = vweird.f32 %v4589_v18  ;;  %v1321_v58 = vsel %vm1318_vm15, %v1320_v43, %v1316_v52 }
 0x83f   :  { %v1292_v8 = vmul.f32 %v4543_v41, %v1291_v6  ;;  %v1340_v0 = vsub.f32 1.0, %v1339_v31  ;;  %v1505_v9 = vpop.permute.xlu0 %1504  ;;  %v4614_v32 = vpop.f32.mrf.mxu0  ;;  %v1334_v41 = vand.u32 2147483648, %v4577_v28  ;;  %vm4644_vm13 = vmor %vm1343_vm12, %vm1344_vm6  ;;  %v1443_v18 = vpack.c.bf16 %v1307_v46, %v1307_v46 }
 0x840   :  { %1517 = vmatpush.bf16.msrb.mxu3 %v1505_v9  ;;  %v1322_v40 = vmul.f32 %v4534_v17, %v1321_v58  ;;  %vm1718_vm12 = vcmask 523264  }
 0x841   :  { %v1341_v16 = vmul.f32 %v3911_v63, %v1340_v0  ;;  %v1404_v24 = vpack.c.bf16 %v1292_v8, %v1292_v8  ;;  %v1335_v61 = vor.u32 1.1754944e-38, %v1334_v41 }
 0x842   :  { %v1444_v26 = vpack.c.bf16 %v1322_v40, %v1322_v40 }
 0x843   :  { %v1342_v12 = vadd.f32 %v3911_v63, %v1341_v16  ;;  %3569 = vmatmul.msk.bf16.vlgmr.msra.gmra.mxu3 %vm829_vm9, %v1404_v24  ;;  %v1336_v54 = vsel %vm1333_vm14, %v1335_v61, %v1331_v47  ;;  %v3741_v24 = vld [vmem:[%s5193_s5 + $0x28] sm:$0xff] }
 0x844   :  { %v1337_v60 = vmul.f32 %v4545_v45, %v1336_v54 }
 0x845   :  { %v1346_v34 = vsel %vm4644_vm13, %v3911_v63, %v1342_v12 }
 0x846   :  { %v1351_v22 = vsel %vm1348_vm3, %v1350_v36, %v1346_v34  ;;  %v1483_v2 = vpack.c.bf16 %v1337_v60, %v1337_v60 }
 0x847   :  { %v1399_v30 = vpop.f32.mrf.mxu1  ;;  %v1446_v53 = vpop.permute.xlu0 %1445  ;;  %v1352_v49 = vmul.f32 %v4551_v51, %v1351_v22 }
 0x848   :  { %v1379_v56 = vpop.f32.mrf.mxu0  ;;  %1458 = vmatpush.bf16.msra.mxu0 %v1446_v53  ;;  %v1567_v53 = vpop.permute.xlu2 %1566 }
 0x849   :  { %v1484_v23 = vpack.c.bf16 %v1352_v49, %v1352_v49 }
 0x84b   :  { %3570 = vmatmul.msk.bf16.vlgmr.msra.gmra.mxu0 %vm829_vm9, %v1443_v18 }
 0x84c   :  { %1578 = vmatpush.bf16.msrb.mxu0 %v3741_v24 }
 0x84d   :  { %v1486_v4 = vpop.permute.xlu1 %1485 }
 0x84e   :  { %1498 = vmatpush.bf16.msrb.mxu2 %v1486_v4 }
 0x84f   :  { %v1401_v63 = vpop.f32.mrf.mxu1  ;;  %v1465_v1 = vpop.permute.xlu0 %1464 }
 0x850   :  { %1477 = vmatpush.bf16.msra.mxu1 %v1465_v1  ;;  %1579 = vmatpush.bf16.msrb.mxu0 %v3740_v13 }
 0x851   :  { %3572 = vmatmul.msk.bf16.vlgmr.msrb.gmra.mxu2 %vm829_vm9, %v1483_v2 }
 0x853   :  { %3573 = vmatmul.msk.bf16.vlgmr.msrb.gmra.mxu3 %vm829_vm9, %v1484_v23  ;;  %3571 = vmatmul.msk.bf16.vlgmr.msra.gmra.mxu1 %vm829_vm9, %v1444_v26 }
 0x8ba   :  { %v1420_v45 = vpop.f32.mrf.mxu2 }
 0x8c2   :  { %v1422_v29 = vpop.f32.mrf.mxu2 }
 0x8c6   :  { %v1439_v31 = vpop.f32.mrf.mxu3 }
 0x8c7   :  { %v3800_v17 = vpack.i.bf16 %v1439_v31, %v1420_v45  ;;  %v3745_v45 = vld [vmem:[%s5194_s6 + $0x8] sm:$0xff]  ;;  %v3744_v31 = vld [vmem:[%s5194_s6] sm:$0xff] }
 0x8c8   :  { %v1460_v42 = vpop.f32.mrf.mxu0  ;;  %1671 = vmatpush.bf16.msrb.mxu1 %v3745_v45 }
 0x8c9   :  { %3801 = vrot.lane.b32.xlu1 %v3800_v17, %s4023_s8  ;;  %v1649_v17 = vperm.slane %v4435_v10, 2 }
 0x8cc   :  { %1672 = vmatpush.bf16.msrb.mxu1 %v3744_v31 }
 0x8ce   :  { %v1441_v51 = vpop.f32.mrf.mxu3 }
 0x8d0   :  { %v1462_v6 = vpop.f32.mrf.mxu0  ;;  %v1479_v7 = vpop.f32.mrf.mxu1 }
 0x8d1   :  { %v3795_v48 = vpack.i.bf16 %v1479_v7, %v1460_v42 }
 0x8d3   :  { %3796 = vrot.lane.b32.xlu0 %v3795_v48, %s4025_s24 }
 0x8d4   :  { %v1500_v8 = vpop.f32.mrf.mxu2 }
 0x8d6   :  { %v1519_v0 = vpop.f32.mrf.mxu3 }
 0x8d7   :  { %v3805_v9 = vpack.i.bf16 %v1519_v0, %v1500_v8 }
 0x8d8   :  { %v1481_v62 = vpop.f32.mrf.mxu1 }
 0x8d9   :  { %3806 = vrot.lane.b32.xlu1 %v3805_v9, %s4024_s23 }
 0x8dc   :  { %v1502_v21 = vpop.f32.mrf.mxu2 }
 0x8de   :  { %v1521_v16 = vpop.f32.mrf.mxu3 }
 0x93b   :  { %v3802_v41 = vpop.permute.xlu1 %3801 }
 0x93c   :  { %v3804_v37 = vunpack.i.h.bf16 %v3802_v41  ;;  %v3803_v12 = vunpack.i.l.bf16 %v3802_v41 }
 0x93e   :  { %v1548_v44 = vsel %vm238_vm1, %v1399_v30, %v3804_v37  ;;  %v1547_v28 = vsel %vm238_vm1, %v4614_v32, %v3803_v12 }
 0x945   :  { %v3797_v15 = vpop.permute.xlu0 %3796 }
 0x946   :  { %v3799_v38 = vunpack.i.h.bf16 %v3797_v15  ;;  %v3798_v39 = vunpack.i.l.bf16 %v3797_v15 }
 0x948   :  { %v1550_v20 = vsel %vm829_vm9, %v1548_v44, %v3799_v38  ;;  %v1549_v61 = vsel %vm829_vm9, %v1547_v28, %v3798_v39 }
 0x94b   :  { %v3807_v25 = vpop.permute.xlu1 %3806 }
 0x94c   :  { %v3809_v46 = vunpack.i.h.bf16 %v3807_v25  ;;  %v3808_v47 = vunpack.i.l.bf16 %v3807_v25 }
 0x94e   :  { %v1551_v50 = vsel %vm832_vm10, %v1549_v61, %v3808_v47  ;;  %v1552_v52 = vsel %vm832_vm10, %v1550_v20, %v3809_v46  ;;  %v3749_v61 = vld [vmem:[%s5195_s7 + $0x18] sm:$0xff] }
 0x94f   :  { %v1553_v34 = vpack.c.bf16 %v1552_v52, %v1551_v50  ;;  %1726 = vmatpush.bf16.msra.mxu2 %v3749_v61  ;;  %v3748_v50 = vld [vmem:[%s5195_s7 + $0x10] sm:$0xff]  ;;  %v3747_v52 = vld [vmem:[%s5195_s7 + $0x8] sm:$0xff] }
 0x951   :  { %3582 = vmatmul.msk.bf16.vlgmr.msrb.gmra.mxu0 %vm79_vm0, %v1553_v34  ;;  %v3746_v34 = vld [vmem:[%s5195_s7] sm:$0xff] }
 0x953   :  { %1727 = vmatpush.bf16.msra.mxu2 %v3748_v50 }
 0x957   :  { %1728 = vmatpush.bf16.msra.mxu2 %v3747_v52 }
 0x95b   :  { %1729 = vmatpush.bf16.msra.mxu2 %v3746_v34  ;;  %v4738_v34 = vld [vmem:[%s5188_s2] sm:$0xff] }
 0x9ce   :  { %v1581_v43 = vpop.f32.mrf.mxu0 }
 0x9cf   :  { %v1582_v54 = vadd.f32 %v1581_v43, %v1567_v53 }
 0x9d1   :  { %v1586_v30 = vadd.f32 %v1582_v54, %v4446_v57 }
 0x9d3   :  { %v1588_v32 = vsel %vm79_vm0, %v1586_v30, 0.0 }
 0x9d4   :  { %1589 = vadd.xlane.f32.xlu0 %v1588_v32 }
 0x9d6   :  { %v1583_v36 = vpop.f32.mrf.mxu0 }
 0x9d7   :  { %v1584_v56 = vadd.f32 %v1583_v36, %v1567_v53 }
 0x9d9   :  { %v1587_v18 = vadd.f32 %v1584_v56, %v4451_v35 }
 0x9db   :  { %v1591_v58 = vsel %vm79_vm0, %v1587_v18, 0.0 }
 0x9dc   :  { %1592 = vadd.xlane.f32.xlu1 %v1591_v58 }
 0x9f5   :  { %1633 = vrot.lane.b32.xlu1 %v4438_v11, %s4015_s12 }
 0xa47   :  { %v1590_v22 = vpop.xlane.xlu0 %1589 }
 0xa48   :  { %v1594_v60 = vmul.f32 %v1590_v22, %v4413_v19 }
 0xa4a   :  { %v1596_v40 = vsub.f32 %v1586_v30, %v1594_v60 }
 0xa4c   :  { %v1598_v49 = vmul.f32 %v1596_v40, %v1596_v40 }
 0xa4e   :  { %v1600_v57 = vsel %vm79_vm0, %v1598_v49, 0.0 }
 0xa4f   :  { %v1593_v4 = vpop.xlane.xlu1 %1592  ;;  %1601 = vadd.xlane.f32.xlu2 %v1600_v57 }
 0xa50   :  { %v1595_v63 = vmul.f32 %v1593_v4, %v4413_v19 }
 0xa52   :  { %v1597_v1 = vsub.f32 %v1587_v18, %v1595_v63 }
 0xa54   :  { %v1599_v2 = vmul.f32 %v1597_v1, %v1597_v1 }
 0xa56   :  { %v1603_v35 = vsel %vm79_vm0, %v1599_v2, 0.0 }
 0xa57   :  { %1604 = vadd.xlane.f32.xlu0 %v1603_v35 }
 0xa67   :  { %1715 = vrot.lane.b32.xlu2 %v1649_v17, %s4012_s22  ;;  %v1634_v37 = vpop.permute.xlu1 %1633 }
 0xa6b   :  { %1639 = vrot.lane.b32.xlu0 %v4442_v55, %s4015_s12 }
 0xac2   :  { %v1602_v23 = vpop.xlane.xlu2 %1601 }
 0xac3   :  { %v1606_v26 = vmul.f32 %v1602_v23, %v4413_v19 }
 0xac5   :  { %v1608_v29 = vadd.f32 1e-05, %v1606_v26 }
 0xac7   :  { %3912 = vrsqrt.f32 %v1608_v29  ;;  %vm1616_vm5 = vweird.f32 %v1608_v29 }
 0xaca   :  { %v1605_v42 = vpop.xlane.xlu0 %1604  ;;  %v1716_v18 = vpop.permute.xlu2 %1715 }
 0xacb   :  { %v1607_v51 = vmul.f32 %v1605_v42, %v4413_v19 }
 0xacd   :  { %v3913_v6 = vpop.eup %3912  ;;  %v1609_v7 = vadd.f32 1e-05, %v1607_v51 }
 0xace   :  { %v1611_v48 = vmul.f32 %v3913_v6, %v1608_v29  ;;  %vm1617_vm4 = vweird.f32 %v3913_v6 }
 0xacf   :  { %3914 = vrsqrt.f32 %v1609_v7  ;;  %vm1618_vm6 = vmor %vm1616_vm5, %vm1617_vm4  ;;  %vm1626_vm8 = vweird.f32 %v1609_v7 }
 0xad0   :  { %v1612_v8 = vmul.f32 %v3913_v6, %v1611_v48  ;;  %v3756_v48 = vld [vmem:[%s5186_s4 + $0x10] sm:$0xff] }
 0xad2   :  { %v1613_v0 = vmul.f32 0.5, %v1612_v8 }
 0xad4   :  { %v1614_v9 = vsub.f32 1.5, %v1613_v0 }
 0xad5   :  { %v3915_v62 = vpop.eup %3914 }
 0xad6   :  { %v1621_v21 = vmul.f32 %v3915_v62, %v1609_v7  ;;  %v1615_v16 = vmul.f32 %v3913_v6, %v1614_v9  ;;  %vm1627_vm7 = vweird.f32 %v3915_v62  ;;  %v3757_v7 = vld [vmem:[%s5186_s4 + $0x18] sm:$0xff] }
 0xad7   :  { %vm1628_vm11 = vmor %vm1626_vm8, %vm1627_vm7  ;;  %1887 = vmatpush.bf16.msra.mxu3 %v3757_v7 }
 0xad8   :  { %v1622_v24 = vmul.f32 %v3915_v62, %v1621_v21  ;;  %v1619_v13 = vsel %vm1618_vm6, %v3913_v6, %v1615_v16 }
 0xad9   :  { %v1630_v15 = vmul.f32 %v1619_v13, %v1596_v40 }
 0xada   :  { %v1623_v10 = vmul.f32 0.5, %v1622_v24 }
 0xadb   :  { %v1636_v25 = vmul.f32 %v1634_v37, %v1630_v15  ;;  %1888 = vmatpush.bf16.msra.mxu3 %v3756_v48 }
 0xadc   :  { %v1624_v41 = vsub.f32 1.5, %v1623_v10 }
 0xadd   :  { %v1640_v44 = vpop.permute.xlu0 %1639 }
 0xade   :  { %v1625_v12 = vmul.f32 %v3915_v62, %v1624_v41  ;;  %v1642_v46 = vadd.f32 %v1640_v44, %v1636_v25 }
 0xae0   :  { %v1629_v38 = vsel %vm1628_vm11, %v3915_v62, %v1625_v12 }
 0xae1   :  { %v1631_v39 = vmul.f32 %v1629_v38, %v1597_v1 }
 0xae3   :  { %v1637_v28 = vmul.f32 %v1634_v37, %v1631_v39 }
 0xae5   :  { %v1643_v47 = vadd.f32 %v1640_v44, %v1637_v28 }
 0xae7   :  { %v1644_v20 = vpack.c.bf16 %v1643_v47, %v1642_v46 }
 0xae9   :  { %3591 = vmatmul.msk.bf16.vlgmr.msrb.gmra.mxu1 %vm79_vm0, %v1644_v20 }
 0xb66   :  { %v1674_v53 = vpop.f32.mrf.mxu1 }
 0xb67   :  { %v1675_v43 = vadd.f32 %v1674_v53, %v1649_v17 }
 0xb69   :  { %v1679_v32 = vmax.f32 %v1675_v43, 0.0  ;;  %v4745_v43 = vld [vmem:[%s5188_s2 + $0x8] sm:$0xff]  ;;  %s4027_s2 = smov 32  }
 0xb6e   :  { %v1676_v54 = vpop.f32.mrf.mxu1 }
 0xb6f   :  { %v1677_v30 = vadd.f32 %v1676_v54, %v1649_v17 }
 0xb71   :  { %v1680_v36 = vmax.f32 %v1677_v30, 0.0 }
 0xb73   :  { %v1681_v56 = vpack.c.bf16 %v1680_v36, %v1679_v32  ;;  %v4753_v32 = vld [vmem:[%s5190_s9 + $0x8] sm:$0x1f] }
 0xb74   :  { %v1865_v36 = vperm.slane %v4753_v32, 0 }
 0xb75   :  { %3608 = vmatmul.msk.bf16.vlgmr.msra.gmra.mxu2 %vm1718_vm12, %v1681_v56 }
 0xbf8   :  { %v1731_v58 = vpop.f32.mrf.mxu2 }
 0xbf9   :  { %v1732_v22 = vadd.f32 %v1731_v58, %v1716_v18 }
 0xbfb   :  { %v1736_v60 = vadd.f32 %v1732_v22, %v1642_v46 }
 0xbfd   :  { %v1738_v40 = vsel %vm79_vm0, %v1736_v60, 0.0 }
 0xbfe   :  { %1739 = vadd.xlane.f32.xlu0 %v1738_v40 }
 0xc00   :  { %v1733_v49 = vpop.f32.mrf.mxu2 }
 0xc01   :  { %v1734_v57 = vadd.f32 %v1733_v49, %v1716_v18 }
 0xc03   :  { %v1737_v4 = vadd.f32 %v1734_v57, %v1643_v47 }
 0xc05   :  { %v1741_v63 = vsel %vm79_vm0, %v1737_v4, 0.0 }
 0xc06   :  { %1742 = vadd.xlane.f32.xlu1 %v1741_v63 }
 0xc1f   :  { %1782 = vrot.lane.b32.xlu1 %v4438_v11, %s4012_s22 }
 0xc71   :  { %v1740_v1 = vpop.xlane.xlu0 %1739 }
 0xc72   :  { %v1744_v2 = vmul.f32 %v1740_v1, %v4413_v19 }
 0xc74   :  { %v1746_v35 = vsub.f32 %v1736_v60, %v1744_v2 }
 0xc76   :  { %v1748_v23 = vmul.f32 %v1746_v35, %v1746_v35 }
 0xc78   :  { %v1750_v26 = vsel %vm79_vm0, %v1748_v23, 0.0 }
 0xc79   :  { %v1743_v45 = vpop.xlane.xlu1 %1742  ;;  %1751 = vadd.xlane.f32.xlu2 %v1750_v26 }
 0xc7a   :  { %v1745_v29 = vmul.f32 %v1743_v45, %v4413_v19 }
 0xc7c   :  { %v1747_v31 = vsub.f32 %v1737_v4, %v1745_v29 }
 0xc7e   :  { %v1749_v17 = vmul.f32 %v1747_v31, %v1747_v31 }
 0xc80   :  { %v1753_v42 = vsel %vm79_vm0, %v1749_v17, 0.0 }
 0xc81   :  { %1754 = vadd.xlane.f32.xlu0 %v1753_v42 }
 0xc91   :  { %v1783_v25 = vpop.permute.xlu1 %1782 }
 0xc95   :  { %1787 = vrot.lane.b32.xlu0 %v4442_v55, %s4012_s22 }
 0xcec   :  { %v1752_v11 = vpop.xlane.xlu2 %1751 }
 0xced   :  { %v1756_v51 = vmul.f32 %v1752_v11, %v4413_v19 }
 0xcef   :  { %v1758_v6 = vadd.f32 1e-05, %v1756_v51 }
 0xcf1   :  { %3916 = vrsqrt.f32 %v1758_v6  ;;  %vm1766_vm14 = vweird.f32 %v1758_v6 }
 0xcf4   :  { %v1755_v8 = vpop.xlane.xlu0 %1754 }
 0xcf5   :  { %v1757_v0 = vmul.f32 %v1755_v8, %v4413_v19 }
 0xcf7   :  { %v3917_v9 = vpop.eup %3916  ;;  %v1759_v55 = vadd.f32 1e-05, %v1757_v0 }
 0xcf8   :  { %v1761_v62 = vmul.f32 %v3917_v9, %v1758_v6  ;;  %vm1767_vm13 = vweird.f32 %v3917_v9 }
 0xcf9   :  { %3918 = vrsqrt.f32 %v1759_v55  ;;  %vm1768_vm15 = vmor %vm1766_vm14, %vm1767_vm13  ;;  %vm1776_vm4 = vweird.f32 %v1759_v55 }
 0xcfa   :  { %v1762_v21 = vmul.f32 %v3917_v9, %v1761_v62 }
 0xcfc   :  { %v1763_v16 = vmul.f32 0.5, %v1762_v21 }
 0xcfe   :  { %v1764_v24 = vsub.f32 1.5, %v1763_v16 }
 0xcff   :  { %v3919_v10 = vpop.eup %3918 }
 0xd00   :  { %v1771_v13 = vmul.f32 %v3919_v10, %v1759_v55  ;;  %v1765_v41 = vmul.f32 %v3917_v9, %v1764_v24  ;;  %vm1777_vm3 = vweird.f32 %v3919_v10 }
 0xd01   :  { %vm1778_vm5 = vmor %vm1776_vm4, %vm1777_vm3 }
 0xd02   :  { %v1772_v15 = vmul.f32 %v3919_v10, %v1771_v13  ;;  %v1769_v37 = vsel %vm1768_vm15, %v3917_v9, %v1765_v41 }
 0xd03   :  { %v1780_v38 = vmul.f32 %v1769_v37, %v1746_v35 }
 0xd04   :  { %v1773_v12 = vmul.f32 0.5, %v1772_v15 }
 0xd05   :  { %v1785_v28 = vmul.f32 %v1783_v25, %v1780_v38 }
 0xd06   :  { %v1774_v39 = vsub.f32 1.5, %v1773_v12 }
 0xd07   :  { %v1788_v47 = vpop.permute.xlu0 %1787 }
 0xd08   :  { %v1775_v44 = vmul.f32 %v3919_v10, %v1774_v39  ;;  %v4731_v50 = vadd.f32 %v1788_v47, %v1785_v28 }
 0xd0a   :  { %v1779_v46 = vsel %vm1778_vm5, %v3919_v10, %v1775_v44  ;;  %v1857_v53 = vadd.f32 %v4738_v34, %v4731_v50 }
 0xd0b   :  { %v1781_v20 = vmul.f32 %v1779_v46, %v1747_v31 }
 0xd0d   :  { %v1786_v61 = vmul.f32 %v1783_v25, %v1781_v20 }
 0xd0f   :  { %v4733_v52 = vadd.f32 %v1788_v47, %v1786_v61 }
 0xd11   :  { %v1858_v54 = vadd.f32 %v4745_v43, %v4733_v52 }
 0xd13   :  { %v1859_v30 = vpack.c.bf16 %v1858_v54, %v1857_v53 }
 0xd15   :  { %3634 = vmatmul.msk.bf16.vlgmr.msra.gmra.mxu3 %vm79_vm0, %v1859_v30 }
 0xd98   :  { %v1890_v56 = vpop.f32.mrf.mxu3 }
 0xd99   :  { %v4756_v18 = vadd.f32 %v1890_v56, %v1865_v36 }
 0xd9b   :  { %v1907_v58 = vpack.c.bf16 %v4756_v18, %v4756_v18  ;;  %v1903_v22 = vmul.f32 0.35355338, %v4756_v18 }
 0xd9d   :  { %v1910_v60 = vunpack.c.l.b16 %v1907_v58  ;;  %v1905_v49 = vpack.c.bf16 %v1903_v22, %v1903_v22 }
 0xd9f   :  { %v1911_v40 = vpack.c.b16 %v1910_v60, %v1910_v60  ;;  %v1958_v2 = vunpack.c.l.b16 %v1905_v49 }
 0xda0   :  { %v1892_v57 = vpop.f32.mrf.mxu3 }
 0xda1   :  { %v1893_v4 = vadd.f32 %v1892_v57, %v1865_v36  ;;  %1912 = vrot.lane.b32.xlu0 %v1911_v40, %s4015_s12  ;;  %1962 = vrot.lane.b32.xlu2 %v1911_v40, %s4014_s30  ;;  %v1959_v45 = vpack.c.b16 %v1958_v2, %v1958_v2 }
 0xda3   :  { %v1904_v63 = vmul.f32 0.35355338, %v1893_v4  ;;  %v1908_v1 = vpack.c.bf16 %v1893_v4, %v1893_v4 }
 0xda5   :  { %v1934_v35 = vunpack.c.l.b16 %v1908_v1  ;;  %v1906_v23 = vpack.c.bf16 %v1904_v63, %v1904_v63 }
 0xda7   :  { %v1935_v26 = vpack.c.b16 %v1934_v35, %v1934_v35  ;;  %v1984_v29 = vunpack.c.l.b16 %v1906_v23 }
 0xda9   :  { %1988 = vrot.lane.b32.xlu1 %v1935_v26, %s4014_s30  ;;  %1936 = vrot.lane.b32.xlu2 %v1935_v26, %s4015_s12  ;;  %v1985_v31 = vpack.c.b16 %v1984_v29, %v1984_v29 }
 0xdaa   :  { %1960 = vrot.lane.b32.xlu0 %v1959_v45, %s4016_s21 }
 0xdb1   :  { %1986 = vrot.lane.b32.xlu1 %v1985_v31, %s4016_s21  ;;  %2055 = vrot.lane.b32.xlu2 %v1959_v45, %s4018_s1 }
 0xdb2   :  { %2080 = vrot.lane.b32.xlu0 %v1935_v26, %s4017_s15 }
 0xdb9   :  { %2057 = vrot.lane.b32.xlu1 %v1911_v40, %s4017_s15  ;;  %2034 = vrot.lane.b32.xlu2 %v1935_v26, %s4013_s29 }
 0xdba   :  { %2011 = vrot.lane.b32.xlu0 %v1911_v40, %s4013_s29 }
 0xdc1   :  { %2078 = vrot.lane.b32.xlu1 %v1985_v31, %s4018_s1  ;;  %1897 = vrot.lane.b32.xlu2 %v4233_v33, %s4027_s2 }
 0xdc2   :  { %2032 = vrot.lane.b32.xlu0 %v1985_v31, %s4019_s16 }
 0xdc9   :  { %2009 = vrot.lane.b32.xlu1 %v1959_v45, %s4019_s16 }
 0xdca   :  { %1895 = vrot.lane.b32.xlu0 %v4192_v59, %s4027_s2 }
 0xdfb   :  { %v1963_v17 = vpop.permute.xlu2 %1962 }
 0xdfc   :  { %v1968_v42 = vsel %vm238_vm1, %v1963_v17, 0 }
 0xdfd   :  { %1977 = vmatpush.bf16.xpose.msrb.mxu2 %v1968_v42 }
 0xe03   :  { %v1937_v11 = vpop.permute.xlu2 %1936 }
 0xe04   :  { %v1942_v51 = vsel %vm238_vm1, %v1937_v11, 0 }
 0xe05   :  { %1951 = vmatpush.bf16.xpose.msra.mxu1 %v1942_v51 }
 0xe0b   :  { %v2056_v6 = vpop.permute.xlu2 %2055 }
 0xe0c   :  { %3636 = vmatmul.msk.bf16.vlgmr.msra.gmra.mxu1 %vm238_vm1, %v1906_v23 }
 0xe13   :  { %v1913_v7 = vpop.permute.xlu0 %1912  ;;  %v2035_v48 = vpop.permute.xlu2 %2034 }
 0xe14   :  { %v1918_v33 = vsel %vm238_vm1, %v1913_v7, 0  ;;  %v2040_v8 = vsel %vm238_vm1, %v2035_v48, 0 }
 0xe15   :  { %1927 = vmatpush.bf16.xpose.msra.mxu0 %v1918_v33  ;;  %2049 = vmatpush.bf16.xpose.msrb.mxu1 %v2040_v8 }
 0xe1b   :  { %v1989_v59 = vpop.permute.xlu1 %1988  ;;  %v1898_v0 = vpop.permute.xlu2 %1897 }
 0xe1c   :  { %v1994_v9 = vsel %vm238_vm1, %v1989_v59, 0  ;;  %v1902_v55 = vsub.f32 %v1893_v4, %v1898_v0  ;;  %v1961_v62 = vpop.permute.xlu0 %1960  ;;  %3635 = vmatmul.msk.bf16.vlgmr.msra.gmra.mxu0 %vm238_vm1, %v1905_v49 }
 0xe1d   :  { %3637 = vmatmul.msk.bf16.vlgmr.msrb.gmra.mxu2 %vm238_vm1, %v1961_v62  ;;  %2003 = vmatpush.bf16.xpose.msrb.mxu3 %v1994_v9 }
 0xe1e   :  { %v2296_v21 = vpack.c.bf16 %v1902_v55, %v1902_v55 }
 0xe20   :  { %v2322_v16 = vunpack.c.l.b16 %v2296_v21 }
 0xe22   :  { %v4785_v24 = vpack.c.b16 %v2322_v16, %v2322_v16 }
 0xe23   :  { %v1987_v10 = vpop.permute.xlu1 %1986 }
 0xe24   :  { %v2081_v13 = vpop.permute.xlu0 %2080  ;;  %3638 = vmatmul.msk.bf16.vlgmr.msrb.gmra.mxu3 %vm238_vm1, %v1987_v10  ;;  %2368 = vrot.lane.b32.xlu0 %v4785_v24, %s4020_s3 }
 0xe25   :  { %v2086_v41 = vsel %vm238_vm1, %v2081_v13, 0 }
 0xe26   :  { %2095 = vmatpush.bf16.xpose.msra.mxu3 %v2086_v41 }
 0xe2b   :  { %v2058_v15 = vpop.permute.xlu1 %2057 }
 0xe2c   :  { %v2063_v37 = vsel %vm238_vm1, %v2058_v15, 0  ;;  %v2012_v12 = vpop.permute.xlu0 %2011 }
 0xe2d   :  { %v2017_v38 = vsel %vm238_vm1, %v2012_v12, 0  ;;  %2072 = vmatpush.bf16.xpose.msra.mxu2 %v2063_v37 }
 0xe2e   :  { %2026 = vmatpush.bf16.xpose.msrb.mxu0 %v2017_v38 }
 0xe33   :  { %v2079_v39 = vpop.permute.xlu1 %2078 }
 0xe34   :  { %v2033_v25 = vpop.permute.xlu0 %2032  ;;  %3641 = vmatmul.msk.bf16.vlgmr.msra.gmra.mxu2 %vm238_vm1, %v2056_v6  ;;  %3642 = vmatmul.msk.bf16.vlgmr.msra.gmra.mxu3 %vm238_vm1, %v2079_v39 }
 0xe35   :  { %3640 = vmatmul.msk.bf16.vlgmr.msrb.gmra.mxu1 %vm238_vm1, %v2033_v25 }
 0xe3b   :  { %v2010_v44 = vpop.permute.xlu1 %2009 }
 0xe3c   :  { %v1896_v28 = vpop.permute.xlu0 %1895  ;;  %3639 = vmatmul.msk.bf16.vlgmr.msrb.gmra.mxu0 %vm238_vm1, %v2010_v44 }
 0xe3d   :  { %v1901_v46 = vsub.f32 %v4756_v18, %v1896_v28 }
 0xe3f   :  { %v2295_v47 = vpack.c.bf16 %v1901_v46, %v1901_v46 }
 0xe41   :  { %v2298_v20 = vunpack.c.l.b16 %v2295_v47 }
 0xe43   :  { %v4798_v61 = vpack.c.b16 %v2298_v20, %v2298_v20 }
 0xe45   :  { %2347 = vrot.lane.b32.xlu1 %v4798_v61, %s4020_s3 }
 0xe89   :  { %v1953_v53 = vpop.f32.mrf.mxu1 }
 0xe8a   :  { %v2104_v4 = vsel %vm238_vm1, %v1953_v53, -inf }
 0xe91   :  { %v1955_v54 = vpop.f32.mrf.mxu1 }
 0xe96   :  { %v2369_v30 = vpop.permute.xlu0 %2368 }
 0xe97   :  { %v2374_v36 = vsel %vm630_vm2, %v2369_v30, 0 }
 0xe98   :  { %2383 = vmatpush.bf16.msrb.mxu3 %v2374_v36 }
 0xe99   :  { %v1929_v56 = vpop.f32.mrf.mxu0 }
 0xe9a   :  { %v2101_v58 = vsel %vm238_vm1, %v1929_v56, -inf }
 0xe9b   :  { %2102 = vmax.xlane.f32.xlu0 %v2101_v58 }
 0xea0   :  { %v1979_v22 = vpop.f32.mrf.mxu2 }
 0xea1   :  { %v2107_v18 = vsel %vm238_vm1, %v1979_v22, -inf  ;;  %v1931_v60 = vpop.f32.mrf.mxu0 }
 0xea2   :  { %2108 = vmax.xlane.f32.xlu2 %v2107_v18 }
 0xea7   :  { %v2005_v40 = vpop.f32.mrf.mxu3 }
 0xea8   :  { %v1981_v49 = vpop.f32.mrf.mxu2  ;;  %v2110_v57 = vsel %vm238_vm1, %v2005_v40, -inf }
 0xea9   :  { %2111 = vmax.xlane.f32.xlu1 %v2110_v57 }
 0xeaa   :  { %2105 = vmax.xlane.f32.xlu2 %v2104_v4 }
 0xeaf   :  { %v2007_v63 = vpop.f32.mrf.mxu3  ;;  %2324 = vrot.lane.b32.xlu0 %v4785_v24, %s4012_s22 }
 0xeb2   :  { %v4809_v1 = vpop.f32.mrf.mxu1 }
 0xeb3   :  { %v2116_v51 = vsel %vm238_vm1, %v4809_v1, -inf }
 0xeb7   :  { %v2348_v2 = vpop.permute.xlu1 %2347  ;;  %v2074_v35 = vpop.f32.mrf.mxu2 }
 0xeb8   :  { %v2353_v23 = vsel %vm630_vm2, %v2348_v2, 0  ;;  %v4812_v26 = vpop.f32.mrf.mxu3  ;;  %v2119_v45 = vsel %vm238_vm1, %v2074_v35, -inf }
 0xeb9   :  { %2362 = vmatpush.bf16.msrb.mxu2 %v2353_v23  ;;  %2120 = vmax.xlane.f32.xlu1 %v2119_v45  ;;  %v2028_v29 = vpop.f32.mrf.mxu0  ;;  %v2122_v7 = vsel %vm238_vm1, %v4812_v26, -inf }
 0xeba   :  { %v2053_v31 = vpop.f32.mrf.mxu1  ;;  %v2113_v17 = vsel %vm238_vm1, %v2028_v29, -inf }
 0xebb   :  { %2114 = vmax.xlane.f32.xlu2 %v2113_v17 }
 0xebf   :  { %v2076_v42 = vpop.f32.mrf.mxu2 }
 0xec0   :  { %v2099_v11 = vpop.f32.mrf.mxu3 }
 0xec1   :  { %2117 = vmax.xlane.f32.xlu1 %v2116_v51  ;;  %v2030_v6 = vpop.f32.mrf.mxu0 }
 0xed3   :  { %2300 = vrot.lane.b32.xlu2 %v4798_v61, %s4012_s22 }
 0xed9   :  { %2123 = vmax.xlane.f32.xlu0 %v2122_v7 }
 0xeed   :  { %2435 = vrot.lane.b32.xlu0 %v4798_v61, %s4022_s18 }
 0xf0e   :  { %v2103_v48 = vpop.xlane.xlu0 %2102 }
 0xf0f   :  { %v2125_v33 = vsub.f32 %v1929_v56, %v2103_v48 }
 0xf11   :  { %v2133_v8 = vmul.f32 1.442695, %v2125_v33 }
 0xf13   :  { %3920 = vpow2.f32 %v2133_v8 }
 0xf15   :  { %v2109_v59 = vpop.xlane.xlu2 %2108 }
 0xf16   :  { %v2127_v0 = vsub.f32 %v1979_v22, %v2109_v59 }
 0xf18   :  { %v2137_v9 = vmul.f32 1.442695, %v2127_v0 }
 0xf19   :  { %v4824_v55 = vpop.eup %3920 }
 0xf1a   :  { %3922 = vpow2.f32 %v2137_v9  ;;  %v2149_v62 = vsel %vm238_vm1, %v4824_v55, 0.0 }
 0xf1b   :  { %2150 = vadd.xlane.f32.xlu0 %v2149_v62 }
 0xf1c   :  { %v2112_v16 = vpop.xlane.xlu1 %2111 }
 0xf1d   :  { %v2106_v21 = vpop.xlane.xlu2 %2105  ;;  %v2128_v15 = vsub.f32 %v2005_v40, %v2112_v16 }
 0xf1e   :  { %v2126_v10 = vsub.f32 %v1953_v53, %v2106_v21 }
 0xf1f   :  { %v2139_v39 = vmul.f32 1.442695, %v2128_v15 }
 0xf20   :  { %v4828_v13 = vpop.eup %3922  ;;  %v2135_v41 = vmul.f32 1.442695, %v2126_v10 }
 0xf21   :  { %v2155_v37 = vsel %vm238_vm1, %v4828_v13, 0.0  ;;  %v2325_v12 = vpop.permute.xlu0 %2324 }
 0xf22   :  { %3924 = vpow2.f32 %v2135_v41  ;;  %2156 = vadd.xlane.f32.xlu1 %v2155_v37  ;;  %v2330_v38 = vsel %vm630_vm2, %v2325_v12, 0 }
 0xf23   :  { %2339 = vmatpush.bf16.msra.mxu1 %v2330_v38  ;;  %3926 = vpow2.f32 %v2139_v39 }
 0xf28   :  { %v4833_v25 = vpop.eup %3924 }
 0xf29   :  { %v2152_v44 = vsel %vm238_vm1, %v4833_v25, 0.0  ;;  %v4837_v47 = vpop.eup %3926 }
 0xf2a   :  { %2153 = vadd.xlane.f32.xlu1 %v2152_v44  ;;  %v2158_v36 = vsel %vm238_vm1, %v4837_v47, 0.0 }
 0xf2c   :  { %v2121_v28 = vpop.xlane.xlu1 %2120 }
 0xf2d   :  { %v2131_v46 = vsub.f32 %v2074_v35, %v2121_v28 }
 0xf2e   :  { %v2115_v20 = vpop.xlane.xlu2 %2114 }
 0xf2f   :  { %v2145_v53 = vmul.f32 1.442695, %v2131_v46  ;;  %v2129_v54 = vsub.f32 %v2028_v29, %v2115_v20  ;;  %2456 = vrot.lane.b32.xlu0 %v4785_v24, %s4022_s18 }
 0xf31   :  { %3928 = vpow2.f32 %v2145_v53  ;;  %v2141_v30 = vmul.f32 1.442695, %v2129_v54 }
 0xf32   :  { %2159 = vadd.xlane.f32.xlu1 %v2158_v36 }
 0xf33   :  { %3930 = vpow2.f32 %v2141_v30 }
 0xf34   :  { %v2118_v56 = vpop.xlane.xlu1 %2117 }
 0xf35   :  { %v2130_v58 = vsub.f32 %v4809_v1, %v2118_v56 }
 0xf36   :  { %v2301_v22 = vpop.permute.xlu2 %2300 }
 0xf37   :  { %v4844_v18 = vpop.eup %3928  ;;  %v2143_v60 = vmul.f32 1.442695, %v2130_v58  ;;  %v2306_v40 = vsel %vm630_vm2, %v2301_v22, 0 }
 0xf38   :  { %2315 = vmatpush.bf16.msra.mxu0 %v2306_v40  ;;  %v2167_v49 = vsel %vm238_vm1, %v4844_v18, 0.0 }
 0xf39   :  { %v4849_v57 = vpop.eup %3930  ;;  %3932 = vpow2.f32 %v2143_v60  ;;  %2168 = vadd.xlane.f32.xlu2 %v2167_v49 }
 0xf3a   :  { %v2161_v4 = vsel %vm238_vm1, %v4849_v57, 0.0 }
 0xf3b   :  { %2162 = vadd.xlane.f32.xlu1 %v2161_v4 }
 0xf3f   :  { %v4853_v63 = vpop.eup %3932 }
 0xf40   :  { %v2164_v1 = vsel %vm238_vm1, %v4853_v63, 0.0 }
 0xf41   :  { %2165 = vadd.xlane.f32.xlu2 %v2164_v1 }
 0xf4c   :  { %v2124_v2 = vpop.xlane.xlu0 %2123 }
 0xf4d   :  { %v2132_v35 = vsub.f32 %v4812_v26, %v2124_v2 }
 0xf4f   :  { %v2147_v23 = vmul.f32 1.442695, %v2132_v35 }
 0xf51   :  { %3934 = vpow2.f32 %v2147_v23 }
 0xf57   :  { %v4858_v45 = vpop.eup %3934 }
 0xf58   :  { %v2170_v29 = vsel %vm238_vm1, %v4858_v45, 0.0 }
 0xf59   :  { %2391 = vrot.lane.b32.xlu2 %v4798_v61, %s4021_s17  ;;  %2171 = vadd.xlane.f32.xlu1 %v2170_v29 }
 0xf5f   :  { %v2436_v31 = vpop.permute.xlu0 %2435 }
 0xf60   :  { %v2441_v17 = vsel %vm630_vm2, %v2436_v31, 0 }
 0xf61   :  { %2450 = vmatpush.bf16.msra.mxu2 %v2441_v17 }
 0xf72   :  { %2412 = vrot.lane.b32.xlu1 %v4785_v24, %s4021_s17 }
 0xf8e   :  { %v2151_v42 = vpop.xlane.xlu0 %2150 }
 0xf8f   :  { %3936 = vrcp.f32 %v2151_v42  ;;  %v2184_v7 = vand.u32 2147483648, %v2151_v42  ;;  %v2182_v33 = vand.u32 2147483647, %v2151_v42  ;;  %vm2178_vm7 = vweird.f32 %v2151_v42 }
 0xf91   :  { %v2185_v59 = vor.u32 1.1754944e-38, %v2184_v7  ;;  %vm2183_vm11 = vcmp.eq.f32.partialorder %v2182_v33, 8.507059e+37 }
 0xf95   :  { %v3937_v26 = vpop.eup %3936  ;;  %v2157_v11 = vpop.xlane.xlu1 %2156 }
 0xf96   :  { %v2174_v51 = vmul.f32 %v3937_v26, %v2151_v42  ;;  %3938 = vrcp.f32 %v2157_v11  ;;  %vm2179_vm6 = vweird.f32 %v3937_v26  ;;  %v2214_v10 = vand.u32 2147483648, %v2157_v11 }
 0xf97   :  { %vm2180_vm8 = vmor %vm2178_vm7, %vm2179_vm6  ;;  %v2212_v15 = vand.u32 2147483647, %v2157_v11  ;;  %vm2208_vm14 = vweird.f32 %v2157_v11 }
 0xf98   :  { %v2175_v6 = vsub.f32 1.0, %v2174_v51  ;;  %v2215_v28 = vor.u32 1.1754944e-38, %v2214_v10 }
 0xf99   :  { %vm2213_vm3 = vcmp.eq.f32.partialorder %v2212_v15, 8.507059e+37 }
 0xf9a   :  { %v2176_v48 = vmul.f32 %v3937_v26, %v2175_v6 }
 0xf9c   :  { %v3939_v61 = vpop.eup %3938  ;;  %v2177_v8 = vadd.f32 %v3937_v26, %v2176_v48 }
 0xf9d   :  { %v2204_v0 = vmul.f32 %v3939_v61, %v2157_v11  ;;  %v2154_v9 = vpop.xlane.xlu1 %2153  ;;  %vm2209_vm13 = vweird.f32 %v3939_v61 }
 0xf9e   :  { %v2181_v62 = vsel %vm2180_vm8, %v3937_v26, %v2177_v8  ;;  %3940 = vrcp.f32 %v2154_v9  ;;  %vm2210_vm15 = vmor %vm2208_vm14, %vm2209_vm13  ;;  %v2199_v36 = vand.u32 2147483648, %v2154_v9  ;;  %v2197_v22 = vand.u32 2147483647, %v2154_v9 }
 0xf9f   :  { %v2186_v24 = vsel %vm2183_vm11, %v2185_v59, %v2181_v62  ;;  %v2205_v21 = vsub.f32 1.0, %v2204_v0  ;;  %vm2193_vm5 = vweird.f32 %v2154_v9 }
 0xfa0   :  { %v2187_v16 = vmul.f32 %v4824_v55, %v2186_v24  ;;  %v2200_v49 = vor.u32 1.1754944e-38, %v2199_v36  ;;  %vm2198_vm7 = vcmp.eq.f32.partialorder %v2197_v22, 8.507059e+37 }
 0xfa1   :  { %v2206_v41 = vmul.f32 %v3939_v61, %v2205_v21  ;;  %v2457_v37 = vpop.permute.xlu0 %2456 }
 0xfa2   :  { %v2293_v12 = vpack.c.bf16 %v2187_v16, %v2187_v16  ;;  %v2462_v38 = vsel %vm630_vm2, %v2457_v37, 0 }
 0xfa3   :  { %v2207_v39 = vadd.f32 %v3939_v61, %v2206_v41  ;;  %2471 = vmatpush.bf16.msra.mxu3 %v2462_v38 }
 0xfa4   :  { %v3941_v44 = vpop.eup %3940  ;;  %3643 = vmatmul.msk.bf16.vlgmr.msra.gmra.mxu0 %vm238_vm1, %v2293_v12 }
 0xfa5   :  { %v2211_v46 = vsel %vm2210_vm15, %v3939_v61, %v2207_v39  ;;  %v2189_v20 = vmul.f32 %v3941_v44, %v2154_v9  ;;  %v2160_v55 = vpop.xlane.xlu1 %2159  ;;  %vm2194_vm4 = vweird.f32 %v3941_v44 }
 0xfa6   :  { %v2216_v53 = vsel %vm2213_vm3, %v2215_v28, %v2211_v46  ;;  %3942 = vrcp.f32 %v2160_v55  ;;  %vm2195_vm6 = vmor %vm2193_vm5, %vm2194_vm4  ;;  %v2229_v31 = vand.u32 2147483648, %v2160_v55  ;;  %v2227_v26 = vand.u32 2147483647, %v2160_v55 }
 0xfa7   :  { %v2217_v54 = vmul.f32 %v4828_v13, %v2216_v53  ;;  %v2190_v30 = vsub.f32 1.0, %v2189_v20  ;;  %vm2223_vm11 = vweird.f32 %v2160_v55 }
 0xfa8   :  { %v2230_v6 = vor.u32 1.1754944e-38, %v2229_v31  ;;  %vm2228_vm14 = vcmp.eq.f32.partialorder %v2227_v26, 8.507059e+37 }
 0xfa9   :  { %v2345_v56 = vpack.c.bf16 %v2217_v54, %v2217_v54  ;;  %v2191_v58 = vmul.f32 %v3941_v44, %v2190_v30 }
 0xfab   :  { %v2192_v60 = vadd.f32 %v3941_v44, %v2191_v58  ;;  %3645 = vmatmul.msk.bf16.vlgmr.msrb.gmra.mxu2 %vm238_vm1, %v2345_v56 }
 0xfac   :  { %v3943_v40 = vpop.eup %3942  ;;  %v2169_v4 = vpop.xlane.xlu2 %2168 }
 0xfad   :  { %v2196_v1 = vsel %vm2195_vm6, %v3941_v44, %v2192_v60  ;;  %v2219_v2 = vmul.f32 %v3943_v40, %v2160_v55  ;;  %3944 = vrcp.f32 %v2169_v4  ;;  %vm2224_vm8 = vweird.f32 %v3943_v40 }
 0xfae   :  { %v2201_v35 = vsel %vm2198_vm7, %v2200_v49, %v2196_v1  ;;  %v2163_v13 = vpop.xlane.xlu1 %2162  ;;  %vm2225_vm13 = vmor %vm2223_vm11, %vm2224_vm8  ;;  %v2274_v9 = vand.u32 2147483648, %v2169_v4  ;;  %v2272_v24 = vand.u32 2147483647, %v2169_v4  ;;  %vm2268_vm3 = vweird.f32 %v2169_v4 }
 0xfaf   :  { %v2202_v23 = vmul.f32 %v4833_v25, %v2201_v35  ;;  %v2220_v29 = vsub.f32 1.0, %v2219_v2  ;;  %3946 = vrcp.f32 %v2163_v13  ;;  %v2244_v10 = vand.u32 2147483648, %v2163_v13 }
 0xfb0   :  { %v2242_v37 = vand.u32 2147483647, %v2163_v13  ;;  %v2275_v12 = vor.u32 1.1754944e-38, %v2274_v9  ;;  %vm2273_vm6 = vcmp.eq.f32.partialorder %v2272_v24, 8.507059e+37  ;;  %vm2238_vm7 = vweird.f32 %v2163_v13 }
 0xfb1   :  { %v2294_v17 = vpack.c.bf16 %v2202_v23, %v2202_v23  ;;  %v2221_v42 = vmul.f32 %v3943_v40, %v2220_v29  ;;  %v2245_v28 = vor.u32 1.1754944e-38, %v2244_v10 }
 0xfb2   :  { %vm2243_vm11 = vcmp.eq.f32.partialorder %v2242_v37, 8.507059e+37 }
 0xfb3   :  { %v3945_v11 = vpop.eup %3944  ;;  %v2222_v51 = vadd.f32 %v3943_v40, %v2221_v42  ;;  %3644 = vmatmul.msk.bf16.vlgmr.msra.gmra.mxu1 %vm238_vm1, %v2294_v17 }
 0xfb4   :  { %v2264_v7 = vmul.f32 %v3945_v11, %v2169_v4  ;;  %v4874_v48 = vpop.xlane.xlu2 %2165  ;;  %vm2269_vm15 = vweird.f32 %v3945_v11 }
 0xfb5   :  { %v3947_v33 = vpop.eup %3946  ;;  %v2226_v61 = vsel %vm2225_vm13, %v3943_v40, %v2222_v51  ;;  %vm2270_vm5 = vmor %vm2268_vm3, %vm2269_vm15  ;;  %3948 = vrcp.f32 %v4874_v48  ;;  %vm2253_vm3 = vweird.f32 %v4874_v48  ;;  %v2257_v29 = vand.u32 2147483647, %v4874_v48 }
 0xfb6   :  { %v2231_v25 = vsel %vm2228_vm14, %v2230_v6, %v2226_v61  ;;  %v2265_v8 = vsub.f32 1.0, %v2264_v7  ;;  %v2234_v59 = vmul.f32 %v3947_v33, %v2163_v13  ;;  %vm2239_vm4 = vweird.f32 %v3947_v33 }
 0xfb7   :  { %v2232_v0 = vmul.f32 %v4837_v47, %v2231_v25  ;;  %vm2240_vm8 = vmor %vm2238_vm7, %vm2239_vm4  ;;  %v2259_v13 = vand.u32 2147483648, %v4874_v48  ;;  %vm2258_vm7 = vcmp.eq.f32.partialorder %v2257_v29, 8.507059e+37 }
 0xfb8   :  { %v2266_v62 = vmul.f32 %v3945_v11, %v2265_v8  ;;  %v2235_v21 = vsub.f32 1.0, %v2234_v59 }
 0xfb9   :  { %v2346_v16 = vpack.c.bf16 %v2232_v0, %v2232_v0 }
 0xfba   :  { %v2267_v41 = vadd.f32 %v3945_v11, %v2266_v62  ;;  %v2236_v15 = vmul.f32 %v3947_v33, %v2235_v21 }
 0xfbb   :  { %3646 = vmatmul.msk.bf16.vlgmr.msrb.gmra.mxu3 %vm238_vm1, %v2346_v16  ;;  %v3949_v56 = vpop.eup %3948 }
 0xfbc   :  { %v2271_v38 = vsel %vm2270_vm5, %v3945_v11, %v2267_v41  ;;  %v2237_v39 = vadd.f32 %v3947_v33, %v2236_v15  ;;  %v2392_v47 = vpop.permute.xlu2 %2391  ;;  %v2249_v22 = vmul.f32 %v3949_v56, %v4874_v48  ;;  %vm2254_vm14 = vweird.f32 %v3949_v56 }
 0xfbd   :  { %v2276_v44 = vsel %vm2273_vm6, %v2275_v12, %v2271_v38  ;;  %v2397_v46 = vsel %vm630_vm2, %v2392_v47, 0  ;;  %vm2255_vm5 = vmor %vm2253_vm3, %vm2254_vm14  ;;  %v2260_v11 = vor.u32 1.1754944e-38, %v2259_v13 }
 0xfbe   :  { %v2277_v20 = vmul.f32 %v4844_v18, %v2276_v44  ;;  %v2241_v55 = vsel %vm2240_vm8, %v3947_v33, %v2237_v39  ;;  %2406 = vmatpush.bf16.msrb.mxu0 %v2397_v46  ;;  %v2250_v18 = vsub.f32 1.0, %v2249_v22  ;;  %v3752_v46 = vld [vmem:[%s5193_s5 + $0x40] sm:$0xff] }
 0xfbf   :  { %v2246_v53 = vsel %vm2243_vm11, %v2245_v28, %v2241_v55  ;;  %v3753_v28 = vld [vmem:[%s5193_s5 + $0x48] sm:$0xff] }
 0xfc0   :  { %v2433_v54 = vpack.c.bf16 %v2277_v20, %v2277_v20  ;;  %v2247_v30 = vmul.f32 %v4849_v57, %v2246_v53  ;;  %v2251_v49 = vmul.f32 %v3949_v56, %v2250_v18  ;;  %v4903_v20 = vperm.slane %v4753_v32, 1 }
 0xfc2   :  { %v2389_v36 = vpack.c.bf16 %v2247_v30, %v2247_v30  ;;  %3649 = vmatmul.msk.bf16.vlgmr.msra.gmra.mxu2 %vm238_vm1, %v2433_v54  ;;  %v2252_v35 = vadd.f32 %v3949_v56, %v2251_v49  ;;  %2534 = vmatpush.bf16.msra.mxu0 %v3753_v28 }
 0xfc4   :  { %3647 = vmatmul.msk.bf16.vlgmr.msrb.gmra.mxu0 %vm238_vm1, %v2389_v36  ;;  %v2256_v42 = vsel %vm2255_vm5, %v3949_v56, %v2252_v35 }
 0xfc5   :  { %v2261_v6 = vsel %vm2258_vm7, %v2260_v11, %v2256_v42 }
 0xfc6   :  { %v2262_v33 = vmul.f32 %v4853_v63, %v2261_v6  ;;  %2535 = vmatpush.bf16.msra.mxu0 %v3752_v46  ;;  %v3750_v6 = vld [vmem:[%s5193_s5 + $0x30] sm:$0xff] }
 0xfc8   :  { %v2390_v25 = vpack.c.bf16 %v2262_v33, %v2262_v33 }
 0xfcc   :  { %v2172_v58 = vpop.xlane.xlu1 %2171 }
 0xfcd   :  { %3950 = vrcp.f32 %v2172_v58  ;;  %v2289_v1 = vand.u32 2147483648, %v2172_v58  ;;  %v2287_v57 = vand.u32 2147483647, %v2172_v58  ;;  %vm2283_vm15 = vweird.f32 %v2172_v58 }
 0xfcf   :  { %v2290_v31 = vor.u32 1.1754944e-38, %v2289_v1  ;;  %vm2288_vm6 = vcmp.eq.f32.partialorder %v2287_v57, 8.507059e+37 }
 0xfd3   :  { %v3951_v60 = vpop.eup %3950 }
 0xfd4   :  { %v2279_v40 = vmul.f32 %v3951_v60, %v2172_v58  ;;  %vm2284_vm13 = vweird.f32 %v3951_v60 }
 0xfd5   :  { %vm2285_vm4 = vmor %vm2283_vm15, %vm2284_vm13 }
 0xfd6   :  { %v2280_v4 = vsub.f32 1.0, %v2279_v40 }
 0xfd8   :  { %v2281_v2 = vmul.f32 %v3951_v60, %v2280_v4 }
 0xfda   :  { %v2282_v23 = vadd.f32 %v3951_v60, %v2281_v2 }
 0xfdc   :  { %v2286_v17 = vsel %vm2285_vm4, %v3951_v60, %v2282_v23 }
 0xfdd   :  { %v2291_v26 = vsel %vm2288_vm6, %v2290_v31, %v2286_v17 }
 0xfde   :  { %v2292_v51 = vmul.f32 %v4858_v45, %v2291_v26 }
 0xfe0   :  { %v2434_v7 = vpack.c.bf16 %v2292_v51, %v2292_v51  ;;  %v3751_v51 = vld [vmem:[%s5193_s5 + $0x38] sm:$0xff] }
 0xfe2   :  { %3650 = vmatmul.msk.bf16.vlgmr.msra.gmra.mxu3 %vm238_vm1, %v2434_v7 }
 0xfe4   :  { %v2413_v61 = vpop.permute.xlu1 %2412 }
 0xfe5   :  { %v2418_v48 = vsel %vm630_vm2, %v2413_v61, 0 }
 0xfe6   :  { %2427 = vmatpush.bf16.msrb.mxu1 %v2418_v48 }
 0xfe9   :  { %3648 = vmatmul.msk.bf16.vlgmr.msrb.gmra.mxu1 %vm238_vm1, %v2390_v25 }
 0xfea   :  { %2618 = vmatpush.bf16.msra.mxu1 %v3751_v51 }
 0xfee   :  { %2619 = vmatpush.bf16.msra.mxu1 %v3750_v6 }
0x1021   :  { %v2317_v8 = vpop.f32.mrf.mxu0 }
0x1029   :  { %v2319_v59 = vpop.f32.mrf.mxu0 }
0x102e   :  { %v2364_v0 = vpop.f32.mrf.mxu2 }
0x1030   :  { %v2341_v9 = vpop.f32.mrf.mxu1 }
0x1036   :  { %v2366_v62 = vpop.f32.mrf.mxu2 }
0x1038   :  { %v2343_v45 = vpop.f32.mrf.mxu1 }
0x103e   :  { %v2385_v24 = vpop.f32.mrf.mxu3 }
0x103f   :  { %v3810_v21 = vpack.i.bf16 %v2385_v24, %v2364_v0 }
0x1041   :  { %3811 = vrot.lane.b32.xlu0 %v3810_v21, %s4023_s8  ;;  %v2408_v16 = vpop.f32.mrf.mxu0 }
0x1045   :  { %v2452_v10 = vpop.f32.mrf.mxu2 }
0x1046   :  { %v2387_v63 = vpop.f32.mrf.mxu3 }
0x1049   :  { %v2410_v41 = vpop.f32.mrf.mxu0 }
0x104d   :  { %v2454_v15 = vpop.f32.mrf.mxu2 }
0x1065   :  { %v2473_v37 = vpop.f32.mrf.mxu3 }
0x1066   :  { %v3820_v12 = vpack.i.bf16 %v2473_v37, %v2452_v10  ;;  %v2429_v38 = vpop.f32.mrf.mxu1 }
0x1067   :  { %v3815_v39 = vpack.i.bf16 %v2429_v38, %v2408_v16 }
0x1068   :  { %3821 = vrot.lane.b32.xlu0 %v3820_v12, %s4024_s23 }
0x1069   :  { %3816 = vrot.lane.b32.xlu2 %v3815_v39, %s4025_s24 }
0x106d   :  { %v2475_v47 = vpop.f32.mrf.mxu3 }
0x106e   :  { %v2431_v44 = vpop.f32.mrf.mxu1 }
0x1071   :  { %2522 = vrot.lane.b32.xlu2 %v4903_v20, %s4015_s12 }
0x10b3   :  { %v3812_v55 = vpop.permute.xlu0 %3811 }
0x10b4   :  { %v3814_v54 = vunpack.i.h.bf16 %v3812_v55  ;;  %v3813_v30 = vunpack.i.l.bf16 %v3812_v55 }
0x10b6   :  { %v2502_v22 = vsel %vm238_vm1, %v2341_v9, %v3814_v54  ;;  %v2501_v18 = vsel %vm238_vm1, %v2317_v8, %v3813_v30 }
0x10c3   :  { %v3817_v53 = vpop.permute.xlu2 %3816 }
0x10c4   :  { %v3819_v36 = vunpack.i.h.bf16 %v3817_v53  ;;  %v3818_v56 = vunpack.i.l.bf16 %v3817_v53 }
0x10c6   :  { %v2504_v49 = vsel %vm829_vm9, %v2502_v22, %v3819_v36  ;;  %v2503_v4 = vsel %vm829_vm9, %v2501_v18, %v3818_v56 }
0x10cb   :  { %v2523_v35 = vpop.permute.xlu2 %2522 }
0x10da   :  { %v3822_v58 = vpop.permute.xlu0 %3821 }
0x10db   :  { %v3824_v60 = vunpack.i.h.bf16 %v3822_v58  ;;  %v3823_v40 = vunpack.i.l.bf16 %v3822_v58 }
0x10dd   :  { %v2505_v1 = vsel %vm832_vm10, %v2503_v4, %v3823_v40  ;;  %v2506_v2 = vsel %vm832_vm10, %v2504_v49, %v3824_v60  ;;  %v4947_v49 = vperm.slane %v4753_v32, 3 }
0x10de   :  { %v2507_v57 = vpack.c.bf16 %v2506_v2, %v2505_v1 }
0x10e0   :  { %3659 = vmatmul.msk.bf16.vlgmr.msra.gmra.mxu0 %vm79_vm0, %v2507_v57 }
0x115d   :  { %v2537_v13 = vpop.f32.mrf.mxu0 }
0x115e   :  { %v2538_v23 = vadd.f32 %v2537_v13, %v2523_v35  ;;  %v4952_v13 = vperm.slane %v4753_v32, 4 }
0x1160   :  { %v2542_v29 = vadd.f32 %v2538_v23, %v4731_v50 }
0x1162   :  { %v2544_v31 = vsel %vm79_vm0, %v2542_v29, 0.0 }
0x1163   :  { %2545 = vadd.xlane.f32.xlu0 %v2544_v31 }
0x1165   :  { %v2539_v17 = vpop.f32.mrf.mxu0 }
0x1166   :  { %v2540_v42 = vadd.f32 %v2539_v17, %v2523_v35 }
0x1168   :  { %v2543_v26 = vadd.f32 %v2540_v42, %v4733_v52 }
0x116a   :  { %v2547_v11 = vsel %vm79_vm0, %v2543_v26, 0.0 }
0x116b   :  { %2548 = vadd.xlane.f32.xlu2 %v2547_v11 }
0x1177   :  { %2630 = vrot.lane.b32.xlu0 %v4335_v27, %s4015_s12 }
0x117f   :  { %2703 = vrot.lane.b32.xlu0 %v4346_v14, %s4014_s30 }
0x1187   :  { %2726 = vrot.lane.b32.xlu0 %v4335_v27, %s4013_s29 }
0x11d6   :  { %v2546_v7 = vpop.xlane.xlu0 %2545 }
0x11d7   :  { %v2550_v33 = vmul.f32 %v2546_v7, %v4413_v19 }
0x11d9   :  { %v2552_v61 = vsub.f32 %v2542_v29, %v2550_v33 }
0x11db   :  { %v2554_v48 = vmul.f32 %v2552_v61, %v2552_v61 }
0x11dd   :  { %v2556_v25 = vsel %vm79_vm0, %v2554_v48, 0.0 }
0x11de   :  { %v2549_v8 = vpop.xlane.xlu2 %2548  ;;  %2557 = vadd.xlane.f32.xlu1 %v2556_v25 }
0x11df   :  { %v2551_v59 = vmul.f32 %v2549_v8, %v4413_v19 }
0x11e1   :  { %v2553_v0 = vsub.f32 %v2543_v26, %v2551_v59 }
0x11e3   :  { %v2555_v9 = vmul.f32 %v2553_v0, %v2553_v0 }
0x11e5   :  { %v2559_v62 = vsel %vm79_vm0, %v2555_v9, 0.0 }
0x11e6   :  { %2560 = vadd.xlane.f32.xlu2 %v2559_v62 }
0x11e9   :  { %v2631_v45 = vpop.permute.xlu0 %2630 }
0x11ea   :  { %v2636_v24 = vsel %vm238_vm1, %v2631_v45, 0 }
0x11eb   :  { %2645 = vmatpush.bf16.xpose.msrb.mxu2 %v2636_v24 }
0x11f1   :  { %v2704_v21 = vpop.permute.xlu0 %2703 }
0x11f2   :  { %v2709_v16 = vsel %vm238_vm1, %v2704_v21, 0 }
0x11f3   :  { %2718 = vmatpush.bf16.xpose.msrb.mxu1 %v2709_v16 }
0x11f7   :  { %2677 = vrot.lane.b32.xlu1 %v4335_v27, %s4014_s30 }
0x11f9   :  { %v2727_v10 = vpop.permute.xlu0 %2726 }
0x11fa   :  { %v2732_v63 = vsel %vm238_vm1, %v2727_v10, 0 }
0x11fb   :  { %2741 = vmatpush.bf16.xpose.msra.mxu2 %v2732_v63 }
0x11fe   :  { %2651 = vrot.lane.b32.xlu2 %v4346_v14, %s4015_s12 }
0x1206   :  { %2749 = vrot.lane.b32.xlu2 %v4346_v14, %s4013_s29 }
0x1251   :  { %v2558_v41 = vpop.xlane.xlu1 %2557 }
0x1252   :  { %v2562_v15 = vmul.f32 %v2558_v41, %v4413_v19 }
0x1254   :  { %v2564_v37 = vadd.f32 1e-05, %v2562_v15 }
0x1256   :  { %3952 = vrsqrt.f32 %v2564_v37  ;;  %vm2572_vm8 = vweird.f32 %v2564_v37 }
0x1259   :  { %v2561_v12 = vpop.xlane.xlu2 %2560 }
0x125a   :  { %v2563_v38 = vmul.f32 %v2561_v12, %v4413_v19 }
0x125c   :  { %v3953_v39 = vpop.eup %3952  ;;  %v2565_v47 = vadd.f32 1e-05, %v2563_v38 }
0x125d   :  { %v2567_v44 = vmul.f32 %v3953_v39, %v2564_v37  ;;  %vm2573_vm2 = vweird.f32 %v3953_v39 }
0x125e   :  { %3954 = vrsqrt.f32 %v2565_v47  ;;  %vm2574_vm11 = vmor %vm2572_vm8, %vm2573_vm2  ;;  %vm2582_vm14 = vweird.f32 %v2565_v47 }
0x125f   :  { %v2568_v28 = vmul.f32 %v3953_v39, %v2567_v44 }
0x1261   :  { %v2569_v46 = vmul.f32 0.5, %v2568_v28  ;;  %v2652_v55 = vpop.permute.xlu2 %2651 }
0x1262   :  { %v2657_v53 = vsel %vm238_vm1, %v2652_v55, 0 }
0x1263   :  { %v2570_v54 = vsub.f32 1.5, %v2569_v46  ;;  %2666 = vmatpush.bf16.xpose.msrb.mxu3 %v2657_v53 }
0x1264   :  { %v3955_v30 = vpop.eup %3954 }
0x1265   :  { %v2571_v36 = vmul.f32 %v3953_v39, %v2570_v54  ;;  %v2577_v56 = vmul.f32 %v3955_v30, %v2565_v47  ;;  %vm2583_vm13 = vweird.f32 %v3955_v30 }
0x1266   :  { %vm2584_vm15 = vmor %vm2582_vm14, %vm2583_vm13 }
0x1267   :  { %v2575_v58 = vsel %vm2574_vm11, %v3953_v39, %v2571_v36  ;;  %v2578_v22 = vmul.f32 %v3955_v30, %v2577_v56 }
0x1268   :  { %v2586_v4 = vmul.f32 %v2575_v58, %v2552_v61 }
0x1269   :  { %v2579_v18 = vmul.f32 0.5, %v2578_v22  ;;  %v2750_v60 = vpop.permute.xlu2 %2749  ;;  %v2678_v40 = vpop.permute.xlu1 %2677 }
0x126a   :  { %v2755_v1 = vsel %vm238_vm1, %v2750_v60, 0  ;;  %v2683_v2 = vsel %vm238_vm1, %v2678_v40, 0  ;;  %v2589_v23 = vmul.f32 %v4947_v49, %v2586_v4 }
0x126b   :  { %v2580_v57 = vsub.f32 1.5, %v2579_v18  ;;  %2692 = vmatpush.bf16.xpose.msrb.mxu0 %v2683_v2  ;;  %2764 = vmatpush.bf16.xpose.msra.mxu3 %v2755_v1 }
0x126c   :  { %v4956_v17 = vadd.f32 %v4952_v13, %v2589_v23 }
0x126d   :  { %v2581_v35 = vmul.f32 %v3955_v30, %v2580_v57 }
0x126e   :  { %v2594_v11 = vadd.f32 %v4738_v34, %v4956_v17 }
0x126f   :  { %v2585_v29 = vsel %vm2584_vm15, %v3955_v30, %v2581_v35 }
0x1270   :  { %v2587_v31 = vmul.f32 %v2585_v29, %v2553_v0 }
0x1272   :  { %v2590_v42 = vmul.f32 %v4947_v49, %v2587_v31 }
0x1274   :  { %v4960_v26 = vadd.f32 %v4952_v13, %v2590_v42 }
0x1276   :  { %v2595_v32 = vadd.f32 %v4745_v43, %v4960_v26 }
0x1278   :  { %v2596_v51 = vpack.c.bf16 %v2595_v32, %v2594_v11 }
0x127a   :  { %3668 = vmatmul.msk.bf16.vlgmr.msra.gmra.mxu1 %vm79_vm0, %v2596_v51 }
0x12f7   :  { %v2621_v6 = vpop.f32.mrf.mxu1 }
0x12f8   :  { %v2622_v7 = vadd.f32 %v2621_v6, %v4903_v20 }
0x12fa   :  { %v2626_v33 = vmul.f32 0.35355338, %v2622_v7 }
0x12fc   :  { %v2628_v61 = vpack.c.bf16 %v2626_v33, %v2626_v33 }
0x12fe   :  { %v2673_v48 = vunpack.c.l.b16 %v2628_v61  ;;  %3669 = vmatmul.msk.bf16.vlgmr.msrb.gmra.mxu2 %vm238_vm1, %v2628_v61 }
0x12ff   :  { %v2623_v25 = vpop.f32.mrf.mxu1 }
0x1300   :  { %v2674_v8 = vpack.c.b16 %v2673_v48, %v2673_v48  ;;  %v2624_v59 = vadd.f32 %v2623_v25, %v4903_v20 }
0x1302   :  { %v2627_v0 = vmul.f32 0.35355338, %v2624_v59  ;;  %2724 = vrot.lane.b32.xlu2 %v2674_v8, %s4019_s16  ;;  %2675 = vrot.lane.b32.xlu1 %v2674_v8, %s4016_s21 }
0x1304   :  { %v2629_v34 = vpack.c.bf16 %v2627_v0, %v2627_v0 }
0x1306   :  { %v2699_v43 = vunpack.c.l.b16 %v2629_v34  ;;  %3670 = vmatmul.msk.bf16.vlgmr.msrb.gmra.mxu3 %vm238_vm1, %v2629_v34 }
0x1308   :  { %v2700_v9 = vpack.c.b16 %v2699_v43, %v2699_v43 }
0x130a   :  { %2701 = vrot.lane.b32.xlu0 %v2700_v9, %s4016_s21  ;;  %2795 = vrot.lane.b32.xlu2 %v4346_v14, %s4017_s15 }
0x130b   :  { %2747 = vrot.lane.b32.xlu1 %v2700_v9, %s4019_s16 }
0x1312   :  { %2772 = vrot.lane.b32.xlu0 %v4335_v27, %s4017_s15 }
0x1313   :  { %2770 = vrot.lane.b32.xlu1 %v2674_v8, %s4018_s1 }
0x131a   :  { %2793 = vrot.lane.b32.xlu0 %v2700_v9, %s4018_s1 }
0x1322   :  { %3010 = vrot.lane.b32.xlu0 %v4518_v3, %s4015_s12 }
0x135c   :  { %v2725_v62 = vpop.permute.xlu2 %2724 }
0x135d   :  { %3673 = vmatmul.msk.bf16.vlgmr.msra.gmra.mxu2 %vm238_vm1, %v2725_v62 }
0x1364   :  { %v2796_v45 = vpop.permute.xlu2 %2795 }
0x1365   :  { %v2801_v24 = vsel %vm238_vm1, %v2796_v45, 0 }
0x1366   :  { %2810 = vmatpush.bf16.xpose.msra.mxu1 %v2801_v24 }
0x1374   :  { %v2676_v14 = vpop.permute.xlu1 %2675 }
0x1375   :  { %3671 = vmatmul.msk.bf16.vlgmr.msrb.gmra.mxu0 %vm238_vm1, %v2676_v14 }
0x137c   :  { %v2702_v21 = vpop.permute.xlu0 %2701 }
0x137d   :  { %v2748_v16 = vpop.permute.xlu1 %2747  ;;  %3672 = vmatmul.msk.bf16.vlgmr.msrb.gmra.mxu1 %vm238_vm1, %v2702_v21 }
0x137e   :  { %3674 = vmatmul.msk.bf16.vlgmr.msra.gmra.mxu3 %vm238_vm1, %v2748_v16 }
0x1381   :  { %v2647_v27 = vpop.f32.mrf.mxu2 }
0x1382   :  { %v2816_v10 = vsel %vm829_vm9, %v2647_v27, -inf }
0x1383   :  { %2817 = vmax.xlane.f32.xlu2 %v2816_v10 }
0x1384   :  { %v2773_v63 = vpop.permute.xlu0 %2772 }
0x1385   :  { %v2778_v41 = vsel %vm238_vm1, %v2773_v63, 0  ;;  %v2771_v38 = vpop.permute.xlu1 %2770 }
0x1386   :  { %2787 = vmatpush.bf16.xpose.msra.mxu0 %v2778_v41 }
0x1389   :  { %v2649_v15 = vpop.f32.mrf.mxu2  ;;  %v2668_v37 = vpop.f32.mrf.mxu3 }
0x138a   :  { %v2819_v12 = vsel %vm829_vm9, %v2668_v37, -inf }
0x138b   :  { %2820 = vmax.xlane.f32.xlu1 %v2819_v12 }
0x138c   :  { %v2794_v39 = vpop.permute.xlu0 %2793 }
0x138d   :  { %3675 = vmatmul.msk.bf16.vlgmr.msra.gmra.mxu0 %vm238_vm1, %v2771_v38  ;;  %3676 = vmatmul.msk.bf16.vlgmr.msra.gmra.mxu1 %vm238_vm1, %v2794_v39 }
0x1391   :  { %v2670_v47 = vpop.f32.mrf.mxu3 }
0x1394   :  { %v3011_v44 = vpop.permute.xlu0 %3010 }
0x1395   :  { %3023 = vmatpush.bf16.msrb.mxu2 %v3011_v44 }
0x13e0   :  { %v2743_v28 = vpop.f32.mrf.mxu2 }
0x13e1   :  { %v2828_v46 = vsel %vm829_vm9, %v2743_v28, -inf }
0x13e2   :  { %2829 = vmax.xlane.f32.xlu1 %v2828_v46 }
0x13e8   :  { %v2745_v55 = vpop.f32.mrf.mxu2 }
0x13f2   :  { %v2694_v53 = vpop.f32.mrf.mxu0 }
0x13f3   :  { %v2822_v54 = vsel %vm829_vm9, %v2694_v53, -inf }
0x13f4   :  { %2823 = vmax.xlane.f32.xlu0 %v2822_v54 }
0x13f6   :  { %v2818_v30 = vpop.xlane.xlu2 %2817 }
0x13f7   :  { %v2840_v36 = vsub.f32 %v2647_v27, %v2818_v30 }
0x13f9   :  { %v2848_v18 = vmul.f32 1.442695, %v2840_v36 }
0x13fa   :  { %v2696_v56 = vpop.f32.mrf.mxu0  ;;  %v2720_v58 = vpop.f32.mrf.mxu1 }
0x13fb   :  { %v2825_v22 = vsel %vm829_vm9, %v2720_v58, -inf  ;;  %3956 = vpow2.f32 %v2848_v18 }
0x13fc   :  { %2826 = vmax.xlane.f32.xlu2 %v2825_v22 }
0x13fe   :  { %v2821_v32 = vpop.xlane.xlu1 %2820 }
0x13ff   :  { %v2841_v51 = vsub.f32 %v2668_v37, %v2821_v32 }
0x1401   :  { %v2766_v60 = vpop.f32.mrf.mxu3  ;;  %v4997_v1 = vpop.eup %3956  ;;  %v2850_v6 = vmul.f32 1.442695, %v2841_v51 }
0x1402   :  { %v2831_v40 = vsel %vm829_vm9, %v2766_v60, -inf  ;;  %v2722_v4 = vpop.f32.mrf.mxu1  ;;  %v2864_v57 = vsel %vm829_vm9, %v4997_v1, 0.0 }
0x1403   :  { %2832 = vmax.xlane.f32.xlu0 %v2831_v40  ;;  %3958 = vpow2.f32 %v2850_v6 }
0x1409   :  { %v2768_v2 = vpop.f32.mrf.mxu3  ;;  %v5007_v7 = vpop.eup %3958 }
0x140a   :  { %v2789_v35 = vpop.f32.mrf.mxu0  ;;  %v2812_v23 = vpop.f32.mrf.mxu1  ;;  %v2867_v33 = vsel %vm829_vm9, %v5007_v7, 0.0 }
0x140b   :  { %2865 = vadd.xlane.f32.xlu0 %v2864_v57  ;;  %v2834_v29 = vsel %vm829_vm9, %v2789_v35, -inf  ;;  %v2837_v31 = vsel %vm829_vm9, %v2812_v23, -inf }
0x140c   :  { %2835 = vmax.xlane.f32.xlu2 %v2834_v29  ;;  %2838 = vmax.xlane.f32.xlu1 %v2837_v31 }
0x1412   :  { %v2791_v42 = vpop.f32.mrf.mxu0  ;;  %v2814_v11 = vpop.f32.mrf.mxu1 }
0x141f   :  { %3050 = vrot.lane.b32.xlu0 %v4518_v3, %s4014_s30 }
0x1424   :  { %3029 = vrot.lane.b32.xlu2 %v4520_v5, %s4015_s12 }
0x144d   :  { %2868 = vadd.xlane.f32.xlu2 %v2867_v33 }
0x1455   :  { %v2830_v61 = vpop.xlane.xlu1 %2829 }
0x1456   :  { %v2844_v48 = vsub.f32 %v2743_v28, %v2830_v61 }
0x1458   :  { %v2856_v25 = vmul.f32 1.442695, %v2844_v48 }
0x145a   :  { %3960 = vpow2.f32 %v2856_v25 }
0x1460   :  { %v5011_v8 = vpop.eup %3960 }
0x1461   :  { %v2876_v59 = vsel %vm829_vm9, %v5011_v8, 0.0 }
0x1462   :  { %2877 = vadd.xlane.f32.xlu2 %v2876_v59 }
0x1467   :  { %v2824_v0 = vpop.xlane.xlu0 %2823 }
0x1468   :  { %v2842_v34 = vsub.f32 %v2694_v53, %v2824_v0 }
0x146a   :  { %v2852_v43 = vmul.f32 1.442695, %v2842_v34 }
0x146c   :  { %3962 = vpow2.f32 %v2852_v43 }
0x146f   :  { %v2827_v9 = vpop.xlane.xlu2 %2826 }
0x1470   :  { %v2843_v62 = vsub.f32 %v2720_v58, %v2827_v9 }
0x1472   :  { %v5015_v45 = vpop.eup %3962  ;;  %v2854_v24 = vmul.f32 1.442695, %v2843_v62 }
0x1473   :  { %v2870_v14 = vsel %vm829_vm9, %v5015_v45, 0.0 }
0x1474   :  { %3964 = vpow2.f32 %v2854_v24  ;;  %2871 = vadd.xlane.f32.xlu1 %v2870_v14 }
0x1476   :  { %v2833_v21 = vpop.xlane.xlu0 %2832 }
0x1477   :  { %v2845_v16 = vsub.f32 %v2766_v60, %v2833_v21 }
0x1479   :  { %v2858_v27 = vmul.f32 1.442695, %v2845_v16 }
0x147a   :  { %v5019_v10 = vpop.eup %3964  ;;  %3090 = vrot.lane.b32.xlu2 %v4518_v3, %s4013_s29 }
0x147b   :  { %3966 = vpow2.f32 %v2858_v27  ;;  %v2873_v63 = vsel %vm829_vm9, %v5019_v10, 0.0 }
0x147c   :  { %2874 = vadd.xlane.f32.xlu0 %v2873_v63 }
0x147e   :  { %v2866_v41 = vpop.xlane.xlu0 %2865 }
0x147f   :  { %3968 = vrcp.f32 %v2866_v41  ;;  %v2836_v15 = vpop.xlane.xlu2 %2835  ;;  %v2839_v37 = vpop.xlane.xlu1 %2838  ;;  %v2899_v30 = vand.u32 2147483648, %v2866_v41  ;;  %v2897_v58 = vand.u32 2147483647, %v2866_v41  ;;  %vm2893_vm4 = vweird.f32 %v2866_v41 }
0x1480   :  { %v2846_v12 = vsub.f32 %v2789_v35, %v2836_v15  ;;  %v2847_v47 = vsub.f32 %v2812_v23, %v2839_v37 }
0x1481   :  { %v5025_v38 = vpop.eup %3966  ;;  %v2900_v18 = vor.u32 1.1754944e-38, %v2899_v30  ;;  %vm2898_vm6 = vcmp.eq.f32.partialorder %v2897_v58, 8.507059e+37 }
0x1482   :  { %v2860_v39 = vmul.f32 1.442695, %v2846_v12  ;;  %3130 = vrot.lane.b32.xlu2 %v4518_v3, %s4017_s15  ;;  %v2879_v44 = vsel %vm829_vm9, %v5025_v38, 0.0  ;;  %v2862_v55 = vmul.f32 1.442695, %v2847_v47 }
0x1483   :  { %2880 = vadd.xlane.f32.xlu1 %v2879_v44 }
0x1484   :  { %3970 = vpow2.f32 %v2860_v39 }
0x1485   :  { %v3969_v28 = vpop.eup %3968  ;;  %3972 = vpow2.f32 %v2862_v55 }
0x1486   :  { %v2889_v46 = vmul.f32 %v3969_v28, %v2866_v41  ;;  %vm2894_vm3 = vweird.f32 %v3969_v28 }
0x1487   :  { %v3030_v53 = vpop.permute.xlu2 %3029  ;;  %vm2895_vm5 = vmor %vm2893_vm4, %vm2894_vm3 }
0x1488   :  { %v2890_v54 = vsub.f32 1.0, %v2889_v46  ;;  %3042 = vmatpush.bf16.msrb.mxu3 %v3030_v53 }
0x148a   :  { %v5031_v36 = vpop.eup %3970  ;;  %v2891_v56 = vmul.f32 %v3969_v28, %v2890_v54 }
0x148b   :  { %v2882_v3 = vsel %vm829_vm9, %v5031_v36, 0.0  ;;  %v5035_v4 = vpop.eup %3972 }
0x148c   :  { %v2892_v22 = vadd.f32 %v3969_v28, %v2891_v56  ;;  %2883 = vadd.xlane.f32.xlu1 %v2882_v3  ;;  %v2885_v23 = vsel %vm829_vm9, %v5035_v4, 0.0 }
0x148e   :  { %v2896_v60 = vsel %vm2895_vm5, %v3969_v28, %v2892_v22 }
0x148f   :  { %v2901_v40 = vsel %vm2898_vm6, %v2900_v18, %v2896_v60 }
0x1490   :  { %v2902_v2 = vmul.f32 %v4997_v1, %v2901_v40  ;;  %3109 = vrot.lane.b32.xlu0 %v4520_v5, %s4013_s29 }
0x1491   :  { %v3051_v57 = vpop.permute.xlu0 %3050 }
0x1492   :  { %v3008_v35 = vpack.c.bf16 %v2902_v2, %v2902_v2  ;;  %3063 = vmatpush.bf16.msrb.mxu0 %v3051_v57 }
0x1494   :  { %3677 = vmatmul.msk.bf16.vlgmr.msrb.gmra.mxu2 %vm829_vm9, %v3008_v35  ;;  %2886 = vadd.xlane.f32.xlu1 %v2885_v23 }
0x1498   :  { %3149 = vrot.lane.b32.xlu0 %v4520_v5, %s4017_s15 }
0x14ad   :  { %3069 = vrot.lane.b32.xlu1 %v4520_v5, %s4014_s30 }
0x14c0   :  { %v2869_v29 = vpop.xlane.xlu2 %2868 }
0x14c1   :  { %3974 = vrcp.f32 %v2869_v29  ;;  %v2914_v11 = vand.u32 2147483648, %v2869_v29  ;;  %v2912_v51 = vand.u32 2147483647, %v2869_v29  ;;  %vm2908_vm2 = vweird.f32 %v2869_v29 }
0x14c3   :  { %v2915_v33 = vor.u32 1.1754944e-38, %v2914_v11  ;;  %vm2913_vm11 = vcmp.eq.f32.partialorder %v2912_v51, 8.507059e+37 }
0x14c7   :  { %v3975_v1 = vpop.eup %3974 }
0x14c8   :  { %v2904_v31 = vmul.f32 %v3975_v1, %v2869_v29  ;;  %vm2909_vm7 = vweird.f32 %v3975_v1 }
0x14c9   :  { %vm2910_vm8 = vmor %vm2908_vm2, %vm2909_vm7 }
0x14ca   :  { %v2905_v42 = vsub.f32 1.0, %v2904_v31 }
0x14cc   :  { %v2906_v32 = vmul.f32 %v3975_v1, %v2905_v42 }
0x14ce   :  { %v2907_v6 = vadd.f32 %v3975_v1, %v2906_v32 }
0x14d0   :  { %v2911_v61 = vsel %vm2910_vm8, %v3975_v1, %v2907_v6 }
0x14d1   :  { %v2916_v48 = vsel %vm2913_vm11, %v2915_v33, %v2911_v61 }
0x14d2   :  { %v2917_v25 = vmul.f32 %v5007_v7, %v2916_v48 }
0x14d4   :  { %v3009_v59 = vpack.c.bf16 %v2917_v25, %v2917_v25 }
0x14d5   :  { %v2878_v5 = vpop.xlane.xlu2 %2877 }
0x14d6   :  { %3976 = vrcp.f32 %v2878_v5  ;;  %3678 = vmatmul.msk.bf16.vlgmr.msrb.gmra.mxu3 %vm829_vm9, %v3009_v59  ;;  %v2959_v62 = vand.u32 2147483648, %v2878_v5  ;;  %v2957_v14 = vand.u32 2147483647, %v2878_v5  ;;  %vm2953_vm14 = vweird.f32 %v2878_v5 }
0x14d8   :  { %v2960_v16 = vor.u32 1.1754944e-38, %v2959_v62  ;;  %vm2958_vm3 = vcmp.eq.f32.partialorder %v2957_v14, 8.507059e+37 }
0x14dc   :  { %v3977_v0 = vpop.eup %3976 }
0x14dd   :  { %v2949_v34 = vmul.f32 %v3977_v0, %v2878_v5  ;;  %v3091_v43 = vpop.permute.xlu2 %3090  ;;  %vm2954_vm13 = vweird.f32 %v3977_v0 }
0x14de   :  { %3103 = vmatpush.bf16.msra.mxu2 %v3091_v43  ;;  %vm2955_vm15 = vmor %vm2953_vm14, %vm2954_vm13 }
0x14df   :  { %v2950_v9 = vsub.f32 1.0, %v2949_v34 }
0x14e1   :  { %v2951_v24 = vmul.f32 %v3977_v0, %v2950_v9 }
0x14e3   :  { %v2952_v21 = vadd.f32 %v3977_v0, %v2951_v24 }
0x14e5   :  { %v2956_v27 = vsel %vm2955_vm15, %v3977_v0, %v2952_v21  ;;  %v3131_v7 = vpop.permute.xlu2 %3130 }
0x14e6   :  { %v2961_v63 = vsel %vm2958_vm3, %v2960_v16, %v2956_v27  ;;  %3143 = vmatpush.bf16.msra.mxu0 %v3131_v7 }
0x14e7   :  { %v2962_v41 = vmul.f32 %v5011_v8, %v2961_v63  ;;  %v2872_v15 = vpop.xlane.xlu1 %2871 }
0x14e8   :  { %3978 = vrcp.f32 %v2872_v15  ;;  %v2929_v44 = vand.u32 2147483648, %v2872_v15  ;;  %v2927_v46 = vand.u32 2147483647, %v2872_v15  ;;  %vm2923_vm5 = vweird.f32 %v2872_v15 }
0x14e9   :  { %v3088_v37 = vpack.c.bf16 %v2962_v41, %v2962_v41 }
0x14ea   :  { %v2930_v53 = vor.u32 1.1754944e-38, %v2929_v44  ;;  %vm2928_vm7 = vcmp.eq.f32.partialorder %v2927_v46, 8.507059e+37 }
0x14eb   :  { %3681 = vmatmul.msk.bf16.vlgmr.msra.gmra.mxu2 %vm829_vm9, %v3088_v37 }
0x14ee   :  { %v3979_v12 = vpop.eup %3978 }
0x14ef   :  { %v2919_v39 = vmul.f32 %v3979_v12, %v2872_v15  ;;  %vm2924_vm4 = vweird.f32 %v3979_v12  ;;  %v2875_v58 = vpop.xlane.xlu0 %2874 }
0x14f0   :  { %vm2925_vm6 = vmor %vm2923_vm5, %vm2924_vm4  ;;  %v2944_v27 = vand.u32 2147483648, %v2875_v58  ;;  %v2942_v7 = vand.u32 2147483647, %v2875_v58 }
0x14f1   :  { %v2920_v47 = vsub.f32 1.0, %v2919_v39 }
0x14f2   :  { %v2945_v37 = vor.u32 1.1754944e-38, %v2944_v27 }
0x14f3   :  { %v2921_v28 = vmul.f32 %v3979_v12, %v2920_v47 }
0x14f5   :  { %v2922_v55 = vadd.f32 %v3979_v12, %v2921_v28 }
0x14f6   :  { %v2881_v54 = vpop.xlane.xlu1 %2880 }
0x14f7   :  { %v2926_v30 = vsel %vm2925_vm6, %v3979_v12, %v2922_v55  ;;  %3980 = vrcp.f32 %v2881_v54  ;;  %v2974_v2 = vand.u32 2147483648, %v2881_v54  ;;  %v2972_v35 = vand.u32 2147483647, %v2881_v54 }
0x14f8   :  { %v2931_v8 = vsel %vm2928_vm7, %v2930_v53, %v2926_v30  ;;  %3982 = vrcp.f32 %v2875_v58  ;;  %vm2968_vm8 = vweird.f32 %v2881_v54  ;;  %vm2938_vm6 = vweird.f32 %v2875_v58 }
0x14f9   :  { %v2932_v56 = vmul.f32 %v5015_v45, %v2931_v8  ;;  %v2975_v45 = vor.u32 1.1754944e-38, %v2974_v2  ;;  %vm2973_vm13 = vcmp.eq.f32.partialorder %v2972_v35, 8.507059e+37 }
0x14fb   :  { %v3048_v3 = vpack.c.bf16 %v2932_v56, %v2932_v56 }
0x14fd   :  { %v3981_v22 = vpop.eup %3980  ;;  %3679 = vmatmul.msk.bf16.vlgmr.msrb.gmra.mxu0 %vm829_vm9, %v3048_v3 }
0x14fe   :  { %v2964_v18 = vmul.f32 %v3981_v22, %v2881_v54  ;;  %vm2969_vm2 = vweird.f32 %v3981_v22  ;;  %v3983_v29 = vpop.eup %3982 }
0x14ff   :  { %v2884_v60 = vpop.xlane.xlu1 %2883  ;;  %vm2970_vm11 = vmor %vm2968_vm8, %vm2969_vm2  ;;  %v2934_v11 = vmul.f32 %v3983_v29, %v2875_v58  ;;  %vm2939_vm5 = vweird.f32 %v3983_v29  ;;  %vm2943_vm2 = vcmp.eq.f32.partialorder %v2942_v7, 8.507059e+37 }
0x1500   :  { %v2965_v40 = vsub.f32 1.0, %v2964_v18  ;;  %3984 = vrcp.f32 %v2884_v60  ;;  %v2989_v48 = vand.u32 2147483648, %v2884_v60  ;;  %v2987_v5 = vand.u32 2147483647, %v2884_v60  ;;  %vm2940_vm7 = vmor %vm2938_vm6, %vm2939_vm5 }
0x1501   :  { %v2935_v25 = vsub.f32 1.0, %v2934_v11  ;;  %vm2983_vm15 = vweird.f32 %v2884_v60 }
0x1502   :  { %v2966_v57 = vmul.f32 %v3981_v22, %v2965_v40  ;;  %v3110_v23 = vpop.permute.xlu0 %3109  ;;  %v2990_v43 = vor.u32 1.1754944e-38, %v2989_v48  ;;  %vm2988_vm4 = vcmp.eq.f32.partialorder %v2987_v5, 8.507059e+37 }
0x1503   :  { %3122 = vmatpush.bf16.msra.mxu3 %v3110_v23  ;;  %v2936_v9 = vmul.f32 %v3983_v29, %v2935_v25 }
0x1504   :  { %v2967_v1 = vadd.f32 %v3981_v22, %v2966_v57 }
0x1505   :  { %v2937_v14 = vadd.f32 %v3983_v29, %v2936_v9 }
0x1506   :  { %v3985_v31 = vpop.eup %3984  ;;  %v2971_v42 = vsel %vm2970_vm11, %v3981_v22, %v2967_v1 }
0x1507   :  { %v2976_v32 = vsel %vm2973_vm13, %v2975_v45, %v2971_v42  ;;  %v2979_v51 = vmul.f32 %v3985_v31, %v2884_v60  ;;  %vm2984_vm14 = vweird.f32 %v3985_v31  ;;  %v2887_v0 = vpop.xlane.xlu1 %2886  ;;  %v2941_v63 = vsel %vm2940_vm7, %v3983_v29, %v2937_v14 }
0x1508   :  { %v2977_v6 = vmul.f32 %v5025_v38, %v2976_v32  ;;  %vm2985_vm3 = vmor %vm2983_vm15, %vm2984_vm14  ;;  %3986 = vrcp.f32 %v2887_v0  ;;  %v2946_v12 = vsel %vm2943_vm2, %v2945_v37, %v2941_v63  ;;  %v3004_v54 = vand.u32 2147483648, %v2887_v0 }
0x1509   :  { %v2980_v33 = vsub.f32 1.0, %v2979_v51  ;;  %v2947_v47 = vmul.f32 %v5019_v10, %v2946_v12  ;;  %vm2998_vm11 = vweird.f32 %v2887_v0  ;;  %v3002_v30 = vand.u32 2147483647, %v2887_v0 }
0x150a   :  { %v3089_v61 = vpack.c.bf16 %v2977_v6, %v2977_v6  ;;  %v3150_v46 = vpop.permute.xlu0 %3149  ;;  %v3005_v56 = vor.u32 1.1754944e-38, %v3004_v54  ;;  %v3755_v6 = vld [vmem:[%s5193_s5 + $0x58] sm:$0xff] }
0x150b   :  { %v2981_v59 = vmul.f32 %v3985_v31, %v2980_v33  ;;  %v3049_v55 = vpack.c.bf16 %v2947_v47, %v2947_v47  ;;  %vm3003_vm14 = vcmp.eq.f32.partialorder %v3002_v30, 8.507059e+37  ;;  %3223 = vmatpush.bf16.msrb.mxu2 %v3755_v6  ;;  %v3754_v33 = vld [vmem:[%s5193_s5 + $0x50] sm:$0xff] }
0x150c   :  { %3682 = vmatmul.msk.bf16.vlgmr.msra.gmra.mxu3 %vm829_vm9, %v3089_v61 }
0x150d   :  { %v2982_v34 = vadd.f32 %v3985_v31, %v2981_v59 }
0x150e   :  { %v3987_v16 = vpop.eup %3986 }
0x150f   :  { %v2986_v62 = vsel %vm2985_vm3, %v3985_v31, %v2982_v34  ;;  %v2994_v41 = vmul.f32 %v3987_v16, %v2887_v0  ;;  %vm2999_vm8 = vweird.f32 %v3987_v16  ;;  %3224 = vmatpush.bf16.msrb.mxu2 %v3754_v33 }
0x1510   :  { %v2991_v24 = vsel %vm2988_vm4, %v2990_v43, %v2986_v62  ;;  %vm3000_vm13 = vmor %vm2998_vm11, %vm2999_vm8 }
0x1511   :  { %v2992_v38 = vmul.f32 %v5031_v36, %v2991_v24  ;;  %v2995_v39 = vsub.f32 1.0, %v2994_v41 }
0x1513   :  { %v3128_v21 = vpack.c.bf16 %v2992_v38, %v2992_v38  ;;  %v2996_v36 = vmul.f32 %v3987_v16, %v2995_v39 }
0x1515   :  { %3683 = vmatmul.msk.bf16.vlgmr.msra.gmra.mxu0 %vm829_vm9, %v3128_v21  ;;  %v2997_v53 = vadd.f32 %v3987_v16, %v2996_v36 }
0x1517   :  { %v3025_v15 = vpop.f32.mrf.mxu2  ;;  %v3001_v8 = vsel %vm3000_vm13, %v3987_v16, %v2997_v53 }
0x1518   :  { %v3006_v58 = vsel %vm3003_vm14, %v3005_v56, %v3001_v8 }
0x1519   :  { %v3007_v10 = vmul.f32 %v5035_v4, %v3006_v58  ;;  %v3759_v58 = vld [vmem:[%s5194_s6 + $0x18] sm:$0xff] }
0x151a   :  { %3317 = vmatpush.bf16.msrb.mxu3 %v3759_v58 }
0x151b   :  { %v3129_v3 = vpack.c.bf16 %v3007_v10, %v3007_v10 }
0x151f   :  { %v3027_v44 = vpop.f32.mrf.mxu2  ;;  %v3070_v28 = vpop.permute.xlu1 %3069 }
0x1520   :  { %3082 = vmatpush.bf16.msrb.mxu1 %v3070_v28 }
0x1523   :  { %3680 = vmatmul.msk.bf16.vlgmr.msrb.gmra.mxu1 %vm829_vm9, %v3049_v55 }
0x1524   :  { %3162 = vmatpush.bf16.msra.mxu1 %v3150_v46 }
0x1533   :  { %3684 = vmatmul.msk.bf16.vlgmr.msra.gmra.mxu1 %vm829_vm9, %v3129_v3  ;;  %v3758_v3 = vld [vmem:[%s5194_s6 + $0x10] sm:$0xff] }
0x1534   :  { %3318 = vmatpush.bf16.msrb.mxu3 %v3758_v3  ;;  %v1792_v3 = vsel %vm79_vm0, %v4731_v50, 0.0 }
0x1559   :  { %v3044_v22 = vpop.f32.mrf.mxu3 }
0x1561   :  { %v3046_v18 = vpop.f32.mrf.mxu3 }
0x156e   :  { %v3105_v60 = vpop.f32.mrf.mxu2 }
0x1576   :  { %v3107_v40 = vpop.f32.mrf.mxu2 }
0x157a   :  { %v3065_v2 = vpop.f32.mrf.mxu0 }
0x1582   :  { %v3067_v57 = vpop.f32.mrf.mxu0 }
0x158f   :  { %v3124_v35 = vpop.f32.mrf.mxu3 }
0x1590   :  { %v3830_v23 = vpack.i.bf16 %v3124_v35, %v3105_v60 }
0x1592   :  { %3831 = vrot.lane.b32.xlu0 %v3830_v23, %s4025_s24  ;;  %v3145_v29 = vpop.f32.mrf.mxu0 }
0x1597   :  { %v3126_v1 = vpop.f32.mrf.mxu3 }
0x159a   :  { %v3147_v45 = vpop.f32.mrf.mxu0 }
0x15a0   :  { %v3084_v31 = vpop.f32.mrf.mxu1 }
0x15a1   :  { %v3825_v42 = vpack.i.bf16 %v3084_v31, %v3065_v2 }
0x15a3   :  { %3826 = vrot.lane.b32.xlu2 %v3825_v42, %s4023_s8 }
0x15a8   :  { %v3086_v4 = vpop.f32.mrf.mxu1 }
0x15ab   :  { %3211 = vrot.lane.b32.xlu2 %v4903_v20, %s4012_s22 }
0x15b0   :  { %v3164_v11 = vpop.f32.mrf.mxu1 }
0x15b1   :  { %v3835_v32 = vpack.i.bf16 %v3164_v11, %v3145_v29 }
0x15b3   :  { %3836 = vrot.lane.b32.xlu1 %v3835_v32, %s4024_s23 }
0x15b8   :  { %v3166_v51 = vpop.f32.mrf.mxu1 }
0x15fd   :  { %v3827_v61 = vpop.permute.xlu2 %3826 }
0x15fe   :  { %v3829_v25 = vunpack.i.h.bf16 %v3827_v61  ;;  %v3828_v59 = vunpack.i.l.bf16 %v3827_v61 }
0x1600   :  { %v3193_v34 = vsel %vm238_vm1, %v3044_v22, %v3829_v25  ;;  %v3192_v43 = vsel %vm238_vm1, %v3025_v15, %v3828_v59  ;;  %v4011_v22 = vld [vmem:[%s5190_s9 + $0x8] sm:$0x1f] }
0x1601   :  { %v3295_v18 = vperm.slane %v4011_v22, 2 }
0x1604   :  { %v3832_v48 = vpop.permute.xlu0 %3831 }
0x1605   :  { %v3834_v20 = vunpack.i.h.bf16 %v3832_v48  ;;  %v3833_v5 = vunpack.i.l.bf16 %v3832_v48  ;;  %v3212_v27 = vpop.permute.xlu2 %3211 }
0x1607   :  { %v3195_v24 = vsel %vm829_vm9, %v3193_v34, %v3834_v20  ;;  %v3194_v38 = vsel %vm829_vm9, %v3192_v43, %v3833_v5 }
0x1625   :  { %v3837_v0 = vpop.permute.xlu1 %3836 }
0x1626   :  { %v3839_v9 = vunpack.i.h.bf16 %v3837_v0  ;;  %v3838_v62 = vunpack.i.l.bf16 %v3837_v0 }
0x1628   :  { %v3196_v14 = vsel %vm832_vm10, %v3194_v38, %v3838_v62  ;;  %v3197_v21 = vsel %vm832_vm10, %v3195_v24, %v3839_v9  ;;  %v3763_v9 = vld [vmem:[%s5195_s7 + $0x38] sm:$0xff]  ;;  %v3762_v62 = vld [vmem:[%s5195_s7 + $0x30] sm:$0xff]  ;;  %v3761_v24 = vld [vmem:[%s5195_s7 + $0x28] sm:$0xff] }
0x1629   :  { %v3198_v16 = vpack.c.bf16 %v3197_v21, %v3196_v14  ;;  %3372 = vmatpush.bf16.msrb.mxu0 %v3763_v9  ;;  %v3760_v38 = vld [vmem:[%s5195_s7 + $0x20] sm:$0xff] }
0x162b   :  { %3693 = vmatmul.msk.bf16.vlgmr.msrb.gmra.mxu2 %vm79_vm0, %v3198_v16 }
0x162d   :  { %3373 = vmatpush.bf16.msrb.mxu0 %v3762_v62 }
0x1631   :  { %3374 = vmatpush.bf16.msrb.mxu0 %v3761_v24 }
0x1635   :  { %3375 = vmatpush.bf16.msrb.mxu0 %v3760_v38 }
0x16ae   :  { %v3226_v7 = vpop.f32.mrf.mxu2 }
0x16af   :  { %v3227_v63 = vadd.f32 %v3226_v7, %v3212_v27 }
0x16b1   :  { %v3231_v41 = vadd.f32 %v3227_v63, %v4956_v17 }
0x16b3   :  { %v3233_v15 = vsel %vm79_vm0, %v3231_v41, 0.0 }
0x16b4   :  { %3234 = vadd.xlane.f32.xlu0 %v3233_v15 }
0x16b6   :  { %v3228_v37 = vpop.f32.mrf.mxu2 }
0x16b7   :  { %v3229_v12 = vadd.f32 %v3228_v37, %v3212_v27 }
0x16b9   :  { %v3232_v39 = vadd.f32 %v3229_v12, %v4960_v26 }
0x16bb   :  { %v3236_v47 = vsel %vm79_vm0, %v3232_v39, 0.0 }
0x16bc   :  { %3237 = vadd.xlane.f32.xlu1 %v3236_v47 }
0x16d5   :  { %3278 = vrot.lane.b32.xlu1 %v4947_v49, %s4015_s12 }
0x1727   :  { %v3235_v36 = vpop.xlane.xlu0 %3234 }
0x1728   :  { %v3239_v44 = vmul.f32 %v3235_v36, %v4413_v19 }
0x172a   :  { %v3241_v28 = vsub.f32 %v3231_v41, %v3239_v44 }
0x172c   :  { %v3243_v46 = vmul.f32 %v3241_v28, %v3241_v28 }
0x172e   :  { %v3245_v17 = vsel %vm79_vm0, %v3243_v46, 0.0 }
0x172f   :  { %v3238_v55 = vpop.xlane.xlu1 %3237  ;;  %3246 = vadd.xlane.f32.xlu2 %v3245_v17 }
0x1730   :  { %v3240_v53 = vmul.f32 %v3238_v55, %v4413_v19 }
0x1732   :  { %v3242_v54 = vsub.f32 %v3232_v39, %v3240_v53 }
0x1734   :  { %v3244_v30 = vmul.f32 %v3242_v54, %v3242_v54 }
0x1736   :  { %v3248_v26 = vsel %vm79_vm0, %v3244_v30, 0.0 }
0x1737   :  { %3249 = vadd.xlane.f32.xlu0 %v3248_v26 }
0x1747   :  { %3284 = vrot.lane.b32.xlu2 %v4952_v13, %s4015_s12  ;;  %v3279_v33 = vpop.permute.xlu1 %3278 }
0x174b   :  { %3362 = vrot.lane.b32.xlu0 %v3295_v18, %s4012_s22 }
0x17a2   :  { %v3247_v8 = vpop.xlane.xlu2 %3246 }
0x17a3   :  { %v3251_v56 = vmul.f32 %v3247_v8, %v4413_v19 }
0x17a5   :  { %v3253_v10 = vadd.f32 1e-05, %v3251_v56 }
0x17a7   :  { %3988 = vrsqrt.f32 %v3253_v10  ;;  %vm3261_vm9 = vweird.f32 %v3253_v10 }
0x17aa   :  { %v3250_v60 = vpop.xlane.xlu0 %3249  ;;  %v3285_v20 = vpop.permute.xlu2 %3284 }
0x17ab   :  { %v3252_v40 = vmul.f32 %v3250_v60, %v4413_v19 }
0x17ad   :  { %v3989_v2 = vpop.eup %3988  ;;  %v3254_v57 = vadd.f32 1e-05, %v3252_v40 }
0x17ae   :  { %v3256_v35 = vmul.f32 %v3989_v2, %v3253_v10  ;;  %vm3262_vm1 = vweird.f32 %v3989_v2 }
0x17af   :  { %3990 = vrsqrt.f32 %v3254_v57  ;;  %vm3263_vm10 = vmor %vm3261_vm9, %vm3262_vm1  ;;  %vm3271_vm3 = vweird.f32 %v3254_v57 }
0x17b0   :  { %v3257_v23 = vmul.f32 %v3989_v2, %v3256_v35 }
0x17b2   :  { %v3258_v29 = vmul.f32 0.5, %v3257_v23 }
0x17b4   :  { %v3259_v1 = vsub.f32 1.5, %v3258_v29 }
0x17b5   :  { %v3991_v45 = vpop.eup %3990 }
0x17b6   :  { %v3266_v31 = vmul.f32 %v3991_v45, %v3254_v57  ;;  %v3260_v42 = vmul.f32 %v3989_v2, %v3259_v1  ;;  %vm3272_vm15 = vweird.f32 %v3991_v45 }
0x17b7   :  { %vm3273_vm4 = vmor %vm3271_vm3, %vm3272_vm15 }
0x17b8   :  { %v3267_v4 = vmul.f32 %v3991_v45, %v3266_v31  ;;  %v3264_v32 = vsel %vm3263_vm10, %v3989_v2, %v3260_v42 }
0x17b9   :  { %v3275_v6 = vmul.f32 %v3264_v32, %v3241_v28 }
0x17ba   :  { %v3268_v11 = vmul.f32 0.5, %v3267_v4 }
0x17bb   :  { %v3281_v59 = vmul.f32 %v3279_v33, %v3275_v6 }
0x17bc   :  { %v3269_v51 = vsub.f32 1.5, %v3268_v11 }
0x17bd   :  { %v3287_v0 = vadd.f32 %v3285_v20, %v3281_v59  ;;  %v3363_v15 = vpop.permute.xlu0 %3362 }
0x17be   :  { %v3270_v61 = vmul.f32 %v3991_v45, %v3269_v51 }
0x17c0   :  { %v3274_v48 = vsel %vm3273_vm4, %v3991_v45, %v3270_v61 }
0x17c1   :  { %v3276_v25 = vmul.f32 %v3274_v48, %v3242_v54 }
0x17c3   :  { %v3282_v5 = vmul.f32 %v3279_v33, %v3276_v25 }
0x17c5   :  { %v3288_v34 = vadd.f32 %v3285_v20, %v3282_v5 }
0x17c7   :  { %v3289_v43 = vpack.c.bf16 %v3288_v34, %v3287_v0 }
0x17c9   :  { %3706 = vmatmul.msk.bf16.vlgmr.msrb.gmra.mxu3 %vm79_vm0, %v3289_v43 }
0x184c   :  { %v3320_v14 = vpop.f32.mrf.mxu3 }
0x184d   :  { %v3321_v21 = vadd.f32 %v3320_v14, %v3295_v18 }
0x184f   :  { %v3325_v7 = vmax.f32 %v3321_v21, 0.0 }
0x1854   :  { %v3322_v16 = vpop.f32.mrf.mxu3 }
0x1855   :  { %v3323_v27 = vadd.f32 %v3322_v16, %v3295_v18 }
0x1857   :  { %v3326_v63 = vmax.f32 %v3323_v27, 0.0 }
0x1859   :  { %v3327_v41 = vpack.c.bf16 %v3326_v63, %v3325_v7 }
0x185b   :  { %3731 = vmatmul.msk.bf16.vlgmr.msrb.gmra.mxu0 %vm1718_vm12, %v3327_v41 }
0x18d8   :  { %v3377_v37 = vpop.f32.mrf.mxu0 }
0x18d9   :  { %v3378_v12 = vadd.f32 %v3377_v37, %v3363_v15 }
0x18db   :  { %v3382_v39 = vadd.f32 %v3378_v12, %v3287_v0 }
0x18dd   :  { %v3384_v47 = vsel %vm79_vm0, %v3382_v39, 0.0 }
0x18de   :  { %3385 = vadd.xlane.f32.xlu1 %v3384_v47 }
0x18e0   :  { %v3379_v36 = vpop.f32.mrf.mxu0 }
0x18e1   :  { %v3380_v44 = vadd.f32 %v3379_v36, %v3363_v15 }
0x18e3   :  { %v3383_v28 = vadd.f32 %v3380_v44, %v3288_v34 }
0x18e5   :  { %v3387_v46 = vsel %vm79_vm0, %v3383_v28, 0.0 }
0x18e6   :  { %3388 = vadd.xlane.f32.xlu0 %v3387_v46 }
0x18fa   :  { %3428 = vrot.lane.b32.xlu0 %v4947_v49, %s4012_s22  ;;  %v1795_v49 = vsel %vm79_vm0, %v4733_v52, 0.0 }
0x1951   :  { %v3386_v17 = vpop.xlane.xlu1 %3385 }
0x1952   :  { %v3390_v55 = vmul.f32 %v3386_v17, %v4413_v19 }
0x1954   :  { %v3392_v53 = vsub.f32 %v3382_v39, %v3390_v55 }
0x1956   :  { %v3394_v54 = vmul.f32 %v3392_v53, %v3392_v53 }
0x1958   :  { %v3396_v30 = vsel %vm79_vm0, %v3394_v54, 0.0 }
0x1959   :  { %v3389_v26 = vpop.xlane.xlu0 %3388  ;;  %3397 = vadd.xlane.f32.xlu2 %v3396_v30 }
0x195a   :  { %v3391_v8 = vmul.f32 %v3389_v26, %v4413_v19 }
0x195c   :  { %v3393_v56 = vsub.f32 %v3383_v28, %v3391_v8 }
0x195e   :  { %v3395_v58 = vmul.f32 %v3393_v56, %v3393_v56 }
0x1960   :  { %v3399_v10 = vsel %vm79_vm0, %v3395_v58, 0.0 }
0x1961   :  { %3400 = vadd.xlane.f32.xlu1 %v3399_v10 }
0x1969   :  { %1793 = vadd.xlane.f32.xlu1 %v1792_v3 }
0x196c   :  { %v3429_v33 = vpop.permute.xlu0 %3428 }
0x1971   :  { %1796 = vadd.xlane.f32.xlu1 %v1795_v49  ;;  %3433 = vrot.lane.b32.xlu2 %v4952_v13, %s4012_s22  ;;  %v3841_v49 = vld [vmem:[%s5196_s10 + $0x1] ss:$0 sm:$0xff] }
0x19cc   :  { %v3398_v22 = vpop.xlane.xlu2 %3397 }
0x19cd   :  { %v3402_v18 = vmul.f32 %v3398_v22, %v4413_v19 }
0x19cf   :  { %v3404_v60 = vadd.f32 1e-05, %v3402_v18 }
0x19d1   :  { %3992 = vrsqrt.f32 %v3404_v60  ;;  %vm3412_vm5 = vweird.f32 %v3404_v60 }
0x19d4   :  { %v3401_v40 = vpop.xlane.xlu1 %3400  ;;  %v3434_v20 = vpop.permute.xlu2 %3433 }
0x19d5   :  { %v3403_v2 = vmul.f32 %v3401_v40, %v4413_v19 }
0x19d7   :  { %v3993_v57 = vpop.eup %3992  ;;  %v3405_v35 = vadd.f32 1e-05, %v3403_v2 }
0x19d8   :  { %v3407_v23 = vmul.f32 %v3993_v57, %v3404_v60  ;;  %vm3413_vm12 = vweird.f32 %v3993_v57 }
0x19d9   :  { %3994 = vrsqrt.f32 %v3405_v35  ;;  %vm3414_vm6 = vmor %vm3412_vm5, %vm3413_vm12  ;;  %vm3422_vm2 = vweird.f32 %v3405_v35 }
0x19da   :  { %v3408_v29 = vmul.f32 %v3993_v57, %v3407_v23 }
0x19dc   :  { %v3409_v1 = vmul.f32 0.5, %v3408_v29  ;;  %v1794_v45 = vpop.xlane.xlu1 %1793 }
0x19dd   :  { %v1798_v31 = vmul.f32 %v1794_v45, %v4413_v19 }
0x19de   :  { %v3410_v42 = vsub.f32 1.5, %v3409_v1 }
0x19df   :  { %v3995_v13 = vpop.eup %3994  ;;  %v5135_v4 = vsub.f32 %v4731_v50, %v1798_v31 }
0x19e0   :  { %v3417_v11 = vmul.f32 %v3995_v13, %v3405_v35  ;;  %v3411_v32 = vmul.f32 %v3993_v57, %v3410_v42  ;;  %vm3423_vm7 = vweird.f32 %v3995_v13 }
0x19e1   :  { %v1802_v51 = vmul.f32 %v5135_v4, %v5135_v4  ;;  %vm3424_vm8 = vmor %vm3422_vm2, %vm3423_vm7 }
0x19e2   :  { %v3418_v6 = vmul.f32 %v3995_v13, %v3417_v11  ;;  %v3415_v61 = vsel %vm3414_vm6, %v3993_v57, %v3411_v32 }
0x19e3   :  { %v3426_v48 = vmul.f32 %v3415_v61, %v3392_v53  ;;  %v1804_v25 = vsel %vm79_vm0, %v1802_v51, 0.0 }
0x19e4   :  { %v3419_v59 = vmul.f32 0.5, %v3418_v6  ;;  %1805 = vadd.xlane.f32.xlu2 %v1804_v25  ;;  %v1797_v62 = vpop.xlane.xlu1 %1796 }
0x19e5   :  { %v3431_v5 = vmul.f32 %v3429_v33, %v3426_v48  ;;  %v1799_v14 = vmul.f32 %v1797_v62, %v4413_v19 }
0x19e6   :  { %v3420_v0 = vsub.f32 1.5, %v3419_v59 }
0x19e7   :  { %v3436_v50 = vadd.f32 %v3434_v20, %v3431_v5  ;;  %v1801_v16 = vsub.f32 %v4733_v52, %v1799_v14 }
0x19e8   :  { %v3421_v34 = vmul.f32 %v3995_v13, %v3420_v0 }
0x19e9   :  { %v3438_v43 = vsel %vm79_vm0, %v3436_v50, 0.0  ;;  %v1803_v7 = vmul.f32 %v1801_v16, %v1801_v16 }
0x19ea   :  { %v3425_v9 = vsel %vm3424_vm8, %v3995_v13, %v3421_v34  ;;  %3439 = vadd.xlane.f32.xlu0 %v3438_v43 }
0x19eb   :  { %v3427_v24 = vmul.f32 %v3425_v9, %v3393_v56  ;;  %v1807_v63 = vsel %vm79_vm0, %v1803_v7, 0.0  ;;  %v3840_v56 = vld [vmem:[%s5196_s10] ss:$0 sm:$0xff] }
0x19ed   :  { %v3432_v38 = vmul.f32 %v3429_v33, %v3427_v24 }
0x19ef   :  { %v3437_v21 = vadd.f32 %v3434_v20, %v3432_v38 }
0x19f1   :  { %v3441_v27 = vsel %vm79_vm0, %v3437_v21, 0.0 }
0x19f2   :  { %3442 = vadd.xlane.f32.xlu1 %v3441_v27 }
0x19fa   :  { %1808 = vadd.xlane.f32.xlu1 %v1807_v63 }
0x1a57   :  { %v1806_v41 = vpop.xlane.xlu2 %1805 }
0x1a58   :  { %v1810_v15 = vmul.f32 %v1806_v41, %v4413_v19 }
0x1a5a   :  { %v1812_v37 = vadd.f32 1e-05, %v1810_v15 }
0x1a5c   :  { %3996 = vrsqrt.f32 %v1812_v37  ;;  %vm1820_vm13 = vweird.f32 %v1812_v37 }
0x1a5d   :  { %v3440_v12 = vpop.xlane.xlu0 %3439 }
0x1a5e   :  { %v3444_v39 = vmul.f32 %v3440_v12, %v4413_v19 }
0x1a60   :  { %v5147_v47 = vsub.f32 %v3436_v50, %v3444_v39 }
0x1a62   :  { %v3997_v36 = vpop.eup %3996  ;;  %v3448_v52 = vmul.f32 %v5147_v47, %v5147_v47 }
0x1a63   :  { %v1815_v44 = vmul.f32 %v3997_v36, %v1812_v37  ;;  %vm1821_vm11 = vweird.f32 %v3997_v36 }
0x1a64   :  { %v3450_v28 = vsel %vm79_vm0, %v3448_v52, 0.0  ;;  %vm1822_vm14 = vmor %vm1820_vm13, %vm1821_vm11 }
0x1a65   :  { %v1816_v46 = vmul.f32 %v3997_v36, %v1815_v44  ;;  %3451 = vadd.xlane.f32.xlu1 %v3450_v28  ;;  %v3443_v17 = vpop.xlane.xlu1 %3442 }
0x1a66   :  { %v3445_v55 = vmul.f32 %v3443_v17, %v4413_v19 }
0x1a67   :  { %v1817_v53 = vmul.f32 0.5, %v1816_v46 }
0x1a68   :  { %v5153_v54 = vsub.f32 %v3437_v21, %v3445_v55 }
0x1a69   :  { %v1818_v30 = vsub.f32 1.5, %v1817_v53 }
0x1a6a   :  { %v3449_v26 = vmul.f32 %v5153_v54, %v5153_v54 }
0x1a6b   :  { %v1819_v8 = vmul.f32 %v3997_v36, %v1818_v30 }
0x1a6c   :  { %v3453_v58 = vsel %vm79_vm0, %v3449_v26, 0.0 }
0x1a6d   :  { %v1823_v10 = vsel %vm1822_vm14, %v3997_v36, %v1819_v8  ;;  %3454 = vadd.xlane.f32.xlu1 %v3453_v58  ;;  %v1809_v3 = vpop.xlane.xlu1 %1808 }
0x1a6e   :  { %v1834_v22 = vmul.f32 %v1823_v10, %v5135_v4  ;;  %v1811_v18 = vmul.f32 %v1809_v3, %v4413_v19 }
0x1a70   :  { %v1837_v60 = vmul.f32 %v3840_v56, %v1834_v22  ;;  %v1813_v40 = vadd.f32 1e-05, %v1811_v18 }
0x1a72   :  { %v1840_v2 = vadd.f32 %v3841_v49, %v1837_v60  ;;  %3998 = vrsqrt.f32 %v1813_v40  ;;  %vm1830_vm9 = vweird.f32 %v1813_v40 }
0x1a74   :  { %3486 = vst.msk [vmem:[%s5197_s11] sm:$0xff] %vm79_vm0, %v1840_v2 }
0x1a78   :  { %v3999_v57 = vpop.eup %3998 }
0x1a79   :  { %v1825_v35 = vmul.f32 %v3999_v57, %v1813_v40  ;;  %vm1831_vm1 = vweird.f32 %v3999_v57 }
0x1a7a   :  { %vm1832_vm10 = vmor %vm1830_vm9, %vm1831_vm1 }
0x1a7b   :  { %v1826_v23 = vmul.f32 %v3999_v57, %v1825_v35 }
0x1a7d   :  { %v1827_v29 = vmul.f32 0.5, %v1826_v23 }
0x1a7f   :  { %v1828_v1 = vsub.f32 1.5, %v1827_v29 }
0x1a81   :  { %v1829_v45 = vmul.f32 %v3999_v57, %v1828_v1 }
0x1a83   :  { %v1833_v31 = vsel %vm1832_vm10, %v3999_v57, %v1829_v45 }
0x1a84   :  { %v1835_v42 = vmul.f32 %v1833_v31, %v1801_v16 }
0x1a86   :  { %v1838_v13 = vmul.f32 %v3840_v56, %v1835_v42 }
0x1a88   :  { %v1841_v4 = vadd.f32 %v3841_v49, %v1838_v13 }
0x1a8a   :  { %3487 = vst.msk [vmem:[%s5197_s11 + $0x8] sm:$0xff] %vm79_vm0, %v1841_v4 }
0x1ad8   :  { %v3452_v11 = vpop.xlane.xlu1 %3451 }
0x1ad9   :  { %v3456_v32 = vmul.f32 %v3452_v11, %v4413_v19 }
0x1adb   :  { %v3458_v51 = vadd.f32 1e-05, %v3456_v32 }
0x1add   :  { %4000 = vrsqrt.f32 %v3458_v51  ;;  %vm3466_vm3 = vweird.f32 %v3458_v51 }
0x1ae0   :  { %v3455_v6 = vpop.xlane.xlu1 %3454 }
0x1ae1   :  { %v3457_v33 = vmul.f32 %v3455_v6, %v4413_v19 }
0x1ae3   :  { %v4001_v61 = vpop.eup %4000  ;;  %v3459_v48 = vadd.f32 1e-05, %v3457_v33 }
0x1ae4   :  { %v3461_v25 = vmul.f32 %v4001_v61, %v3458_v51  ;;  %vm3467_vm15 = vweird.f32 %v4001_v61 }
0x1ae5   :  { %4002 = vrsqrt.f32 %v3459_v48  ;;  %vm3468_vm4 = vmor %vm3466_vm3, %vm3467_vm15  ;;  %vm3476_vm5 = vweird.f32 %v3459_v48 }
0x1ae6   :  { %v3462_v59 = vmul.f32 %v4001_v61, %v3461_v25 }
0x1ae8   :  { %v3463_v20 = vmul.f32 0.5, %v3462_v59 }
0x1aea   :  { %v3464_v5 = vsub.f32 1.5, %v3463_v20 }
0x1aeb   :  { %v4003_v0 = vpop.eup %4002 }
0x1aec   :  { %v3465_v50 = vmul.f32 %v4001_v61, %v3464_v5  ;;  %v3471_v34 = vmul.f32 %v4003_v0, %v3459_v48  ;;  %vm3477_vm12 = vweird.f32 %v4003_v0 }
0x1aed   :  { %vm3478_vm6 = vmor %vm3476_vm5, %vm3477_vm12 }
0x1aee   :  { %v3469_v43 = vsel %vm3468_vm4, %v4001_v61, %v3465_v50  ;;  %v3472_v9 = vmul.f32 %v4003_v0, %v3471_v34 }
0x1aef   :  { %v3480_v62 = vmul.f32 %v3469_v43, %v5147_v47 }
0x1af0   :  { %v3473_v24 = vmul.f32 0.5, %v3472_v9 }
0x1af1   :  { %v3482_v38 = vmul.f32 %v3840_v56, %v3480_v62 }
0x1af2   :  { %v3474_v19 = vsub.f32 1.5, %v3473_v24 }
0x1af3   :  { %v3484_v14 = vadd.f32 %v3841_v49, %v3482_v38 }
0x1af4   :  { %v3475_v21 = vmul.f32 %v4003_v0, %v3474_v19 }
0x1af5   :  { %3488 = vst.msk [vmem:[%s5197_s11 + $0x10] sm:$0xff] %vm79_vm0, %v3484_v14 }
0x1af6   :  { %v3479_v16 = vsel %vm3478_vm6, %v4003_v0, %v3475_v21 }
0x1af7   :  { %v3481_v27 = vmul.f32 %v3479_v16, %v5153_v54 }
0x1af9   :  { %v3483_v7 = vmul.f32 %v3840_v56, %v3481_v27 }
0x1afb   :  { %v3485_v63 = vadd.f32 %v3841_v49, %v3483_v7 }
0x1afd   :  { %3489 = vst.msk [vmem:[%s5197_s11 + $0x18] sm:$0xff] %vm79_vm0, %v3485_v63 }

</bundles_post_ra>
